<compile_context>
chip_gen: v6e
topology: v6e:2x2x1
jax: 0.10.0
libtpu: 0.0.40
codegen_flags: <defaults>
</compile_context>

<pallas_src>
import jax
import jax.numpy as jnp
from jax import lax
from jax.experimental import pallas as pl
from jax.experimental.pallas import tpu as pltpu


# --------------------------------------------------------------------------- #
# Pallas kernel
# --------------------------------------------------------------------------- #
def _classifier_kernel(
    emb_ref,      # (L, TB, E)   bf16  embedded tokens (sequence-major, batch-blocked)
    mask_ref,     # (L, TB, 1)   f32   attention mask
    wihcat_ref,   # (E, 8H)      bf16  [W_ih_f^T | W_ih_b^T]
    bcat_ref,     # (1, 8H)      f32   [b_f | b_b]  (b_ih + b_hh per direction)
    whhcat_ref,   # (2H, 8H)     bf16  block-diag([W_hh_f^T, W_hh_b^T])
    convw_ref,    # (3, 2H, H)   bf16  conv weight, convw[k] = W[:, :, k]^T
    convb_ref,    # (1, H)       f32   conv bias
    aw1_ref,      # (H, H)       bf16  attention Linear1 W^T
    ab1_ref,      # (1, H)       f32   attention Linear1 b
    aw2_ref,      # (1, H)       f32   attention Linear2 W (out_features=1)
    ab2_ref,      # (1, 1)       f32   attention Linear2 b
    cw1_ref,      # (H, H)       bf16  classifier Linear1 W^T
    cb1_ref,      # (1, H)       f32   classifier Linear1 b
    cw2_ref,      # (H, Cp)      bf16  classifier Linear2 W^T (lane-padded)
    cb2_ref,      # (1, Cp)      f32   classifier Linear2 b   (lane-padded)
    out_ref,      # (TB, Cp)     f32   sigmoid output (lane-dense, sliced in wrapper)
    gpre_ref,     # scratch (L, TB, 8H)    f32  precomputed input-gate projections (+bias)
    hcnn_ref,     # scratch (L+2, TB, 2H)  f32  masked [h_fwd | h_bwd], zero-padded for conv
):
    L, TB, E = emb_ref.shape
    H = convb_ref.shape[1]
    H2 = 2 * H
    H4 = 4 * H
    H8 = 8 * H
    bf16 = jnp.bfloat16

    def sigmoid(x):
        # EUP tanh + one VALU fma; avoids the VPU divide of 1/(1+exp(-x)).
        return 0.5 * jnp.tanh(0.5 * x) + 0.5

    # ---- 1) hoist x@W_ih out of the recurrence: one MXU matmul, biases folded --- #
    emb_flat = emb_ref[...].reshape(L * TB, E)                        # (L*TB, E) bf16
    gpre_ref[...] = (
        jnp.dot(emb_flat, wihcat_ref[...], preferred_element_type=jnp.float32)
        + bcat_ref[...]
    ).reshape(L, TB, H8)                                              # (L, TB, 8H)

    # zero-padding rows for Conv1d(padding=1)
    zrow = jnp.zeros((TB, H2), jnp.float32)
    hcnn_ref[0] = zrow
    hcnn_ref[L + 1] = zrow

    whhcat = whhcat_ref[...]                                          # (2H, 8H) bf16

    # ---- 2) fused bidirectional recurrence: one block-diag matmul per step ----- #
    def step(s, carry):
        hf, cf, hb, cb = carry
        tf = s
        tb = L - 1 - s
        h_cat = jnp.concatenate([hf, hb], axis=-1).astype(bf16)       # (TB, 2H)
        g_rec = jnp.dot(h_cat, whhcat,
                        preferred_element_type=jnp.float32)           # (TB, 8H)
        # direct ref column slices: one aligned (8,128) tile load per direction
        gf = gpre_ref[tf, :, 0:H4] + g_rec[:, 0:H4]
        gb = gpre_ref[tb, :, H4:H8] + g_rec[:, H4:H8]

        i_f = sigmoid(gf[:, 0:H]);        f_f = sigmoid(gf[:, H:2 * H])
        g_f = jnp.tanh(gf[:, 2 * H:3 * H]); o_f = sigmoid(gf[:, 3 * H:4 * H])
        i_b = sigmoid(gb[:, 0:H]);        f_b = sigmoid(gb[:, H:2 * H])
        g_b = jnp.tanh(gb[:, 2 * H:3 * H]); o_b = sigmoid(gb[:, 3 * H:4 * H])

        cf_n = f_f * cf + i_f * g_f
        hf_n = o_f * jnp.tanh(cf_n)
        cb_n = f_b * cb + i_b * g_b
        hb_n = o_b * jnp.tanh(cb_n)

        # mask applies to the LSTM *output* only (recurrence carries unmasked h)
        hcnn_ref[tf + 1, :, 0:H] = hf_n * mask_ref[tf]
        hcnn_ref[tb + 1, :, H:H2] = hb_n * mask_ref[tb]
        return (hf_n, cf_n, hb_n, cb_n)

    z = jnp.zeros((TB, H), jnp.float32)
    # Full unroll is fine at L=8; at real L switch to a partial unroll (e.g. 8).
    lax.fori_loop(0, L, step, (z, z, z, z), unroll=True)

    # ---- 3) Conv1d(k=3, pad=1): 3 chained dot-accumulates with K = 2H ---------- #
    hall = hcnn_ref[...].astype(bf16)                                 # (L+2, TB, 2H)
    cnn_flat = jnp.zeros((L * TB, H), jnp.float32) + convb_ref[...]
    for k in range(3):
        xk = hall[k:k + L].reshape(L * TB, H2)
        cnn_flat = cnn_flat + jnp.dot(xk, convw_ref[k],
                                      preferred_element_type=jnp.float32)

    # ---- 4) attention (batched over L*TB) + softmax over L --------------------- #
    a1 = jnp.tanh(jnp.dot(cnn_flat.astype(bf16), aw1_ref[...],
                          preferred_element_type=jnp.float32) + ab1_ref[...])
    s_flat = jnp.sum(a1 * aw2_ref[...], axis=-1, keepdims=True) + ab2_ref[...]
    # (L, TB, 1) layout is fine at L=8; use a (TB, L) lane-major layout at real L.
    sc = s_flat.reshape(L, TB, 1)
    m = jnp.max(sc, axis=0, keepdims=True)
    e = jnp.exp(sc - m)
    denom = jnp.sum(e, axis=0, keepdims=True)
    attn = e * pl.reciprocal(denom, approx=True)                      # (L, TB, 1)
    context = jnp.sum(attn * cnn_flat.reshape(L, TB, H), axis=0)      # (TB, H)

    # ---- 5) classifier: Linear -> ReLU -> (Dropout=id) -> Linear -> Sigmoid ---- #
    h1 = jnp.maximum(
        jnp.dot(context.astype(bf16), cw1_ref[...],
                preferred_element_type=jnp.float32) + cb1_ref[...], 0.0)
    logits = (jnp.dot(h1.astype(bf16), cw2_ref[...],
                      preferred_element_type=jnp.float32) + cb2_ref[...])
    out_ref[...] = sigmoid(logits)


# --------------------------------------------------------------------------- #
# Wrapper
# --------------------------------------------------------------------------- #
def forward_pallas(input_ids, attention_mask, p):
    B, L = input_ids.shape
    E = p["embedding"].shape[1]
    H = p["w_hh_f"].shape[0]
    C = p["clf_w2"].shape[1]
    bf16 = jnp.bfloat16

    TB = 8                                    # batch tile (sublane granularity)
    B_pad = ((B + TB - 1) // TB) * TB
    C_pad = ((C + 127) // 128) * 128          # lane-dense output store

    # glue: embedding gather + layout transpose + padding (+ bf16 for the MXU)
    emb = p["embedding"][input_ids].astype(jnp.float32)             # (B, L, E)
    emb_lbe = jnp.transpose(emb, (1, 0, 2))                         # (L, B, E)
    emb_lbe = jnp.pad(emb_lbe, ((0, 0), (0, B_pad - B), (0, 0))).astype(bf16)
    mask_lb1 = attention_mask.T[:, :, None].astype(jnp.float32)     # (L, B, 1)
    mask_lb1 = jnp.pad(mask_lb1, ((0, 0), (0, B_pad - B), (0, 0)))

    # weight prep: concatenated input projection, block-diagonal recurrent weight
    wih_cat = jnp.concatenate([p["w_ih_f"], p["w_ih_b"]], axis=1).astype(bf16)  # (E, 8H)
    b_cat = jnp.concatenate([p["b_f"], p["b_b"]], axis=1)                       # (1, 8H)
    zH = jnp.zeros((H, 4 * H), jnp.float32)
    whh_cat = jnp.concatenate(
        [jnp.concatenate([p["w_hh_f"], zH], axis=1),
         jnp.concatenate([zH, p["w_hh_b"]], axis=1)], axis=0).astype(bf16)      # (2H, 8H)

    conv_w = p["conv_w"].astype(bf16)
    aw1 = p["attn_w1"].astype(bf16)
    cw1 = p["clf_w1"].astype(bf16)
    cw2_pad = jnp.pad(p["clf_w2"], ((0, 0), (0, C_pad - C))).astype(bf16)
    cb2_pad = jnp.pad(p["clf_b2"], ((0, 0), (0, C_pad - C)))

    args = (emb_lbe, mask_lb1, wih_cat, b_cat, whh_cat,
            conv_w, p["conv_b"], aw1, p["attn_b1"], p["attn_w2"], p["attn_b2"],
            cw1, p["clf_b1"], cw2_pad, cb2_pad)

    def full(shape):
        return pl.BlockSpec(shape, lambda b: tuple(0 for _ in shape))

    in_specs = [
        pl.BlockSpec((L, TB, E), lambda b: (0, b, 0)),     # emb (batch-blocked)
        pl.BlockSpec((L, TB, 1), lambda b: (0, b, 0)),     # mask
        full((E, 8 * H)), full((1, 8 * H)), full((2 * H, 8 * H)),
        full((3, 2 * H, H)), full((1, H)),
        full((H, H)), full((1, H)), full((1, H)), full((1, 1)),
        full((H, H)), full((1, H)), full((H, C_pad)), full((1, C_pad)),
    ]

    out = pl.pallas_call(
        _classifier_kernel,
        out_shape=jax.ShapeDtypeStruct((B_pad, C_pad), jnp.float32),
        grid=(B_pad // TB,),
        in_specs=in_specs,
        out_specs=pl.BlockSpec((TB, C_pad), lambda b: (b, 0)),
        scratch_shapes=[
            pltpu.VMEM((L, TB, 8 * H), jnp.float32),       # precomputed input gates
            pltpu.VMEM((L + 2, TB, 2 * H), jnp.float32),   # masked [h_f | h_b] (conv-padded)
        ],
        compiler_params=pltpu.CompilerParams(
            dimension_semantics=("parallel",),             # 2x on v7x (2 TCs), no-op v5e/v6e
            vmem_limit_bytes=32 * 1024 * 1024),
    )(*args)
    return out[:B, :C]


# --------------------------------------------------------------------------- #
# Pure-JAX reference (same math, used only as a numerical cross-check)
# --------------------------------------------------------------------------- #
def forward_reference(input_ids, attention_mask, p):
    emb = p["embedding"][input_ids].astype(jnp.float32)             # (B, L, E)
    B, L, _ = emb.shape
    H = p["w_hh_f"].shape[0]
    xs = jnp.transpose(emb, (1, 0, 2))                              # (L, B, E)

    def run(wih, whh, b, seq):
        def step(carry, x):
            h, c = carry
            g = x @ wih + h @ whh + b
            i = jax.nn.sigmoid(g[:, :H])
            f = jax.nn.sigmoid(g[:, H:2 * H])
            gg = jnp.tanh(g[:, 2 * H:3 * H])
            o = jax.nn.sigmoid(g[:, 3 * H:])
            c = f * c + i * gg
            h = o * jnp.tanh(c)
            return (h, c), h
        init = (jnp.zeros((B, H), jnp.float32), jnp.zeros((B, H), jnp.float32))
        _, hs = lax.scan(step, init, seq)
        return hs

    hf = run(p["w_ih_f"], p["w_hh_f"], p["b_f"][0], xs)
    hb = run(p["w_ih_b"], p["w_hh_b"], p["b_b"][0], xs[::-1])[::-1]
    lstm = jnp.concatenate([hf, hb], -1) * attention_mask.T[:, :, None]  # (L,B,2H)
    pad = jnp.zeros((1, B, 2 * H), jnp.float32)
    lstm_p = jnp.concatenate([pad, lstm, pad], axis=0)
    cnn = jnp.zeros((L, B, H), jnp.float32) + p["conv_b"][0]
    for k in range(3):
        cnn = cnn + jnp.einsum("lbc,ch->lbh", lstm_p[k:k + L], p["conv_w"][k])
    a1 = jnp.tanh(jnp.einsum("lbh,hk->lbk", cnn, p["attn_w1"]) + p["attn_b1"][0])
    scores = jnp.sum(a1 * p["attn_w2"][0], -1, keepdims=True) + p["attn_b2"][0, 0]
    attn = jax.nn.softmax(scores, axis=0)
    context = jnp.sum(attn * cnn, axis=0)
    h1 = jax.nn.relu(context @ p["clf_w1"] + p["clf_b1"][0])
    return jax.nn.sigmoid(h1 @ p["clf_w2"] + p["clf_b2"][0])


# --------------------------------------------------------------------------- #
# Deterministic parameter init (shapes follow EfficientTextClassifier.__init__)
# --------------------------------------------------------------------------- #
def init_params(key, vocab, E, H, C):
    ks = jax.random.split(key, 17)

    def u(k, shape, scale=0.1):
        return jax.random.uniform(k, shape, jnp.float32, -scale, scale)

    emb = u(ks[0], (vocab, E), 0.5)
    emb = emb.at[0].set(0.0)  # padding_idx=0 row is zero
    return dict(
        embedding=emb,
        w_ih_f=u(ks[1], (E, 4 * H)), w_hh_f=u(ks[2], (H, 4 * H)), b_f=u(ks[3], (1, 4 * H)),
        w_ih_b=u(ks[4], (E, 4 * H)), w_hh_b=u(ks[5], (H, 4 * H)), b_b=u(ks[6], (1, 4 * H)),
        conv_w=u(ks[7], (3, 2 * H, H)), conv_b=u(ks[8], (1, H)),
        attn_w1=u(ks[9], (H, H)), attn_b1=u(ks[10], (1, H)),
        attn_w2=u(ks[11], (1, H)), attn_b2=u(ks[12], (1, 1)),
        clf_w1=u(ks[13], (H, H)), clf_b1=u(ks[14], (1, H)),
        clf_w2=u(ks[15], (H, C)), clf_b2=u(ks[16], (1, C)),
    )


if __name__ == "__main__":
    VOCAB, E, H, C = 50, 32, 32, 4   # vocab_size, embedding_dim, hidden_dim, num_classes
    B, L = 2, 8                      # batch, sequence length

    key = jax.random.PRNGKey(0)
    k_par, k_ids = jax.random.split(key)
    params = init_params(k_par, VOCAB, E, H, C)

    input_ids = jax.random.randint(k_ids, (B, L), 0, VOCAB, dtype=jnp.int32)
    lengths = jnp.array([[L], [5]], dtype=jnp.int32)
    attention_mask = (jnp.arange(L)[None, :] < lengths).astype(jnp.float32)  # (B, L)

    out = forward_pallas(input_ids, attention_mask, params)
    out = jax.block_until_ready(out)

    ref = jax.block_until_ready(forward_reference(input_ids, attention_mask, params))
    assert out.shape == (B, C)
    max_err = float(jnp.max(jnp.abs(out - ref)))
    assert max_err < 1e-2, f"mismatch vs reference: {max_err}"

    print("KERNEL_OK")
</pallas_src>

<mosaic_0001>
module attributes {stable_mosaic.version = 11 : i64} {
  func.func @_classifier_kernel(%arg0: i32, %arg1: memref<8x8x32xbf16, #tpu.memory_space<vmem>>, %arg2: memref<8x8x1xf32, #tpu.memory_space<vmem>>, %arg3: memref<32x256xbf16, #tpu.memory_space<vmem>>, %arg4: memref<1x256xf32, #tpu.memory_space<vmem>>, %arg5: memref<64x256xbf16, #tpu.memory_space<vmem>>, %arg6: memref<3x64x32xbf16, #tpu.memory_space<vmem>>, %arg7: memref<1x32xf32, #tpu.memory_space<vmem>>, %arg8: memref<32x32xbf16, #tpu.memory_space<vmem>>, %arg9: memref<1x32xf32, #tpu.memory_space<vmem>>, %arg10: memref<1x32xf32, #tpu.memory_space<vmem>>, %arg11: memref<1x1xf32, #tpu.memory_space<vmem>>, %arg12: memref<32x32xbf16, #tpu.memory_space<vmem>>, %arg13: memref<1x32xf32, #tpu.memory_space<vmem>>, %arg14: memref<32x128xbf16, #tpu.memory_space<vmem>>, %arg15: memref<1x128xf32, #tpu.memory_space<vmem>>, %arg16: memref<8x128xf32, #tpu.memory_space<vmem>>, %arg17: memref<8x8x256xf32, #tpu.memory_space<vmem>>, %arg18: memref<10x8x64xf32, #tpu.memory_space<vmem>>) attributes {dimension_semantics = [#tpu.dimension_semantics<parallel>], iteration_bounds = array<i64: 1>, scalar_prefetch = 0 : i64, scratch_operands = 2 : i64, tpu.core_type = #tpu.core_type<tc>, window_params = [{transform_indices = @transform_0, window_bounds = array<i64: 8, 8, 32>}, {transform_indices = @transform_1, window_bounds = array<i64: 8, 8, 1>}, {pipeline_mode = #tpu.pipeline_mode<synchronous>, transform_indices = @transform_2, window_bounds = array<i64: 32, 256>}, {pipeline_mode = #tpu.pipeline_mode<synchronous>, transform_indices = @transform_3, window_bounds = array<i64: 1, 256>}, {pipeline_mode = #tpu.pipeline_mode<synchronous>, transform_indices = @transform_4, window_bounds = array<i64: 64, 256>}, {pipeline_mode = #tpu.pipeline_mode<synchronous>, transform_indices = @transform_5, window_bounds = array<i64: 3, 64, 32>}, {pipeline_mode = #tpu.pipeline_mode<synchronous>, transform_indices = @transform_6, window_bounds = array<i64: 1, 32>}, {pipeline_mode = #tpu.pipeline_mode<synchronous>, transform_indices = @transform_7, window_bounds = array<i64: 32, 32>}, {pipeline_mode = #tpu.pipeline_mode<synchronous>, transform_indices = @transform_8, window_bounds = array<i64: 1, 32>}, {pipeline_mode = #tpu.pipeline_mode<synchronous>, transform_indices = @transform_9, window_bounds = array<i64: 1, 32>}, {pipeline_mode = #tpu.pipeline_mode<synchronous>, transform_indices = @transform_10, window_bounds = array<i64: 1, 1>}, {pipeline_mode = #tpu.pipeline_mode<synchronous>, transform_indices = @transform_11, window_bounds = array<i64: 32, 32>}, {pipeline_mode = #tpu.pipeline_mode<synchronous>, transform_indices = @transform_12, window_bounds = array<i64: 1, 32>}, {pipeline_mode = #tpu.pipeline_mode<synchronous>, transform_indices = @transform_13, window_bounds = array<i64: 32, 128>}, {pipeline_mode = #tpu.pipeline_mode<synchronous>, transform_indices = @transform_14, window_bounds = array<i64: 1, 128>}, {transform_indices = @transform_15, window_bounds = array<i64: 8, 128>}]} {
    %c0 = arith.constant 0 : index
    %c0_0 = arith.constant 0 : index
    %c0_1 = arith.constant 0 : index
    %0 = vector.load %arg1[%c0, %c0_0, %c0_1] : memref<8x8x32xbf16, #tpu.memory_space<vmem>>, vector<8x8x32xbf16>
    %1 = vector.shape_cast %0 : vector<8x8x32xbf16> to vector<64x32xbf16>
    %c0_2 = arith.constant 0 : index
    %c0_3 = arith.constant 0 : index
    %2 = vector.load %arg3[%c0_2, %c0_3] : memref<32x256xbf16, #tpu.memory_space<vmem>>, vector<32x256xbf16>
    %cst = arith.constant dense<0.000000e+00> : vector<64x256xf32>
    %3 = tpu.matmul %1, %2, %cst {dimension_numbers = #tpu.dot_dimension_numbers<[1], [0], [0], [1], [0, 0, 1, 1], [], []>} : vector<64x32xbf16>, vector<32x256xbf16>, vector<64x256xf32> -> vector<64x256xf32>
    %c0_4 = arith.constant 0 : index
    %c0_5 = arith.constant 0 : index
    %4 = vector.load %arg4[%c0_4, %c0_5] : memref<1x256xf32, #tpu.memory_space<vmem>>, vector<1x256xf32>
    %5 = vector.broadcast %4 : vector<1x256xf32> to vector<64x256xf32>
    %6 = arith.addf %3, %5 : vector<64x256xf32>
    %7 = vector.shape_cast %6 : vector<64x256xf32> to vector<8x8x256xf32>
    %c0_6 = arith.constant 0 : index
    %c0_7 = arith.constant 0 : index
    %c0_8 = arith.constant 0 : index
    %8 = vector.load %arg17[%c0_6, %c0_7, %c0_8] : memref<8x8x256xf32, #tpu.memory_space<vmem>>, vector<8x8x256xf32>
    tpu.vector_store %arg17[%c0_6, %c0_7, %c0_8], %7 {strides = array<i32>} : memref<8x8x256xf32, #tpu.memory_space<vmem>>, vector<8x8x256xf32>,
    %cst_9 = arith.constant 0.000000e+00 : f32
    %9 = vector.broadcast %cst_9 : f32 to vector<8x64xf32>
    %c0_10 = arith.constant 0 : index
    %c0_11 = arith.constant 0 : index
    %c0_12 = arith.constant 0 : index
    %10 = vector.load %arg18[%c0_10, %c0_11, %c0_12] : memref<10x8x64xf32, #tpu.memory_space<vmem>>, vector<1x8x64xf32>
    %11 = vector.shape_cast %10 : vector<1x8x64xf32> to vector<8x64xf32>
    %12 = vector.shape_cast %9 : vector<8x64xf32> to vector<1x8x64xf32>
    tpu.vector_store %arg18[%c0_10, %c0_11, %c0_12], %12 {strides = array<i32>} : memref<10x8x64xf32, #tpu.memory_space<vmem>>, vector<1x8x64xf32>,
    %c9 = arith.constant 9 : index
    %c0_13 = arith.constant 0 : index
    %c0_14 = arith.constant 0 : index
    %13 = vector.load %arg18[%c9, %c0_13, %c0_14] : memref<10x8x64xf32, #tpu.memory_space<vmem>>, vector<1x8x64xf32>
    %14 = vector.shape_cast %13 : vector<1x8x64xf32> to vector<8x64xf32>
    %15 = vector.shape_cast %9 : vector<8x64xf32> to vector<1x8x64xf32>
    tpu.vector_store %arg18[%c9, %c0_13, %c0_14], %15 {strides = array<i32>} : memref<10x8x64xf32, #tpu.memory_space<vmem>>, vector<1x8x64xf32>,
    %c0_15 = arith.constant 0 : index
    %c0_16 = arith.constant 0 : index
    %16 = vector.load %arg5[%c0_15, %c0_16] : memref<64x256xbf16, #tpu.memory_space<vmem>>, vector<64x256xbf16>
    %cst_17 = arith.constant 0.000000e+00 : f32
    %17 = vector.broadcast %cst_17 : f32 to vector<8x32xf32>
    %c0_i32 = arith.constant 0 : i32
    %c7_i32 = arith.constant 7 : i32
    %18 = arith.subi %c7_i32, %c0_i32 : i32
    %19 = tpu.concatenate %17, %17 in 1 : vector<8x32xf32>, vector<8x32xf32> -> vector<8x64xf32>
    %20 = arith.truncf %19 : vector<8x64xf32> to vector<8x64xbf16>
    %cst_18 = arith.constant dense<0.000000e+00> : vector<8x256xf32>
    %21 = tpu.matmul %20, %16, %cst_18 {dimension_numbers = #tpu.dot_dimension_numbers<[1], [0], [0], [1], [0, 0, 1, 1], [], []>} : vector<8x64xbf16>, vector<64x256xbf16>, vector<8x256xf32> -> vector<8x256xf32>
    %22 = arith.index_cast %c0_i32 : i32 to index
    %c0_19 = arith.constant 0 : index
    %c0_20 = arith.constant 0 : index
    %23 = vector.load %arg17[%22, %c0_19, %c0_20] : memref<8x8x256xf32, #tpu.memory_space<vmem>>, vector<1x8x128xf32>
    %24 = vector.shape_cast %23 : vector<1x8x128xf32> to vector<8x128xf32>
    %25 = vector.extract_strided_slice %21 {offsets = [0, 0], sizes = [8, 128], strides = [1, 1]} : vector<8x256xf32> to vector<8x128xf32>
    %26 = arith.addf %24, %25 : vector<8x128xf32>
    %27 = arith.index_cast %18 : i32 to index
    %c0_21 = arith.constant 0 : index
    %c128 = arith.constant 128 : index
    %28 = vector.load %arg17[%27, %c0_21, %c128] : memref<8x8x256xf32, #tpu.memory_space<vmem>>, vector<1x8x128xf32>
    %29 = vector.shape_cast %28 : vector<1x8x128xf32> to vector<8x128xf32>
    %30 = vector.extract_strided_slice %21 {offsets = [0, 128], sizes = [8, 128], strides = [1, 1]} : vector<8x256xf32> to vector<8x128xf32>
    %31 = arith.addf %29, %30 : vector<8x128xf32>
    %32 = vector.extract_strided_slice %26 {offsets = [0, 0], sizes = [8, 32], strides = [1, 1]} : vector<8x128xf32> to vector<8x32xf32>
    %cst_22 = arith.constant 5.000000e-01 : f32
    %33 = vector.broadcast %cst_22 : f32 to vector<8x32xf32>
    %34 = arith.mulf %33, %32 : vector<8x32xf32>
    %35 = math.tanh %34 : vector<8x32xf32>
    %cst_23 = arith.constant 5.000000e-01 : f32
    %36 = vector.broadcast %cst_23 : f32 to vector<8x32xf32>
    %37 = arith.mulf %36, %35 : vector<8x32xf32>
    %cst_24 = arith.constant 5.000000e-01 : f32
    %38 = vector.broadcast %cst_24 : f32 to vector<8x32xf32>
    %39 = arith.addf %37, %38 : vector<8x32xf32>
    %40 = vector.extract_strided_slice %26 {offsets = [0, 32], sizes = [8, 32], strides = [1, 1]} : vector<8x128xf32> to vector<8x32xf32>
    %cst_25 = arith.constant 5.000000e-01 : f32
    %41 = vector.broadcast %cst_25 : f32 to vector<8x32xf32>
    %42 = arith.mulf %41, %40 : vector<8x32xf32>
    %43 = math.tanh %42 : vector<8x32xf32>
    %cst_26 = arith.constant 5.000000e-01 : f32
    %44 = vector.broadcast %cst_26 : f32 to vector<8x32xf32>
    %45 = arith.mulf %44, %43 : vector<8x32xf32>
    %cst_27 = arith.constant 5.000000e-01 : f32
    %46 = vector.broadcast %cst_27 : f32 to vector<8x32xf32>
    %47 = arith.addf %45, %46 : vector<8x32xf32>
    %48 = vector.extract_strided_slice %26 {offsets = [0, 64], sizes = [8, 32], strides = [1, 1]} : vector<8x128xf32> to vector<8x32xf32>
    %49 = math.tanh %48 : vector<8x32xf32>
    %50 = vector.extract_strided_slice %26 {offsets = [0, 96], sizes = [8, 32], strides = [1, 1]} : vector<8x128xf32> to vector<8x32xf32>
    %cst_28 = arith.constant 5.000000e-01 : f32
    %51 = vector.broadcast %cst_28 : f32 to vector<8x32xf32>
    %52 = arith.mulf %51, %50 : vector<8x32xf32>
    %53 = math.tanh %52 : vector<8x32xf32>
    %cst_29 = arith.constant 5.000000e-01 : f32
    %54 = vector.broadcast %cst_29 : f32 to vector<8x32xf32>
    %55 = arith.mulf %54, %53 : vector<8x32xf32>
    %cst_30 = arith.constant 5.000000e-01 : f32
    %56 = vector.broadcast %cst_30 : f32 to vector<8x32xf32>
    %57 = arith.addf %55, %56 : vector<8x32xf32>
    %58 = vector.extract_strided_slice %31 {offsets = [0, 0], sizes = [8, 32], strides = [1, 1]} : vector<8x128xf32> to vector<8x32xf32>
    %cst_31 = arith.constant 5.000000e-01 : f32
    %59 = vector.broadcast %cst_31 : f32 to vector<8x32xf32>
    %60 = arith.mulf %59, %58 : vector<8x32xf32>
    %61 = math.tanh %60 : vector<8x32xf32>
    %cst_32 = arith.constant 5.000000e-01 : f32
    %62 = vector.broadcast %cst_32 : f32 to vector<8x32xf32>
    %63 = arith.mulf %62, %61 : vector<8x32xf32>
    %cst_33 = arith.constant 5.000000e-01 : f32
    %64 = vector.broadcast %cst_33 : f32 to vector<8x32xf32>
    %65 = arith.addf %63, %64 : vector<8x32xf32>
    %66 = vector.extract_strided_slice %31 {offsets = [0, 32], sizes = [8, 32], strides = [1, 1]} : vector<8x128xf32> to vector<8x32xf32>
    %cst_34 = arith.constant 5.000000e-01 : f32
    %67 = vector.broadcast %cst_34 : f32 to vector<8x32xf32>
    %68 = arith.mulf %67, %66 : vector<8x32xf32>
    %69 = math.tanh %68 : vector<8x32xf32>
    %cst_35 = arith.constant 5.000000e-01 : f32
    %70 = vector.broadcast %cst_35 : f32 to vector<8x32xf32>
    %71 = arith.mulf %70, %69 : vector<8x32xf32>
    %cst_36 = arith.constant 5.000000e-01 : f32
    %72 = vector.broadcast %cst_36 : f32 to vector<8x32xf32>
    %73 = arith.addf %71, %72 : vector<8x32xf32>
    %74 = vector.extract_strided_slice %31 {offsets = [0, 64], sizes = [8, 32], strides = [1, 1]} : vector<8x128xf32> to vector<8x32xf32>
    %75 = math.tanh %74 : vector<8x32xf32>
    %76 = vector.extract_strided_slice %31 {offsets = [0, 96], sizes = [8, 32], strides = [1, 1]} : vector<8x128xf32> to vector<8x32xf32>
    %cst_37 = arith.constant 5.000000e-01 : f32
    %77 = vector.broadcast %cst_37 : f32 to vector<8x32xf32>
    %78 = arith.mulf %77, %76 : vector<8x32xf32>
    %79 = math.tanh %78 : vector<8x32xf32>
    %cst_38 = arith.constant 5.000000e-01 : f32
    %80 = vector.broadcast %cst_38 : f32 to vector<8x32xf32>
    %81 = arith.mulf %80, %79 : vector<8x32xf32>
    %cst_39 = arith.constant 5.000000e-01 : f32
    %82 = vector.broadcast %cst_39 : f32 to vector<8x32xf32>
    %83 = arith.addf %81, %82 : vector<8x32xf32>
    %84 = arith.mulf %47, %17 : vector<8x32xf32>
    %85 = arith.mulf %39, %49 : vector<8x32xf32>
    %86 = arith.addf %84, %85 : vector<8x32xf32>
    %87 = math.tanh %86 : vector<8x32xf32>
    %88 = arith.mulf %57, %87 : vector<8x32xf32>
    %89 = arith.mulf %73, %17 : vector<8x32xf32>
    %90 = arith.mulf %65, %75 : vector<8x32xf32>
    %91 = arith.addf %89, %90 : vector<8x32xf32>
    %92 = math.tanh %91 : vector<8x32xf32>
    %93 = arith.mulf %83, %92 : vector<8x32xf32>
    %94 = arith.index_cast %c0_i32 : i32 to index
    %c0_40 = arith.constant 0 : index
    %c0_41 = arith.constant 0 : index
    %95 = vector.load %arg2[%94, %c0_40, %c0_41] : memref<8x8x1xf32, #tpu.memory_space<vmem>>, vector<1x8x1xf32>
    %96 = vector.shape_cast %95 : vector<1x8x1xf32> to vector<8x1xf32>
    %97 = vector.broadcast %96 : vector<8x1xf32> to vector<8x32xf32>
    %98 = arith.mulf %88, %97 : vector<8x32xf32>
    %c1_i32 = arith.constant 1 : i32
    %99 = arith.addi %c0_i32, %c1_i32 : i32
    %100 = arith.index_cast %99 : i32 to index
    %c0_42 = arith.constant 0 : index
    %c0_43 = arith.constant 0 : index
    %101 = vector.load %arg18[%100, %c0_42, %c0_43] : memref<10x8x64xf32, #tpu.memory_space<vmem>>, vector<1x8x32xf32>
    %102 = vector.shape_cast %101 : vector<1x8x32xf32> to vector<8x32xf32>
    %103 = vector.shape_cast %98 : vector<8x32xf32> to vector<1x8x32xf32>
    tpu.vector_store %arg18[%100, %c0_42, %c0_43], %103 {strides = array<i32>} : memref<10x8x64xf32, #tpu.memory_space<vmem>>, vector<1x8x32xf32>,
    %104 = arith.index_cast %18 : i32 to index
    %c0_44 = arith.constant 0 : index
    %c0_45 = arith.constant 0 : index
    %105 = vector.load %arg2[%104, %c0_44, %c0_45] : memref<8x8x1xf32, #tpu.memory_space<vmem>>, vector<1x8x1xf32>
    %106 = vector.shape_cast %105 : vector<1x8x1xf32> to vector<8x1xf32>
    %107 = vector.broadcast %106 : vector<8x1xf32> to vector<8x32xf32>
    %108 = arith.mulf %93, %107 : vector<8x32xf32>
    %c1_i32_46 = arith.constant 1 : i32
    %109 = arith.addi %18, %c1_i32_46 : i32
    %110 = arith.index_cast %109 : i32 to index
    %c0_47 = arith.constant 0 : index
    %c32 = arith.constant 32 : index
    %111 = vector.load %arg18[%110, %c0_47, %c32] : memref<10x8x64xf32, #tpu.memory_space<vmem>>, vector<1x8x32xf32>
    %112 = vector.shape_cast %111 : vector<1x8x32xf32> to vector<8x32xf32>
    %113 = vector.shape_cast %108 : vector<8x32xf32> to vector<1x8x32xf32>
    tpu.vector_store %arg18[%110, %c0_47, %c32], %113 {strides = array<i32>} : memref<10x8x64xf32, #tpu.memory_space<vmem>>, vector<1x8x32xf32>,
    %c1_i32_48 = arith.constant 1 : i32
    %c7_i32_49 = arith.constant 7 : i32
    %114 = arith.subi %c7_i32_49, %c1_i32_48 : i32
    %115 = tpu.concatenate %88, %93 in 1 : vector<8x32xf32>, vector<8x32xf32> -> vector<8x64xf32>
    %116 = arith.truncf %115 : vector<8x64xf32> to vector<8x64xbf16>
    %cst_50 = arith.constant dense<0.000000e+00> : vector<8x256xf32>
    %117 = tpu.matmul %116, %16, %cst_50 {dimension_numbers = #tpu.dot_dimension_numbers<[1], [0], [0], [1], [0, 0, 1, 1], [], []>} : vector<8x64xbf16>, vector<64x256xbf16>, vector<8x256xf32> -> vector<8x256xf32>
    %118 = arith.index_cast %c1_i32_48 : i32 to index
    %c0_51 = arith.constant 0 : index
    %c0_52 = arith.constant 0 : index
    %119 = vector.load %arg17[%118, %c0_51, %c0_52] : memref<8x8x256xf32, #tpu.memory_space<vmem>>, vector<1x8x128xf32>
    %120 = vector.shape_cast %119 : vector<1x8x128xf32> to vector<8x128xf32>
    %121 = vector.extract_strided_slice %117 {offsets = [0, 0], sizes = [8, 128], strides = [1, 1]} : vector<8x256xf32> to vector<8x128xf32>
    %122 = arith.addf %120, %121 : vector<8x128xf32>
    %123 = arith.index_cast %114 : i32 to index
    %c0_53 = arith.constant 0 : index
    %c128_54 = arith.constant 128 : index
    %124 = vector.load %arg17[%123, %c0_53, %c128_54] : memref<8x8x256xf32, #tpu.memory_space<vmem>>, vector<1x8x128xf32>
    %125 = vector.shape_cast %124 : vector<1x8x128xf32> to vector<8x128xf32>
    %126 = vector.extract_strided_slice %117 {offsets = [0, 128], sizes = [8, 128], strides = [1, 1]} : vector<8x256xf32> to vector<8x128xf32>
    %127 = arith.addf %125, %126 : vector<8x128xf32>
    %128 = vector.extract_strided_slice %122 {offsets = [0, 0], sizes = [8, 32], strides = [1, 1]} : vector<8x128xf32> to vector<8x32xf32>
    %cst_55 = arith.constant 5.000000e-01 : f32
    %129 = vector.broadcast %cst_55 : f32 to vector<8x32xf32>
    %130 = arith.mulf %129, %128 : vector<8x32xf32>
    %131 = math.tanh %130 : vector<8x32xf32>
    %cst_56 = arith.constant 5.000000e-01 : f32
    %132 = vector.broadcast %cst_56 : f32 to vector<8x32xf32>
    %133 = arith.mulf %132, %131 : vector<8x32xf32>
    %cst_57 = arith.constant 5.000000e-01 : f32
    %134 = vector.broadcast %cst_57 : f32 to vector<8x32xf32>
    %135 = arith.addf %133, %134 : vector<8x32xf32>
    %136 = vector.extract_strided_slice %122 {offsets = [0, 32], sizes = [8, 32], strides = [1, 1]} : vector<8x128xf32> to vector<8x32xf32>
    %cst_58 = arith.constant 5.000000e-01 : f32
    %137 = vector.broadcast %cst_58 : f32 to vector<8x32xf32>
    %138 = arith.mulf %137, %136 : vector<8x32xf32>
    %139 = math.tanh %138 : vector<8x32xf32>
    %cst_59 = arith.constant 5.000000e-01 : f32
    %140 = vector.broadcast %cst_59 : f32 to vector<8x32xf32>
    %141 = arith.mulf %140, %139 : vector<8x32xf32>
    %cst_60 = arith.constant 5.000000e-01 : f32
    %142 = vector.broadcast %cst_60 : f32 to vector<8x32xf32>
    %143 = arith.addf %141, %142 : vector<8x32xf32>
    %144 = vector.extract_strided_slice %122 {offsets = [0, 64], sizes = [8, 32], strides = [1, 1]} : vector<8x128xf32> to vector<8x32xf32>
    %145 = math.tanh %144 : vector<8x32xf32>
    %146 = vector.extract_strided_slice %122 {offsets = [0, 96], sizes = [8, 32], strides = [1, 1]} : vector<8x128xf32> to vector<8x32xf32>
    %cst_61 = arith.constant 5.000000e-01 : f32
    %147 = vector.broadcast %cst_61 : f32 to vector<8x32xf32>
    %148 = arith.mulf %147, %146 : vector<8x32xf32>
    %149 = math.tanh %148 : vector<8x32xf32>
    %cst_62 = arith.constant 5.000000e-01 : f32
    %150 = vector.broadcast %cst_62 : f32 to vector<8x32xf32>
    %151 = arith.mulf %150, %149 : vector<8x32xf32>
    %cst_63 = arith.constant 5.000000e-01 : f32
    %152 = vector.broadcast %cst_63 : f32 to vector<8x32xf32>
    %153 = arith.addf %151, %152 : vector<8x32xf32>
    %154 = vector.extract_strided_slice %127 {offsets = [0, 0], sizes = [8, 32], strides = [1, 1]} : vector<8x128xf32> to vector<8x32xf32>
    %cst_64 = arith.constant 5.000000e-01 : f32
    %155 = vector.broadcast %cst_64 : f32 to vector<8x32xf32>
    %156 = arith.mulf %155, %154 : vector<8x32xf32>
    %157 = math.tanh %156 : vector<8x32xf32>
    %cst_65 = arith.constant 5.000000e-01 : f32
    %158 = vector.broadcast %cst_65 : f32 to vector<8x32xf32>
    %159 = arith.mulf %158, %157 : vector<8x32xf32>
    %cst_66 = arith.constant 5.000000e-01 : f32
    %160 = vector.broadcast %cst_66 : f32 to vector<8x32xf32>
    %161 = arith.addf %159, %160 : vector<8x32xf32>
    %162 = vector.extract_strided_slice %127 {offsets = [0, 32], sizes = [8, 32], strides = [1, 1]} : vector<8x128xf32> to vector<8x32xf32>
    %cst_67 = arith.constant 5.000000e-01 : f32
    %163 = vector.broadcast %cst_67 : f32 to vector<8x32xf32>
    %164 = arith.mulf %163, %162 : vector<8x32xf32>
    %165 = math.tanh %164 : vector<8x32xf32>
    %cst_68 = arith.constant 5.000000e-01 : f32
    %166 = vector.broadcast %cst_68 : f32 to vector<8x32xf32>
    %167 = arith.mulf %166, %165 : vector<8x32xf32>
    %cst_69 = arith.constant 5.000000e-01 : f32
    %168 = vector.broadcast %cst_69 : f32 to vector<8x32xf32>
    %169 = arith.addf %167, %168 : vector<8x32xf32>
    %170 = vector.extract_strided_slice %127 {offsets = [0, 64], sizes = [8, 32], strides = [1, 1]} : vector<8x128xf32> to vector<8x32xf32>
    %171 = math.tanh %170 : vector<8x32xf32>
    %172 = vector.extract_strided_slice %127 {offsets = [0, 96], sizes = [8, 32], strides = [1, 1]} : vector<8x128xf32> to vector<8x32xf32>
    %cst_70 = arith.constant 5.000000e-01 : f32
    %173 = vector.broadcast %cst_70 : f32 to vector<8x32xf32>
    %174 = arith.mulf %173, %172 : vector<8x32xf32>
    %175 = math.tanh %174 : vector<8x32xf32>
    %cst_71 = arith.constant 5.000000e-01 : f32
    %176 = vector.broadcast %cst_71 : f32 to vector<8x32xf32>
    %177 = arith.mulf %176, %175 : vector<8x32xf32>
    %cst_72 = arith.constant 5.000000e-01 : f32
    %178 = vector.broadcast %cst_72 : f32 to vector<8x32xf32>
    %179 = arith.addf %177, %178 : vector<8x32xf32>
    %180 = arith.mulf %143, %86 : vector<8x32xf32>
    %181 = arith.mulf %135, %145 : vector<8x32xf32>
    %182 = arith.addf %180, %181 : vector<8x32xf32>
    %183 = math.tanh %182 : vector<8x32xf32>
    %184 = arith.mulf %153, %183 : vector<8x32xf32>
    %185 = arith.mulf %169, %91 : vector<8x32xf32>
    %186 = arith.mulf %161, %171 : vector<8x32xf32>
    %187 = arith.addf %185, %186 : vector<8x32xf32>
    %188 = math.tanh %187 : vector<8x32xf32>
    %189 = arith.mulf %179, %188 : vector<8x32xf32>
    %190 = arith.index_cast %c1_i32_48 : i32 to index
    %c0_73 = arith.constant 0 : index
    %c0_74 = arith.constant 0 : index
    %191 = vector.load %arg2[%190, %c0_73, %c0_74] : memref<8x8x1xf32, #tpu.memory_space<vmem>>, vector<1x8x1xf32>
    %192 = vector.shape_cast %191 : vector<1x8x1xf32> to vector<8x1xf32>
    %193 = vector.broadcast %192 : vector<8x1xf32> to vector<8x32xf32>
    %194 = arith.mulf %184, %193 : vector<8x32xf32>
    %c1_i32_75 = arith.constant 1 : i32
    %195 = arith.addi %c1_i32_48, %c1_i32_75 : i32
    %196 = arith.index_cast %195 : i32 to index
    %c0_76 = arith.constant 0 : index
    %c0_77 = arith.constant 0 : index
    %197 = vector.load %arg18[%196, %c0_76, %c0_77] : memref<10x8x64xf32, #tpu.memory_space<vmem>>, vector<1x8x32xf32>
    %198 = vector.shape_cast %197 : vector<1x8x32xf32> to vector<8x32xf32>
    %199 = vector.shape_cast %194 : vector<8x32xf32> to vector<1x8x32xf32>
    tpu.vector_store %arg18[%196, %c0_76, %c0_77], %199 {strides = array<i32>} : memref<10x8x64xf32, #tpu.memory_space<vmem>>, vector<1x8x32xf32>,
    %200 = arith.index_cast %114 : i32 to index
    %c0_78 = arith.constant 0 : index
    %c0_79 = arith.constant 0 : index
    %201 = vector.load %arg2[%200, %c0_78, %c0_79] : memref<8x8x1xf32, #tpu.memory_space<vmem>>, vector<1x8x1xf32>
    %202 = vector.shape_cast %201 : vector<1x8x1xf32> to vector<8x1xf32>
    %203 = vector.broadcast %202 : vector<8x1xf32> to vector<8x32xf32>
    %204 = arith.mulf %189, %203 : vector<8x32xf32>
    %c1_i32_80 = arith.constant 1 : i32
    %205 = arith.addi %114, %c1_i32_80 : i32
    %206 = arith.index_cast %205 : i32 to index
    %c0_81 = arith.constant 0 : index
    %c32_82 = arith.constant 32 : index
    %207 = vector.load %arg18[%206, %c0_81, %c32_82] : memref<10x8x64xf32, #tpu.memory_space<vmem>>, vector<1x8x32xf32>
    %208 = vector.shape_cast %207 : vector<1x8x32xf32> to vector<8x32xf32>
    %209 = vector.shape_cast %204 : vector<8x32xf32> to vector<1x8x32xf32>
    tpu.vector_store %arg18[%206, %c0_81, %c32_82], %209 {strides = array<i32>} : memref<10x8x64xf32, #tpu.memory_space<vmem>>, vector<1x8x32xf32>,
    %c2_i32 = arith.constant 2 : i32
    %c7_i32_83 = arith.constant 7 : i32
    %210 = arith.subi %c7_i32_83, %c2_i32 : i32
    %211 = tpu.concatenate %184, %189 in 1 : vector<8x32xf32>, vector<8x32xf32> -> vector<8x64xf32>
    %212 = arith.truncf %211 : vector<8x64xf32> to vector<8x64xbf16>
    %cst_84 = arith.constant dense<0.000000e+00> : vector<8x256xf32>
    %213 = tpu.matmul %212, %16, %cst_84 {dimension_numbers = #tpu.dot_dimension_numbers<[1], [0], [0], [1], [0, 0, 1, 1], [], []>} : vector<8x64xbf16>, vector<64x256xbf16>, vector<8x256xf32> -> vector<8x256xf32>
    %214 = arith.index_cast %c2_i32 : i32 to index
    %c0_85 = arith.constant 0 : index
    %c0_86 = arith.constant 0 : index
    %215 = vector.load %arg17[%214, %c0_85, %c0_86] : memref<8x8x256xf32, #tpu.memory_space<vmem>>, vector<1x8x128xf32>
    %216 = vector.shape_cast %215 : vector<1x8x128xf32> to vector<8x128xf32>
    %217 = vector.extract_strided_slice %213 {offsets = [0, 0], sizes = [8, 128], strides = [1, 1]} : vector<8x256xf32> to vector<8x128xf32>
    %218 = arith.addf %216, %217 : vector<8x128xf32>
    %219 = arith.index_cast %210 : i32 to index
    %c0_87 = arith.constant 0 : index
    %c128_88 = arith.constant 128 : index
    %220 = vector.load %arg17[%219, %c0_87, %c128_88] : memref<8x8x256xf32, #tpu.memory_space<vmem>>, vector<1x8x128xf32>
    %221 = vector.shape_cast %220 : vector<1x8x128xf32> to vector<8x128xf32>
    %222 = vector.extract_strided_slice %213 {offsets = [0, 128], sizes = [8, 128], strides = [1, 1]} : vector<8x256xf32> to vector<8x128xf32>
    %223 = arith.addf %221, %222 : vector<8x128xf32>
    %224 = vector.extract_strided_slice %218 {offsets = [0, 0], sizes = [8, 32], strides = [1, 1]} : vector<8x128xf32> to vector<8x32xf32>
    %cst_89 = arith.constant 5.000000e-01 : f32
    %225 = vector.broadcast %cst_89 : f32 to vector<8x32xf32>
    %226 = arith.mulf %225, %224 : vector<8x32xf32>
    %227 = math.tanh %226 : vector<8x32xf32>
    %cst_90 = arith.constant 5.000000e-01 : f32
    %228 = vector.broadcast %cst_90 : f32 to vector<8x32xf32>
    %229 = arith.mulf %228, %227 : vector<8x32xf32>
    %cst_91 = arith.constant 5.000000e-01 : f32
    %230 = vector.broadcast %cst_91 : f32 to vector<8x32xf32>
    %231 = arith.addf %229, %230 : vector<8x32xf32>
    %232 = vector.extract_strided_slice %218 {offsets = [0, 32], sizes = [8, 32], strides = [1, 1]} : vector<8x128xf32> to vector<8x32xf32>
    %cst_92 = arith.constant 5.000000e-01 : f32
    %233 = vector.broadcast %cst_92 : f32 to vector<8x32xf32>
    %234 = arith.mulf %233, %232 : vector<8x32xf32>
    %235 = math.tanh %234 : vector<8x32xf32>
    %cst_93 = arith.constant 5.000000e-01 : f32
    %236 = vector.broadcast %cst_93 : f32 to vector<8x32xf32>
    %237 = arith.mulf %236, %235 : vector<8x32xf32>
    %cst_94 = arith.constant 5.000000e-01 : f32
    %238 = vector.broadcast %cst_94 : f32 to vector<8x32xf32>
    %239 = arith.addf %237, %238 : vector<8x32xf32>
    %240 = vector.extract_strided_slice %218 {offsets = [0, 64], sizes = [8, 32], strides = [1, 1]} : vector<8x128xf32> to vector<8x32xf32>
    %241 = math.tanh %240 : vector<8x32xf32>
    %242 = vector.extract_strided_slice %218 {offsets = [0, 96], sizes = [8, 32], strides = [1, 1]} : vector<8x128xf32> to vector<8x32xf32>
    %cst_95 = arith.constant 5.000000e-01 : f32
    %243 = vector.broadcast %cst_95 : f32 to vector<8x32xf32>
    %244 = arith.mulf %243, %242 : vector<8x32xf32>
    %245 = math.tanh %244 : vector<8x32xf32>
    %cst_96 = arith.constant 5.000000e-01 : f32
    %246 = vector.broadcast %cst_96 : f32 to vector<8x32xf32>
    %247 = arith.mulf %246, %245 : vector<8x32xf32>
    %cst_97 = arith.constant 5.000000e-01 : f32
    %248 = vector.broadcast %cst_97 : f32 to vector<8x32xf32>
    %249 = arith.addf %247, %248 : vector<8x32xf32>
    %250 = vector.extract_strided_slice %223 {offsets = [0, 0], sizes = [8, 32], strides = [1, 1]} : vector<8x128xf32> to vector<8x32xf32>
    %cst_98 = arith.constant 5.000000e-01 : f32
    %251 = vector.broadcast %cst_98 : f32 to vector<8x32xf32>
    %252 = arith.mulf %251, %250 : vector<8x32xf32>
    %253 = math.tanh %252 : vector<8x32xf32>
    %cst_99 = arith.constant 5.000000e-01 : f32
    %254 = vector.broadcast %cst_99 : f32 to vector<8x32xf32>
    %255 = arith.mulf %254, %253 : vector<8x32xf32>
    %cst_100 = arith.constant 5.000000e-01 : f32
    %256 = vector.broadcast %cst_100 : f32 to vector<8x32xf32>
    %257 = arith.addf %255, %256 : vector<8x32xf32>
    %258 = vector.extract_strided_slice %223 {offsets = [0, 32], sizes = [8, 32], strides = [1, 1]} : vector<8x128xf32> to vector<8x32xf32>
    %cst_101 = arith.constant 5.000000e-01 : f32
    %259 = vector.broadcast %cst_101 : f32 to vector<8x32xf32>
    %260 = arith.mulf %259, %258 : vector<8x32xf32>
    %261 = math.tanh %260 : vector<8x32xf32>
    %cst_102 = arith.constant 5.000000e-01 : f32
    %262 = vector.broadcast %cst_102 : f32 to vector<8x32xf32>
    %263 = arith.mulf %262, %261 : vector<8x32xf32>
    %cst_103 = arith.constant 5.000000e-01 : f32
    %264 = vector.broadcast %cst_103 : f32 to vector<8x32xf32>
    %265 = arith.addf %263, %264 : vector<8x32xf32>
    %266 = vector.extract_strided_slice %223 {offsets = [0, 64], sizes = [8, 32], strides = [1, 1]} : vector<8x128xf32> to vector<8x32xf32>
    %267 = math.tanh %266 : vector<8x32xf32>
    %268 = vector.extract_strided_slice %223 {offsets = [0, 96], sizes = [8, 32], strides = [1, 1]} : vector<8x128xf32> to vector<8x32xf32>
    %cst_104 = arith.constant 5.000000e-01 : f32
    %269 = vector.broadcast %cst_104 : f32 to vector<8x32xf32>
    %270 = arith.mulf %269, %268 : vector<8x32xf32>
    %271 = math.tanh %270 : vector<8x32xf32>
    %cst_105 = arith.constant 5.000000e-01 : f32
    %272 = vector.broadcast %cst_105 : f32 to vector<8x32xf32>
    %273 = arith.mulf %272, %271 : vector<8x32xf32>
    %cst_106 = arith.constant 5.000000e-01 : f32
    %274 = vector.broadcast %cst_106 : f32 to vector<8x32xf32>
    %275 = arith.addf %273, %274 : vector<8x32xf32>
    %276 = arith.mulf %239, %182 : vector<8x32xf32>
    %277 = arith.mulf %231, %241 : vector<8x32xf32>
    %278 = arith.addf %276, %277 : vector<8x32xf32>
    %279 = math.tanh %278 : vector<8x32xf32>
    %280 = arith.mulf %249, %279 : vector<8x32xf32>
    %281 = arith.mulf %265, %187 : vector<8x32xf32>
    %282 = arith.mulf %257, %267 : vector<8x32xf32>
    %283 = arith.addf %281, %282 : vector<8x32xf32>
    %284 = math.tanh %283 : vector<8x32xf32>
    %285 = arith.mulf %275, %284 : vector<8x32xf32>
    %286 = arith.index_cast %c2_i32 : i32 to index
    %c0_107 = arith.constant 0 : index
    %c0_108 = arith.constant 0 : index
    %287 = vector.load %arg2[%286, %c0_107, %c0_108] : memref<8x8x1xf32, #tpu.memory_space<vmem>>, vector<1x8x1xf32>
    %288 = vector.shape_cast %287 : vector<1x8x1xf32> to vector<8x1xf32>
    %289 = vector.broadcast %288 : vector<8x1xf32> to vector<8x32xf32>
    %290 = arith.mulf %280, %289 : vector<8x32xf32>
    %c1_i32_109 = arith.constant 1 : i32
    %291 = arith.addi %c2_i32, %c1_i32_109 : i32
    %292 = arith.index_cast %291 : i32 to index
    %c0_110 = arith.constant 0 : index
    %c0_111 = arith.constant 0 : index
    %293 = vector.load %arg18[%292, %c0_110, %c0_111] : memref<10x8x64xf32, #tpu.memory_space<vmem>>, vector<1x8x32xf32>
    %294 = vector.shape_cast %293 : vector<1x8x32xf32> to vector<8x32xf32>
    %295 = vector.shape_cast %290 : vector<8x32xf32> to vector<1x8x32xf32>
    tpu.vector_store %arg18[%292, %c0_110, %c0_111], %295 {strides = array<i32>} : memref<10x8x64xf32, #tpu.memory_space<vmem>>, vector<1x8x32xf32>,
    %296 = arith.index_cast %210 : i32 to index
    %c0_112 = arith.constant 0 : index
    %c0_113 = arith.constant 0 : index
    %297 = vector.load %arg2[%296, %c0_112, %c0_113] : memref<8x8x1xf32, #tpu.memory_space<vmem>>, vector<1x8x1xf32>
    %298 = vector.shape_cast %297 : vector<1x8x1xf32> to vector<8x1xf32>
    %299 = vector.broadcast %298 : vector<8x1xf32> to vector<8x32xf32>
    %300 = arith.mulf %285, %299 : vector<8x32xf32>
    %c1_i32_114 = arith.constant 1 : i32
    %301 = arith.addi %210, %c1_i32_114 : i32
    %302 = arith.index_cast %301 : i32 to index
    %c0_115 = arith.constant 0 : index
    %c32_116 = arith.constant 32 : index
    %303 = vector.load %arg18[%302, %c0_115, %c32_116] : memref<10x8x64xf32, #tpu.memory_space<vmem>>, vector<1x8x32xf32>
    %304 = vector.shape_cast %303 : vector<1x8x32xf32> to vector<8x32xf32>
    %305 = vector.shape_cast %300 : vector<8x32xf32> to vector<1x8x32xf32>
    tpu.vector_store %arg18[%302, %c0_115, %c32_116], %305 {strides = array<i32>} : memref<10x8x64xf32, #tpu.memory_space<vmem>>, vector<1x8x32xf32>,
    %c3_i32 = arith.constant 3 : i32
    %c7_i32_117 = arith.constant 7 : i32
    %306 = arith.subi %c7_i32_117, %c3_i32 : i32
    %307 = tpu.concatenate %280, %285 in 1 : vector<8x32xf32>, vector<8x32xf32> -> vector<8x64xf32>
    %308 = arith.truncf %307 : vector<8x64xf32> to vector<8x64xbf16>
    %cst_118 = arith.constant dense<0.000000e+00> : vector<8x256xf32>
    %309 = tpu.matmul %308, %16, %cst_118 {dimension_numbers = #tpu.dot_dimension_numbers<[1], [0], [0], [1], [0, 0, 1, 1], [], []>} : vector<8x64xbf16>, vector<64x256xbf16>, vector<8x256xf32> -> vector<8x256xf32>
    %310 = arith.index_cast %c3_i32 : i32 to index
    %c0_119 = arith.constant 0 : index
    %c0_120 = arith.constant 0 : index
    %311 = vector.load %arg17[%310, %c0_119, %c0_120] : memref<8x8x256xf32, #tpu.memory_space<vmem>>, vector<1x8x128xf32>
    %312 = vector.shape_cast %311 : vector<1x8x128xf32> to vector<8x128xf32>
    %313 = vector.extract_strided_slice %309 {offsets = [0, 0], sizes = [8, 128], strides = [1, 1]} : vector<8x256xf32> to vector<8x128xf32>
    %314 = arith.addf %312, %313 : vector<8x128xf32>
    %315 = arith.index_cast %306 : i32 to index
    %c0_121 = arith.constant 0 : index
    %c128_122 = arith.constant 128 : index
    %316 = vector.load %arg17[%315, %c0_121, %c128_122] : memref<8x8x256xf32, #tpu.memory_space<vmem>>, vector<1x8x128xf32>
    %317 = vector.shape_cast %316 : vector<1x8x128xf32> to vector<8x128xf32>
    %318 = vector.extract_strided_slice %309 {offsets = [0, 128], sizes = [8, 128], strides = [1, 1]} : vector<8x256xf32> to vector<8x128xf32>
    %319 = arith.addf %317, %318 : vector<8x128xf32>
    %320 = vector.extract_strided_slice %314 {offsets = [0, 0], sizes = [8, 32], strides = [1, 1]} : vector<8x128xf32> to vector<8x32xf32>
    %cst_123 = arith.constant 5.000000e-01 : f32
    %321 = vector.broadcast %cst_123 : f32 to vector<8x32xf32>
    %322 = arith.mulf %321, %320 : vector<8x32xf32>
    %323 = math.tanh %322 : vector<8x32xf32>
    %cst_124 = arith.constant 5.000000e-01 : f32
    %324 = vector.broadcast %cst_124 : f32 to vector<8x32xf32>
    %325 = arith.mulf %324, %323 : vector<8x32xf32>
    %cst_125 = arith.constant 5.000000e-01 : f32
    %326 = vector.broadcast %cst_125 : f32 to vector<8x32xf32>
    %327 = arith.addf %325, %326 : vector<8x32xf32>
    %328 = vector.extract_strided_slice %314 {offsets = [0, 32], sizes = [8, 32], strides = [1, 1]} : vector<8x128xf32> to vector<8x32xf32>
    %cst_126 = arith.constant 5.000000e-01 : f32
    %329 = vector.broadcast %cst_126 : f32 to vector<8x32xf32>
    %330 = arith.mulf %329, %328 : vector<8x32xf32>
    %331 = math.tanh %330 : vector<8x32xf32>
    %cst_127 = arith.constant 5.000000e-01 : f32
    %332 = vector.broadcast %cst_127 : f32 to vector<8x32xf32>
    %333 = arith.mulf %332, %331 : vector<8x32xf32>
    %cst_128 = arith.constant 5.000000e-01 : f32
    %334 = vector.broadcast %cst_128 : f32 to vector<8x32xf32>
    %335 = arith.addf %333, %334 : vector<8x32xf32>
    %336 = vector.extract_strided_slice %314 {offsets = [0, 64], sizes = [8, 32], strides = [1, 1]} : vector<8x128xf32> to vector<8x32xf32>
    %337 = math.tanh %336 : vector<8x32xf32>
    %338 = vector.extract_strided_slice %314 {offsets = [0, 96], sizes = [8, 32], strides = [1, 1]} : vector<8x128xf32> to vector<8x32xf32>
    %cst_129 = arith.constant 5.000000e-01 : f32
    %339 = vector.broadcast %cst_129 : f32 to vector<8x32xf32>
    %340 = arith.mulf %339, %338 : vector<8x32xf32>
    %341 = math.tanh %340 : vector<8x32xf32>
    %cst_130 = arith.constant 5.000000e-01 : f32
    %342 = vector.broadcast %cst_130 : f32 to vector<8x32xf32>
    %343 = arith.mulf %342, %341 : vector<8x32xf32>
    %cst_131 = arith.constant 5.000000e-01 : f32
    %344 = vector.broadcast %cst_131 : f32 to vector<8x32xf32>
    %345 = arith.addf %343, %344 : vector<8x32xf32>
    %346 = vector.extract_strided_slice %319 {offsets = [0, 0], sizes = [8, 32], strides = [1, 1]} : vector<8x128xf32> to vector<8x32xf32>
    %cst_132 = arith.constant 5.000000e-01 : f32
    %347 = vector.broadcast %cst_132 : f32 to vector<8x32xf32>
    %348 = arith.mulf %347, %346 : vector<8x32xf32>
    %349 = math.tanh %348 : vector<8x32xf32>
    %cst_133 = arith.constant 5.000000e-01 : f32
    %350 = vector.broadcast %cst_133 : f32 to vector<8x32xf32>
    %351 = arith.mulf %350, %349 : vector<8x32xf32>
    %cst_134 = arith.constant 5.000000e-01 : f32
    %352 = vector.broadcast %cst_134 : f32 to vector<8x32xf32>
    %353 = arith.addf %351, %352 : vector<8x32xf32>
    %354 = vector.extract_strided_slice %319 {offsets = [0, 32], sizes = [8, 32], strides = [1, 1]} : vector<8x128xf32> to vector<8x32xf32>
    %cst_135 = arith.constant 5.000000e-01 : f32
    %355 = vector.broadcast %cst_135 : f32 to vector<8x32xf32>
    %356 = arith.mulf %355, %354 : vector<8x32xf32>
    %357 = math.tanh %356 : vector<8x32xf32>
    %cst_136 = arith.constant 5.000000e-01 : f32
    %358 = vector.broadcast %cst_136 : f32 to vector<8x32xf32>
    %359 = arith.mulf %358, %357 : vector<8x32xf32>
    %cst_137 = arith.constant 5.000000e-01 : f32
    %360 = vector.broadcast %cst_137 : f32 to vector<8x32xf32>
    %361 = arith.addf %359, %360 : vector<8x32xf32>
    %362 = vector.extract_strided_slice %319 {offsets = [0, 64], sizes = [8, 32], strides = [1, 1]} : vector<8x128xf32> to vector<8x32xf32>
    %363 = math.tanh %362 : vector<8x32xf32>
    %364 = vector.extract_strided_slice %319 {offsets = [0, 96], sizes = [8, 32], strides = [1, 1]} : vector<8x128xf32> to vector<8x32xf32>
    %cst_138 = arith.constant 5.000000e-01 : f32
    %365 = vector.broadcast %cst_138 : f32 to vector<8x32xf32>
    %366 = arith.mulf %365, %364 : vector<8x32xf32>
    %367 = math.tanh %366 : vector<8x32xf32>
    %cst_139 = arith.constant 5.000000e-01 : f32
    %368 = vector.broadcast %cst_139 : f32 to vector<8x32xf32>
    %369 = arith.mulf %368, %367 : vector<8x32xf32>
    %cst_140 = arith.constant 5.000000e-01 : f32
    %370 = vector.broadcast %cst_140 : f32 to vector<8x32xf32>
    %371 = arith.addf %369, %370 : vector<8x32xf32>
    %372 = arith.mulf %335, %278 : vector<8x32xf32>
    %373 = arith.mulf %327, %337 : vector<8x32xf32>
    %374 = arith.addf %372, %373 : vector<8x32xf32>
    %375 = math.tanh %374 : vector<8x32xf32>
    %376 = arith.mulf %345, %375 : vector<8x32xf32>
    %377 = arith.mulf %361, %283 : vector<8x32xf32>
    %378 = arith.mulf %353, %363 : vector<8x32xf32>
    %379 = arith.addf %377, %378 : vector<8x32xf32>
    %380 = math.tanh %379 : vector<8x32xf32>
    %381 = arith.mulf %371, %380 : vector<8x32xf32>
    %382 = arith.index_cast %c3_i32 : i32 to index
    %c0_141 = arith.constant 0 : index
    %c0_142 = arith.constant 0 : index
    %383 = vector.load %arg2[%382, %c0_141, %c0_142] : memref<8x8x1xf32, #tpu.memory_space<vmem>>, vector<1x8x1xf32>
    %384 = vector.shape_cast %383 : vector<1x8x1xf32> to vector<8x1xf32>
    %385 = vector.broadcast %384 : vector<8x1xf32> to vector<8x32xf32>
    %386 = arith.mulf %376, %385 : vector<8x32xf32>
    %c1_i32_143 = arith.constant 1 : i32
    %387 = arith.addi %c3_i32, %c1_i32_143 : i32
    %388 = arith.index_cast %387 : i32 to index
    %c0_144 = arith.constant 0 : index
    %c0_145 = arith.constant 0 : index
    %389 = vector.load %arg18[%388, %c0_144, %c0_145] : memref<10x8x64xf32, #tpu.memory_space<vmem>>, vector<1x8x32xf32>
    %390 = vector.shape_cast %389 : vector<1x8x32xf32> to vector<8x32xf32>
    %391 = vector.shape_cast %386 : vector<8x32xf32> to vector<1x8x32xf32>
    tpu.vector_store %arg18[%388, %c0_144, %c0_145], %391 {strides = array<i32>} : memref<10x8x64xf32, #tpu.memory_space<vmem>>, vector<1x8x32xf32>,
    %392 = arith.index_cast %306 : i32 to index
    %c0_146 = arith.constant 0 : index
    %c0_147 = arith.constant 0 : index
    %393 = vector.load %arg2[%392, %c0_146, %c0_147] : memref<8x8x1xf32, #tpu.memory_space<vmem>>, vector<1x8x1xf32>
    %394 = vector.shape_cast %393 : vector<1x8x1xf32> to vector<8x1xf32>
    %395 = vector.broadcast %394 : vector<8x1xf32> to vector<8x32xf32>
    %396 = arith.mulf %381, %395 : vector<8x32xf32>
    %c1_i32_148 = arith.constant 1 : i32
    %397 = arith.addi %306, %c1_i32_148 : i32
    %398 = arith.index_cast %397 : i32 to index
    %c0_149 = arith.constant 0 : index
    %c32_150 = arith.constant 32 : index
    %399 = vector.load %arg18[%398, %c0_149, %c32_150] : memref<10x8x64xf32, #tpu.memory_space<vmem>>, vector<1x8x32xf32>
    %400 = vector.shape_cast %399 : vector<1x8x32xf32> to vector<8x32xf32>
    %401 = vector.shape_cast %396 : vector<8x32xf32> to vector<1x8x32xf32>
    tpu.vector_store %arg18[%398, %c0_149, %c32_150], %401 {strides = array<i32>} : memref<10x8x64xf32, #tpu.memory_space<vmem>>, vector<1x8x32xf32>,
    %c4_i32 = arith.constant 4 : i32
    %c7_i32_151 = arith.constant 7 : i32
    %402 = arith.subi %c7_i32_151, %c4_i32 : i32
    %403 = tpu.concatenate %376, %381 in 1 : vector<8x32xf32>, vector<8x32xf32> -> vector<8x64xf32>
    %404 = arith.truncf %403 : vector<8x64xf32> to vector<8x64xbf16>
    %cst_152 = arith.constant dense<0.000000e+00> : vector<8x256xf32>
    %405 = tpu.matmul %404, %16, %cst_152 {dimension_numbers = #tpu.dot_dimension_numbers<[1], [0], [0], [1], [0, 0, 1, 1], [], []>} : vector<8x64xbf16>, vector<64x256xbf16>, vector<8x256xf32> -> vector<8x256xf32>
    %406 = arith.index_cast %c4_i32 : i32 to index
    %c0_153 = arith.constant 0 : index
    %c0_154 = arith.constant 0 : index
    %407 = vector.load %arg17[%406, %c0_153, %c0_154] : memref<8x8x256xf32, #tpu.memory_space<vmem>>, vector<1x8x128xf32>
    %408 = vector.shape_cast %407 : vector<1x8x128xf32> to vector<8x128xf32>
    %409 = vector.extract_strided_slice %405 {offsets = [0, 0], sizes = [8, 128], strides = [1, 1]} : vector<8x256xf32> to vector<8x128xf32>
    %410 = arith.addf %408, %409 : vector<8x128xf32>
    %411 = arith.index_cast %402 : i32 to index
    %c0_155 = arith.constant 0 : index
    %c128_156 = arith.constant 128 : index
    %412 = vector.load %arg17[%411, %c0_155, %c128_156] : memref<8x8x256xf32, #tpu.memory_space<vmem>>, vector<1x8x128xf32>
    %413 = vector.shape_cast %412 : vector<1x8x128xf32> to vector<8x128xf32>
    %414 = vector.extract_strided_slice %405 {offsets = [0, 128], sizes = [8, 128], strides = [1, 1]} : vector<8x256xf32> to vector<8x128xf32>
    %415 = arith.addf %413, %414 : vector<8x128xf32>
    %416 = vector.extract_strided_slice %410 {offsets = [0, 0], sizes = [8, 32], strides = [1, 1]} : vector<8x128xf32> to vector<8x32xf32>
    %cst_157 = arith.constant 5.000000e-01 : f32
    %417 = vector.broadcast %cst_157 : f32 to vector<8x32xf32>
    %418 = arith.mulf %417, %416 : vector<8x32xf32>
    %419 = math.tanh %418 : vector<8x32xf32>
    %cst_158 = arith.constant 5.000000e-01 : f32
    %420 = vector.broadcast %cst_158 : f32 to vector<8x32xf32>
    %421 = arith.mulf %420, %419 : vector<8x32xf32>
    %cst_159 = arith.constant 5.000000e-01 : f32
    %422 = vector.broadcast %cst_159 : f32 to vector<8x32xf32>
    %423 = arith.addf %421, %422 : vector<8x32xf32>
    %424 = vector.extract_strided_slice %410 {offsets = [0, 32], sizes = [8, 32], strides = [1, 1]} : vector<8x128xf32> to vector<8x32xf32>
    %cst_160 = arith.constant 5.000000e-01 : f32
    %425 = vector.broadcast %cst_160 : f32 to vector<8x32xf32>
    %426 = arith.mulf %425, %424 : vector<8x32xf32>
    %427 = math.tanh %426 : vector<8x32xf32>
    %cst_161 = arith.constant 5.000000e-01 : f32
    %428 = vector.broadcast %cst_161 : f32 to vector<8x32xf32>
    %429 = arith.mulf %428, %427 : vector<8x32xf32>
    %cst_162 = arith.constant 5.000000e-01 : f32
    %430 = vector.broadcast %cst_162 : f32 to vector<8x32xf32>
    %431 = arith.addf %429, %430 : vector<8x32xf32>
    %432 = vector.extract_strided_slice %410 {offsets = [0, 64], sizes = [8, 32], strides = [1, 1]} : vector<8x128xf32> to vector<8x32xf32>
    %433 = math.tanh %432 : vector<8x32xf32>
    %434 = vector.extract_strided_slice %410 {offsets = [0, 96], sizes = [8, 32], strides = [1, 1]} : vector<8x128xf32> to vector<8x32xf32>
    %cst_163 = arith.constant 5.000000e-01 : f32
    %435 = vector.broadcast %cst_163 : f32 to vector<8x32xf32>
    %436 = arith.mulf %435, %434 : vector<8x32xf32>
    %437 = math.tanh %436 : vector<8x32xf32>
    %cst_164 = arith.constant 5.000000e-01 : f32
    %438 = vector.broadcast %cst_164 : f32 to vector<8x32xf32>
    %439 = arith.mulf %438, %437 : vector<8x32xf32>
    %cst_165 = arith.constant 5.000000e-01 : f32
    %440 = vector.broadcast %cst_165 : f32 to vector<8x32xf32>
    %441 = arith.addf %439, %440 : vector<8x32xf32>
    %442 = vector.extract_strided_slice %415 {offsets = [0, 0], sizes = [8, 32], strides = [1, 1]} : vector<8x128xf32> to vector<8x32xf32>
    %cst_166 = arith.constant 5.000000e-01 : f32
    %443 = vector.broadcast %cst_166 : f32 to vector<8x32xf32>
    %444 = arith.mulf %443, %442 : vector<8x32xf32>
    %445 = math.tanh %444 : vector<8x32xf32>
    %cst_167 = arith.constant 5.000000e-01 : f32
    %446 = vector.broadcast %cst_167 : f32 to vector<8x32xf32>
    %447 = arith.mulf %446, %445 : vector<8x32xf32>
    %cst_168 = arith.constant 5.000000e-01 : f32
    %448 = vector.broadcast %cst_168 : f32 to vector<8x32xf32>
    %449 = arith.addf %447, %448 : vector<8x32xf32>
    %450 = vector.extract_strided_slice %415 {offsets = [0, 32], sizes = [8, 32], strides = [1, 1]} : vector<8x128xf32> to vector<8x32xf32>
    %cst_169 = arith.constant 5.000000e-01 : f32
    %451 = vector.broadcast %cst_169 : f32 to vector<8x32xf32>
    %452 = arith.mulf %451, %450 : vector<8x32xf32>
    %453 = math.tanh %452 : vector<8x32xf32>
    %cst_170 = arith.constant 5.000000e-01 : f32
    %454 = vector.broadcast %cst_170 : f32 to vector<8x32xf32>
    %455 = arith.mulf %454, %453 : vector<8x32xf32>
    %cst_171 = arith.constant 5.000000e-01 : f32
    %456 = vector.broadcast %cst_171 : f32 to vector<8x32xf32>
    %457 = arith.addf %455, %456 : vector<8x32xf32>
    %458 = vector.extract_strided_slice %415 {offsets = [0, 64], sizes = [8, 32], strides = [1, 1]} : vector<8x128xf32> to vector<8x32xf32>
    %459 = math.tanh %458 : vector<8x32xf32>
    %460 = vector.extract_strided_slice %415 {offsets = [0, 96], sizes = [8, 32], strides = [1, 1]} : vector<8x128xf32> to vector<8x32xf32>
    %cst_172 = arith.constant 5.000000e-01 : f32
    %461 = vector.broadcast %cst_172 : f32 to vector<8x32xf32>
    %462 = arith.mulf %461, %460 : vector<8x32xf32>
    %463 = math.tanh %462 : vector<8x32xf32>
    %cst_173 = arith.constant 5.000000e-01 : f32
    %464 = vector.broadcast %cst_173 : f32 to vector<8x32xf32>
    %465 = arith.mulf %464, %463 : vector<8x32xf32>
    %cst_174 = arith.constant 5.000000e-01 : f32
    %466 = vector.broadcast %cst_174 : f32 to vector<8x32xf32>
    %467 = arith.addf %465, %466 : vector<8x32xf32>
    %468 = arith.mulf %431, %374 : vector<8x32xf32>
    %469 = arith.mulf %423, %433 : vector<8x32xf32>
    %470 = arith.addf %468, %469 : vector<8x32xf32>
    %471 = math.tanh %470 : vector<8x32xf32>
    %472 = arith.mulf %441, %471 : vector<8x32xf32>
    %473 = arith.mulf %457, %379 : vector<8x32xf32>
    %474 = arith.mulf %449, %459 : vector<8x32xf32>
    %475 = arith.addf %473, %474 : vector<8x32xf32>
    %476 = math.tanh %475 : vector<8x32xf32>
    %477 = arith.mulf %467, %476 : vector<8x32xf32>
    %478 = arith.index_cast %c4_i32 : i32 to index
    %c0_175 = arith.constant 0 : index
    %c0_176 = arith.constant 0 : index
    %479 = vector.load %arg2[%478, %c0_175, %c0_176] : memref<8x8x1xf32, #tpu.memory_space<vmem>>, vector<1x8x1xf32>
    %480 = vector.shape_cast %479 : vector<1x8x1xf32> to vector<8x1xf32>
    %481 = vector.broadcast %480 : vector<8x1xf32> to vector<8x32xf32>
    %482 = arith.mulf %472, %481 : vector<8x32xf32>
    %c1_i32_177 = arith.constant 1 : i32
    %483 = arith.addi %c4_i32, %c1_i32_177 : i32
    %484 = arith.index_cast %483 : i32 to index
    %c0_178 = arith.constant 0 : index
    %c0_179 = arith.constant 0 : index
    %485 = vector.load %arg18[%484, %c0_178, %c0_179] : memref<10x8x64xf32, #tpu.memory_space<vmem>>, vector<1x8x32xf32>
    %486 = vector.shape_cast %485 : vector<1x8x32xf32> to vector<8x32xf32>
    %487 = vector.shape_cast %482 : vector<8x32xf32> to vector<1x8x32xf32>
    tpu.vector_store %arg18[%484, %c0_178, %c0_179], %487 {strides = array<i32>} : memref<10x8x64xf32, #tpu.memory_space<vmem>>, vector<1x8x32xf32>,
    %488 = arith.index_cast %402 : i32 to index
    %c0_180 = arith.constant 0 : index
    %c0_181 = arith.constant 0 : index
    %489 = vector.load %arg2[%488, %c0_180, %c0_181] : memref<8x8x1xf32, #tpu.memory_space<vmem>>, vector<1x8x1xf32>
    %490 = vector.shape_cast %489 : vector<1x8x1xf32> to vector<8x1xf32>
    %491 = vector.broadcast %490 : vector<8x1xf32> to vector<8x32xf32>
    %492 = arith.mulf %477, %491 : vector<8x32xf32>
    %c1_i32_182 = arith.constant 1 : i32
    %493 = arith.addi %402, %c1_i32_182 : i32
    %494 = arith.index_cast %493 : i32 to index
    %c0_183 = arith.constant 0 : index
    %c32_184 = arith.constant 32 : index
    %495 = vector.load %arg18[%494, %c0_183, %c32_184] : memref<10x8x64xf32, #tpu.memory_space<vmem>>, vector<1x8x32xf32>
    %496 = vector.shape_cast %495 : vector<1x8x32xf32> to vector<8x32xf32>
    %497 = vector.shape_cast %492 : vector<8x32xf32> to vector<1x8x32xf32>
    tpu.vector_store %arg18[%494, %c0_183, %c32_184], %497 {strides = array<i32>} : memref<10x8x64xf32, #tpu.memory_space<vmem>>, vector<1x8x32xf32>,
    %c5_i32 = arith.constant 5 : i32
    %c7_i32_185 = arith.constant 7 : i32
    %498 = arith.subi %c7_i32_185, %c5_i32 : i32
    %499 = tpu.concatenate %472, %477 in 1 : vector<8x32xf32>, vector<8x32xf32> -> vector<8x64xf32>
    %500 = arith.truncf %499 : vector<8x64xf32> to vector<8x64xbf16>
    %cst_186 = arith.constant dense<0.000000e+00> : vector<8x256xf32>
    %501 = tpu.matmul %500, %16, %cst_186 {dimension_numbers = #tpu.dot_dimension_numbers<[1], [0], [0], [1], [0, 0, 1, 1], [], []>} : vector<8x64xbf16>, vector<64x256xbf16>, vector<8x256xf32> -> vector<8x256xf32>
    %502 = arith.index_cast %c5_i32 : i32 to index
    %c0_187 = arith.constant 0 : index
    %c0_188 = arith.constant 0 : index
    %503 = vector.load %arg17[%502, %c0_187, %c0_188] : memref<8x8x256xf32, #tpu.memory_space<vmem>>, vector<1x8x128xf32>
    %504 = vector.shape_cast %503 : vector<1x8x128xf32> to vector<8x128xf32>
    %505 = vector.extract_strided_slice %501 {offsets = [0, 0], sizes = [8, 128], strides = [1, 1]} : vector<8x256xf32> to vector<8x128xf32>
    %506 = arith.addf %504, %505 : vector<8x128xf32>
    %507 = arith.index_cast %498 : i32 to index
    %c0_189 = arith.constant 0 : index
    %c128_190 = arith.constant 128 : index
    %508 = vector.load %arg17[%507, %c0_189, %c128_190] : memref<8x8x256xf32, #tpu.memory_space<vmem>>, vector<1x8x128xf32>
    %509 = vector.shape_cast %508 : vector<1x8x128xf32> to vector<8x128xf32>
    %510 = vector.extract_strided_slice %501 {offsets = [0, 128], sizes = [8, 128], strides = [1, 1]} : vector<8x256xf32> to vector<8x128xf32>
    %511 = arith.addf %509, %510 : vector<8x128xf32>
    %512 = vector.extract_strided_slice %506 {offsets = [0, 0], sizes = [8, 32], strides = [1, 1]} : vector<8x128xf32> to vector<8x32xf32>
    %cst_191 = arith.constant 5.000000e-01 : f32
    %513 = vector.broadcast %cst_191 : f32 to vector<8x32xf32>
    %514 = arith.mulf %513, %512 : vector<8x32xf32>
    %515 = math.tanh %514 : vector<8x32xf32>
    %cst_192 = arith.constant 5.000000e-01 : f32
    %516 = vector.broadcast %cst_192 : f32 to vector<8x32xf32>
    %517 = arith.mulf %516, %515 : vector<8x32xf32>
    %cst_193 = arith.constant 5.000000e-01 : f32
    %518 = vector.broadcast %cst_193 : f32 to vector<8x32xf32>
    %519 = arith.addf %517, %518 : vector<8x32xf32>
    %520 = vector.extract_strided_slice %506 {offsets = [0, 32], sizes = [8, 32], strides = [1, 1]} : vector<8x128xf32> to vector<8x32xf32>
    %cst_194 = arith.constant 5.000000e-01 : f32
    %521 = vector.broadcast %cst_194 : f32 to vector<8x32xf32>
    %522 = arith.mulf %521, %520 : vector<8x32xf32>
    %523 = math.tanh %522 : vector<8x32xf32>
    %cst_195 = arith.constant 5.000000e-01 : f32
    %524 = vector.broadcast %cst_195 : f32 to vector<8x32xf32>
    %525 = arith.mulf %524, %523 : vector<8x32xf32>
    %cst_196 = arith.constant 5.000000e-01 : f32
    %526 = vector.broadcast %cst_196 : f32 to vector<8x32xf32>
    %527 = arith.addf %525, %526 : vector<8x32xf32>
    %528 = vector.extract_strided_slice %506 {offsets = [0, 64], sizes = [8, 32], strides = [1, 1]} : vector<8x128xf32> to vector<8x32xf32>
    %529 = math.tanh %528 : vector<8x32xf32>
    %530 = vector.extract_strided_slice %506 {offsets = [0, 96], sizes = [8, 32], strides = [1, 1]} : vector<8x128xf32> to vector<8x32xf32>
    %cst_197 = arith.constant 5.000000e-01 : f32
    %531 = vector.broadcast %cst_197 : f32 to vector<8x32xf32>
    %532 = arith.mulf %531, %530 : vector<8x32xf32>
    %533 = math.tanh %532 : vector<8x32xf32>
    %cst_198 = arith.constant 5.000000e-01 : f32
    %534 = vector.broadcast %cst_198 : f32 to vector<8x32xf32>
    %535 = arith.mulf %534, %533 : vector<8x32xf32>
    %cst_199 = arith.constant 5.000000e-01 : f32
    %536 = vector.broadcast %cst_199 : f32 to vector<8x32xf32>
    %537 = arith.addf %535, %536 : vector<8x32xf32>
    %538 = vector.extract_strided_slice %511 {offsets = [0, 0], sizes = [8, 32], strides = [1, 1]} : vector<8x128xf32> to vector<8x32xf32>
    %cst_200 = arith.constant 5.000000e-01 : f32
    %539 = vector.broadcast %cst_200 : f32 to vector<8x32xf32>
    %540 = arith.mulf %539, %538 : vector<8x32xf32>
    %541 = math.tanh %540 : vector<8x32xf32>
    %cst_201 = arith.constant 5.000000e-01 : f32
    %542 = vector.broadcast %cst_201 : f32 to vector<8x32xf32>
    %543 = arith.mulf %542, %541 : vector<8x32xf32>
    %cst_202 = arith.constant 5.000000e-01 : f32
    %544 = vector.broadcast %cst_202 : f32 to vector<8x32xf32>
    %545 = arith.addf %543, %544 : vector<8x32xf32>
    %546 = vector.extract_strided_slice %511 {offsets = [0, 32], sizes = [8, 32], strides = [1, 1]} : vector<8x128xf32> to vector<8x32xf32>
    %cst_203 = arith.constant 5.000000e-01 : f32
    %547 = vector.broadcast %cst_203 : f32 to vector<8x32xf32>
    %548 = arith.mulf %547, %546 : vector<8x32xf32>
    %549 = math.tanh %548 : vector<8x32xf32>
    %cst_204 = arith.constant 5.000000e-01 : f32
    %550 = vector.broadcast %cst_204 : f32 to vector<8x32xf32>
    %551 = arith.mulf %550, %549 : vector<8x32xf32>
    %cst_205 = arith.constant 5.000000e-01 : f32
    %552 = vector.broadcast %cst_205 : f32 to vector<8x32xf32>
    %553 = arith.addf %551, %552 : vector<8x32xf32>
    %554 = vector.extract_strided_slice %511 {offsets = [0, 64], sizes = [8, 32], strides = [1, 1]} : vector<8x128xf32> to vector<8x32xf32>
    %555 = math.tanh %554 : vector<8x32xf32>
    %556 = vector.extract_strided_slice %511 {offsets = [0, 96], sizes = [8, 32], strides = [1, 1]} : vector<8x128xf32> to vector<8x32xf32>
    %cst_206 = arith.constant 5.000000e-01 : f32
    %557 = vector.broadcast %cst_206 : f32 to vector<8x32xf32>
    %558 = arith.mulf %557, %556 : vector<8x32xf32>
    %559 = math.tanh %558 : vector<8x32xf32>
    %cst_207 = arith.constant 5.000000e-01 : f32
    %560 = vector.broadcast %cst_207 : f32 to vector<8x32xf32>
    %561 = arith.mulf %560, %559 : vector<8x32xf32>
    %cst_208 = arith.constant 5.000000e-01 : f32
    %562 = vector.broadcast %cst_208 : f32 to vector<8x32xf32>
    %563 = arith.addf %561, %562 : vector<8x32xf32>
    %564 = arith.mulf %527, %470 : vector<8x32xf32>
    %565 = arith.mulf %519, %529 : vector<8x32xf32>
    %566 = arith.addf %564, %565 : vector<8x32xf32>
    %567 = math.tanh %566 : vector<8x32xf32>
    %568 = arith.mulf %537, %567 : vector<8x32xf32>
    %569 = arith.mulf %553, %475 : vector<8x32xf32>
    %570 = arith.mulf %545, %555 : vector<8x32xf32>
    %571 = arith.addf %569, %570 : vector<8x32xf32>
    %572 = math.tanh %571 : vector<8x32xf32>
    %573 = arith.mulf %563, %572 : vector<8x32xf32>
    %574 = arith.index_cast %c5_i32 : i32 to index
    %c0_209 = arith.constant 0 : index
    %c0_210 = arith.constant 0 : index
    %575 = vector.load %arg2[%574, %c0_209, %c0_210] : memref<8x8x1xf32, #tpu.memory_space<vmem>>, vector<1x8x1xf32>
    %576 = vector.shape_cast %575 : vector<1x8x1xf32> to vector<8x1xf32>
    %577 = vector.broadcast %576 : vector<8x1xf32> to vector<8x32xf32>
    %578 = arith.mulf %568, %577 : vector<8x32xf32>
    %c1_i32_211 = arith.constant 1 : i32
    %579 = arith.addi %c5_i32, %c1_i32_211 : i32
    %580 = arith.index_cast %579 : i32 to index
    %c0_212 = arith.constant 0 : index
    %c0_213 = arith.constant 0 : index
    %581 = vector.load %arg18[%580, %c0_212, %c0_213] : memref<10x8x64xf32, #tpu.memory_space<vmem>>, vector<1x8x32xf32>
    %582 = vector.shape_cast %581 : vector<1x8x32xf32> to vector<8x32xf32>
    %583 = vector.shape_cast %578 : vector<8x32xf32> to vector<1x8x32xf32>
    tpu.vector_store %arg18[%580, %c0_212, %c0_213], %583 {strides = array<i32>} : memref<10x8x64xf32, #tpu.memory_space<vmem>>, vector<1x8x32xf32>,
    %584 = arith.index_cast %498 : i32 to index
    %c0_214 = arith.constant 0 : index
    %c0_215 = arith.constant 0 : index
    %585 = vector.load %arg2[%584, %c0_214, %c0_215] : memref<8x8x1xf32, #tpu.memory_space<vmem>>, vector<1x8x1xf32>
    %586 = vector.shape_cast %585 : vector<1x8x1xf32> to vector<8x1xf32>
    %587 = vector.broadcast %586 : vector<8x1xf32> to vector<8x32xf32>
    %588 = arith.mulf %573, %587 : vector<8x32xf32>
    %c1_i32_216 = arith.constant 1 : i32
    %589 = arith.addi %498, %c1_i32_216 : i32
    %590 = arith.index_cast %589 : i32 to index
    %c0_217 = arith.constant 0 : index
    %c32_218 = arith.constant 32 : index
    %591 = vector.load %arg18[%590, %c0_217, %c32_218] : memref<10x8x64xf32, #tpu.memory_space<vmem>>, vector<1x8x32xf32>
    %592 = vector.shape_cast %591 : vector<1x8x32xf32> to vector<8x32xf32>
    %593 = vector.shape_cast %588 : vector<8x32xf32> to vector<1x8x32xf32>
    tpu.vector_store %arg18[%590, %c0_217, %c32_218], %593 {strides = array<i32>} : memref<10x8x64xf32, #tpu.memory_space<vmem>>, vector<1x8x32xf32>,
    %c6_i32 = arith.constant 6 : i32
    %c7_i32_219 = arith.constant 7 : i32
    %594 = arith.subi %c7_i32_219, %c6_i32 : i32
    %595 = tpu.concatenate %568, %573 in 1 : vector<8x32xf32>, vector<8x32xf32> -> vector<8x64xf32>
    %596 = arith.truncf %595 : vector<8x64xf32> to vector<8x64xbf16>
    %cst_220 = arith.constant dense<0.000000e+00> : vector<8x256xf32>
    %597 = tpu.matmul %596, %16, %cst_220 {dimension_numbers = #tpu.dot_dimension_numbers<[1], [0], [0], [1], [0, 0, 1, 1], [], []>} : vector<8x64xbf16>, vector<64x256xbf16>, vector<8x256xf32> -> vector<8x256xf32>
    %598 = arith.index_cast %c6_i32 : i32 to index
    %c0_221 = arith.constant 0 : index
    %c0_222 = arith.constant 0 : index
    %599 = vector.load %arg17[%598, %c0_221, %c0_222] : memref<8x8x256xf32, #tpu.memory_space<vmem>>, vector<1x8x128xf32>
    %600 = vector.shape_cast %599 : vector<1x8x128xf32> to vector<8x128xf32>
    %601 = vector.extract_strided_slice %597 {offsets = [0, 0], sizes = [8, 128], strides = [1, 1]} : vector<8x256xf32> to vector<8x128xf32>
    %602 = arith.addf %600, %601 : vector<8x128xf32>
    %603 = arith.index_cast %594 : i32 to index
    %c0_223 = arith.constant 0 : index
    %c128_224 = arith.constant 128 : index
    %604 = vector.load %arg17[%603, %c0_223, %c128_224] : memref<8x8x256xf32, #tpu.memory_space<vmem>>, vector<1x8x128xf32>
    %605 = vector.shape_cast %604 : vector<1x8x128xf32> to vector<8x128xf32>
    %606 = vector.extract_strided_slice %597 {offsets = [0, 128], sizes = [8, 128], strides = [1, 1]} : vector<8x256xf32> to vector<8x128xf32>
    %607 = arith.addf %605, %606 : vector<8x128xf32>
    %608 = vector.extract_strided_slice %602 {offsets = [0, 0], sizes = [8, 32], strides = [1, 1]} : vector<8x128xf32> to vector<8x32xf32>
    %cst_225 = arith.constant 5.000000e-01 : f32
    %609 = vector.broadcast %cst_225 : f32 to vector<8x32xf32>
    %610 = arith.mulf %609, %608 : vector<8x32xf32>
    %611 = math.tanh %610 : vector<8x32xf32>
    %cst_226 = arith.constant 5.000000e-01 : f32
    %612 = vector.broadcast %cst_226 : f32 to vector<8x32xf32>
    %613 = arith.mulf %612, %611 : vector<8x32xf32>
    %cst_227 = arith.constant 5.000000e-01 : f32
    %614 = vector.broadcast %cst_227 : f32 to vector<8x32xf32>
    %615 = arith.addf %613, %614 : vector<8x32xf32>
    %616 = vector.extract_strided_slice %602 {offsets = [0, 32], sizes = [8, 32], strides = [1, 1]} : vector<8x128xf32> to vector<8x32xf32>
    %cst_228 = arith.constant 5.000000e-01 : f32
    %617 = vector.broadcast %cst_228 : f32 to vector<8x32xf32>
    %618 = arith.mulf %617, %616 : vector<8x32xf32>
    %619 = math.tanh %618 : vector<8x32xf32>
    %cst_229 = arith.constant 5.000000e-01 : f32
    %620 = vector.broadcast %cst_229 : f32 to vector<8x32xf32>
    %621 = arith.mulf %620, %619 : vector<8x32xf32>
    %cst_230 = arith.constant 5.000000e-01 : f32
    %622 = vector.broadcast %cst_230 : f32 to vector<8x32xf32>
    %623 = arith.addf %621, %622 : vector<8x32xf32>
    %624 = vector.extract_strided_slice %602 {offsets = [0, 64], sizes = [8, 32], strides = [1, 1]} : vector<8x128xf32> to vector<8x32xf32>
    %625 = math.tanh %624 : vector<8x32xf32>
    %626 = vector.extract_strided_slice %602 {offsets = [0, 96], sizes = [8, 32], strides = [1, 1]} : vector<8x128xf32> to vector<8x32xf32>
    %cst_231 = arith.constant 5.000000e-01 : f32
    %627 = vector.broadcast %cst_231 : f32 to vector<8x32xf32>
    %628 = arith.mulf %627, %626 : vector<8x32xf32>
    %629 = math.tanh %628 : vector<8x32xf32>
    %cst_232 = arith.constant 5.000000e-01 : f32
    %630 = vector.broadcast %cst_232 : f32 to vector<8x32xf32>
    %631 = arith.mulf %630, %629 : vector<8x32xf32>
    %cst_233 = arith.constant 5.000000e-01 : f32
    %632 = vector.broadcast %cst_233 : f32 to vector<8x32xf32>
    %633 = arith.addf %631, %632 : vector<8x32xf32>
    %634 = vector.extract_strided_slice %607 {offsets = [0, 0], sizes = [8, 32], strides = [1, 1]} : vector<8x128xf32> to vector<8x32xf32>
    %cst_234 = arith.constant 5.000000e-01 : f32
    %635 = vector.broadcast %cst_234 : f32 to vector<8x32xf32>
    %636 = arith.mulf %635, %634 : vector<8x32xf32>
    %637 = math.tanh %636 : vector<8x32xf32>
    %cst_235 = arith.constant 5.000000e-01 : f32
    %638 = vector.broadcast %cst_235 : f32 to vector<8x32xf32>
    %639 = arith.mulf %638, %637 : vector<8x32xf32>
    %cst_236 = arith.constant 5.000000e-01 : f32
    %640 = vector.broadcast %cst_236 : f32 to vector<8x32xf32>
    %641 = arith.addf %639, %640 : vector<8x32xf32>
    %642 = vector.extract_strided_slice %607 {offsets = [0, 32], sizes = [8, 32], strides = [1, 1]} : vector<8x128xf32> to vector<8x32xf32>
    %cst_237 = arith.constant 5.000000e-01 : f32
    %643 = vector.broadcast %cst_237 : f32 to vector<8x32xf32>
    %644 = arith.mulf %643, %642 : vector<8x32xf32>
    %645 = math.tanh %644 : vector<8x32xf32>
    %cst_238 = arith.constant 5.000000e-01 : f32
    %646 = vector.broadcast %cst_238 : f32 to vector<8x32xf32>
    %647 = arith.mulf %646, %645 : vector<8x32xf32>
    %cst_239 = arith.constant 5.000000e-01 : f32
    %648 = vector.broadcast %cst_239 : f32 to vector<8x32xf32>
    %649 = arith.addf %647, %648 : vector<8x32xf32>
    %650 = vector.extract_strided_slice %607 {offsets = [0, 64], sizes = [8, 32], strides = [1, 1]} : vector<8x128xf32> to vector<8x32xf32>
    %651 = math.tanh %650 : vector<8x32xf32>
    %652 = vector.extract_strided_slice %607 {offsets = [0, 96], sizes = [8, 32], strides = [1, 1]} : vector<8x128xf32> to vector<8x32xf32>
    %cst_240 = arith.constant 5.000000e-01 : f32
    %653 = vector.broadcast %cst_240 : f32 to vector<8x32xf32>
    %654 = arith.mulf %653, %652 : vector<8x32xf32>
    %655 = math.tanh %654 : vector<8x32xf32>
    %cst_241 = arith.constant 5.000000e-01 : f32
    %656 = vector.broadcast %cst_241 : f32 to vector<8x32xf32>
    %657 = arith.mulf %656, %655 : vector<8x32xf32>
    %cst_242 = arith.constant 5.000000e-01 : f32
    %658 = vector.broadcast %cst_242 : f32 to vector<8x32xf32>
    %659 = arith.addf %657, %658 : vector<8x32xf32>
    %660 = arith.mulf %623, %566 : vector<8x32xf32>
    %661 = arith.mulf %615, %625 : vector<8x32xf32>
    %662 = arith.addf %660, %661 : vector<8x32xf32>
    %663 = math.tanh %662 : vector<8x32xf32>
    %664 = arith.mulf %633, %663 : vector<8x32xf32>
    %665 = arith.mulf %649, %571 : vector<8x32xf32>
    %666 = arith.mulf %641, %651 : vector<8x32xf32>
    %667 = arith.addf %665, %666 : vector<8x32xf32>
    %668 = math.tanh %667 : vector<8x32xf32>
    %669 = arith.mulf %659, %668 : vector<8x32xf32>
    %670 = arith.index_cast %c6_i32 : i32 to index
    %c0_243 = arith.constant 0 : index
    %c0_244 = arith.constant 0 : index
    %671 = vector.load %arg2[%670, %c0_243, %c0_244] : memref<8x8x1xf32, #tpu.memory_space<vmem>>, vector<1x8x1xf32>
    %672 = vector.shape_cast %671 : vector<1x8x1xf32> to vector<8x1xf32>
    %673 = vector.broadcast %672 : vector<8x1xf32> to vector<8x32xf32>
    %674 = arith.mulf %664, %673 : vector<8x32xf32>
    %c1_i32_245 = arith.constant 1 : i32
    %675 = arith.addi %c6_i32, %c1_i32_245 : i32
    %676 = arith.index_cast %675 : i32 to index
    %c0_246 = arith.constant 0 : index
    %c0_247 = arith.constant 0 : index
    %677 = vector.load %arg18[%676, %c0_246, %c0_247] : memref<10x8x64xf32, #tpu.memory_space<vmem>>, vector<1x8x32xf32>
    %678 = vector.shape_cast %677 : vector<1x8x32xf32> to vector<8x32xf32>
    %679 = vector.shape_cast %674 : vector<8x32xf32> to vector<1x8x32xf32>
    tpu.vector_store %arg18[%676, %c0_246, %c0_247], %679 {strides = array<i32>} : memref<10x8x64xf32, #tpu.memory_space<vmem>>, vector<1x8x32xf32>,
    %680 = arith.index_cast %594 : i32 to index
    %c0_248 = arith.constant 0 : index
    %c0_249 = arith.constant 0 : index
    %681 = vector.load %arg2[%680, %c0_248, %c0_249] : memref<8x8x1xf32, #tpu.memory_space<vmem>>, vector<1x8x1xf32>
    %682 = vector.shape_cast %681 : vector<1x8x1xf32> to vector<8x1xf32>
    %683 = vector.broadcast %682 : vector<8x1xf32> to vector<8x32xf32>
    %684 = arith.mulf %669, %683 : vector<8x32xf32>
    %c1_i32_250 = arith.constant 1 : i32
    %685 = arith.addi %594, %c1_i32_250 : i32
    %686 = arith.index_cast %685 : i32 to index
    %c0_251 = arith.constant 0 : index
    %c32_252 = arith.constant 32 : index
    %687 = vector.load %arg18[%686, %c0_251, %c32_252] : memref<10x8x64xf32, #tpu.memory_space<vmem>>, vector<1x8x32xf32>
    %688 = vector.shape_cast %687 : vector<1x8x32xf32> to vector<8x32xf32>
    %689 = vector.shape_cast %684 : vector<8x32xf32> to vector<1x8x32xf32>
    tpu.vector_store %arg18[%686, %c0_251, %c32_252], %689 {strides = array<i32>} : memref<10x8x64xf32, #tpu.memory_space<vmem>>, vector<1x8x32xf32>,
    %c7_i32_253 = arith.constant 7 : i32
    %c7_i32_254 = arith.constant 7 : i32
    %690 = arith.subi %c7_i32_254, %c7_i32_253 : i32
    %691 = tpu.concatenate %664, %669 in 1 : vector<8x32xf32>, vector<8x32xf32> -> vector<8x64xf32>
    %692 = arith.truncf %691 : vector<8x64xf32> to vector<8x64xbf16>
    %cst_255 = arith.constant dense<0.000000e+00> : vector<8x256xf32>
    %693 = tpu.matmul %692, %16, %cst_255 {dimension_numbers = #tpu.dot_dimension_numbers<[1], [0], [0], [1], [0, 0, 1, 1], [], []>} : vector<8x64xbf16>, vector<64x256xbf16>, vector<8x256xf32> -> vector<8x256xf32>
    %694 = arith.index_cast %c7_i32_253 : i32 to index
    %c0_256 = arith.constant 0 : index
    %c0_257 = arith.constant 0 : index
    %695 = vector.load %arg17[%694, %c0_256, %c0_257] : memref<8x8x256xf32, #tpu.memory_space<vmem>>, vector<1x8x128xf32>
    %696 = vector.shape_cast %695 : vector<1x8x128xf32> to vector<8x128xf32>
    %697 = vector.extract_strided_slice %693 {offsets = [0, 0], sizes = [8, 128], strides = [1, 1]} : vector<8x256xf32> to vector<8x128xf32>
    %698 = arith.addf %696, %697 : vector<8x128xf32>
    %699 = arith.index_cast %690 : i32 to index
    %c0_258 = arith.constant 0 : index
    %c128_259 = arith.constant 128 : index
    %700 = vector.load %arg17[%699, %c0_258, %c128_259] : memref<8x8x256xf32, #tpu.memory_space<vmem>>, vector<1x8x128xf32>
    %701 = vector.shape_cast %700 : vector<1x8x128xf32> to vector<8x128xf32>
    %702 = vector.extract_strided_slice %693 {offsets = [0, 128], sizes = [8, 128], strides = [1, 1]} : vector<8x256xf32> to vector<8x128xf32>
    %703 = arith.addf %701, %702 : vector<8x128xf32>
    %704 = vector.extract_strided_slice %698 {offsets = [0, 0], sizes = [8, 32], strides = [1, 1]} : vector<8x128xf32> to vector<8x32xf32>
    %cst_260 = arith.constant 5.000000e-01 : f32
    %705 = vector.broadcast %cst_260 : f32 to vector<8x32xf32>
    %706 = arith.mulf %705, %704 : vector<8x32xf32>
    %707 = math.tanh %706 : vector<8x32xf32>
    %cst_261 = arith.constant 5.000000e-01 : f32
    %708 = vector.broadcast %cst_261 : f32 to vector<8x32xf32>
    %709 = arith.mulf %708, %707 : vector<8x32xf32>
    %cst_262 = arith.constant 5.000000e-01 : f32
    %710 = vector.broadcast %cst_262 : f32 to vector<8x32xf32>
    %711 = arith.addf %709, %710 : vector<8x32xf32>
    %712 = vector.extract_strided_slice %698 {offsets = [0, 32], sizes = [8, 32], strides = [1, 1]} : vector<8x128xf32> to vector<8x32xf32>
    %cst_263 = arith.constant 5.000000e-01 : f32
    %713 = vector.broadcast %cst_263 : f32 to vector<8x32xf32>
    %714 = arith.mulf %713, %712 : vector<8x32xf32>
    %715 = math.tanh %714 : vector<8x32xf32>
    %cst_264 = arith.constant 5.000000e-01 : f32
    %716 = vector.broadcast %cst_264 : f32 to vector<8x32xf32>
    %717 = arith.mulf %716, %715 : vector<8x32xf32>
    %cst_265 = arith.constant 5.000000e-01 : f32
    %718 = vector.broadcast %cst_265 : f32 to vector<8x32xf32>
    %719 = arith.addf %717, %718 : vector<8x32xf32>
    %720 = vector.extract_strided_slice %698 {offsets = [0, 64], sizes = [8, 32], strides = [1, 1]} : vector<8x128xf32> to vector<8x32xf32>
    %721 = math.tanh %720 : vector<8x32xf32>
    %722 = vector.extract_strided_slice %698 {offsets = [0, 96], sizes = [8, 32], strides = [1, 1]} : vector<8x128xf32> to vector<8x32xf32>
    %cst_266 = arith.constant 5.000000e-01 : f32
    %723 = vector.broadcast %cst_266 : f32 to vector<8x32xf32>
    %724 = arith.mulf %723, %722 : vector<8x32xf32>
    %725 = math.tanh %724 : vector<8x32xf32>
    %cst_267 = arith.constant 5.000000e-01 : f32
    %726 = vector.broadcast %cst_267 : f32 to vector<8x32xf32>
    %727 = arith.mulf %726, %725 : vector<8x32xf32>
    %cst_268 = arith.constant 5.000000e-01 : f32
    %728 = vector.broadcast %cst_268 : f32 to vector<8x32xf32>
    %729 = arith.addf %727, %728 : vector<8x32xf32>
    %730 = vector.extract_strided_slice %703 {offsets = [0, 0], sizes = [8, 32], strides = [1, 1]} : vector<8x128xf32> to vector<8x32xf32>
    %cst_269 = arith.constant 5.000000e-01 : f32
    %731 = vector.broadcast %cst_269 : f32 to vector<8x32xf32>
    %732 = arith.mulf %731, %730 : vector<8x32xf32>
    %733 = math.tanh %732 : vector<8x32xf32>
    %cst_270 = arith.constant 5.000000e-01 : f32
    %734 = vector.broadcast %cst_270 : f32 to vector<8x32xf32>
    %735 = arith.mulf %734, %733 : vector<8x32xf32>
    %cst_271 = arith.constant 5.000000e-01 : f32
    %736 = vector.broadcast %cst_271 : f32 to vector<8x32xf32>
    %737 = arith.addf %735, %736 : vector<8x32xf32>
    %738 = vector.extract_strided_slice %703 {offsets = [0, 32], sizes = [8, 32], strides = [1, 1]} : vector<8x128xf32> to vector<8x32xf32>
    %cst_272 = arith.constant 5.000000e-01 : f32
    %739 = vector.broadcast %cst_272 : f32 to vector<8x32xf32>
    %740 = arith.mulf %739, %738 : vector<8x32xf32>
    %741 = math.tanh %740 : vector<8x32xf32>
    %cst_273 = arith.constant 5.000000e-01 : f32
    %742 = vector.broadcast %cst_273 : f32 to vector<8x32xf32>
    %743 = arith.mulf %742, %741 : vector<8x32xf32>
    %cst_274 = arith.constant 5.000000e-01 : f32
    %744 = vector.broadcast %cst_274 : f32 to vector<8x32xf32>
    %745 = arith.addf %743, %744 : vector<8x32xf32>
    %746 = vector.extract_strided_slice %703 {offsets = [0, 64], sizes = [8, 32], strides = [1, 1]} : vector<8x128xf32> to vector<8x32xf32>
    %747 = math.tanh %746 : vector<8x32xf32>
    %748 = vector.extract_strided_slice %703 {offsets = [0, 96], sizes = [8, 32], strides = [1, 1]} : vector<8x128xf32> to vector<8x32xf32>
    %cst_275 = arith.constant 5.000000e-01 : f32
    %749 = vector.broadcast %cst_275 : f32 to vector<8x32xf32>
    %750 = arith.mulf %749, %748 : vector<8x32xf32>
    %751 = math.tanh %750 : vector<8x32xf32>
    %cst_276 = arith.constant 5.000000e-01 : f32
    %752 = vector.broadcast %cst_276 : f32 to vector<8x32xf32>
    %753 = arith.mulf %752, %751 : vector<8x32xf32>
    %cst_277 = arith.constant 5.000000e-01 : f32
    %754 = vector.broadcast %cst_277 : f32 to vector<8x32xf32>
    %755 = arith.addf %753, %754 : vector<8x32xf32>
    %756 = arith.mulf %719, %662 : vector<8x32xf32>
    %757 = arith.mulf %711, %721 : vector<8x32xf32>
    %758 = arith.addf %756, %757 : vector<8x32xf32>
    %759 = math.tanh %758 : vector<8x32xf32>
    %760 = arith.mulf %729, %759 : vector<8x32xf32>
    %761 = arith.mulf %745, %667 : vector<8x32xf32>
    %762 = arith.mulf %737, %747 : vector<8x32xf32>
    %763 = arith.addf %761, %762 : vector<8x32xf32>
    %764 = math.tanh %763 : vector<8x32xf32>
    %765 = arith.mulf %755, %764 : vector<8x32xf32>
    %766 = arith.index_cast %c7_i32_253 : i32 to index
    %c0_278 = arith.constant 0 : index
    %c0_279 = arith.constant 0 : index
    %767 = vector.load %arg2[%766, %c0_278, %c0_279] : memref<8x8x1xf32, #tpu.memory_space<vmem>>, vector<1x8x1xf32>
    %768 = vector.shape_cast %767 : vector<1x8x1xf32> to vector<8x1xf32>
    %769 = vector.broadcast %768 : vector<8x1xf32> to vector<8x32xf32>
    %770 = arith.mulf %760, %769 : vector<8x32xf32>
    %c1_i32_280 = arith.constant 1 : i32
    %771 = arith.addi %c7_i32_253, %c1_i32_280 : i32
    %772 = arith.index_cast %771 : i32 to index
    %c0_281 = arith.constant 0 : index
    %c0_282 = arith.constant 0 : index
    %773 = vector.load %arg18[%772, %c0_281, %c0_282] : memref<10x8x64xf32, #tpu.memory_space<vmem>>, vector<1x8x32xf32>
    %774 = vector.shape_cast %773 : vector<1x8x32xf32> to vector<8x32xf32>
    %775 = vector.shape_cast %770 : vector<8x32xf32> to vector<1x8x32xf32>
    tpu.vector_store %arg18[%772, %c0_281, %c0_282], %775 {strides = array<i32>} : memref<10x8x64xf32, #tpu.memory_space<vmem>>, vector<1x8x32xf32>,
    %776 = arith.index_cast %690 : i32 to index
    %c0_283 = arith.constant 0 : index
    %c0_284 = arith.constant 0 : index
    %777 = vector.load %arg2[%776, %c0_283, %c0_284] : memref<8x8x1xf32, #tpu.memory_space<vmem>>, vector<1x8x1xf32>
    %778 = vector.shape_cast %777 : vector<1x8x1xf32> to vector<8x1xf32>
    %779 = vector.broadcast %778 : vector<8x1xf32> to vector<8x32xf32>
    %780 = arith.mulf %765, %779 : vector<8x32xf32>
    %c1_i32_285 = arith.constant 1 : i32
    %781 = arith.addi %690, %c1_i32_285 : i32
    %782 = arith.index_cast %781 : i32 to index
    %c0_286 = arith.constant 0 : index
    %c32_287 = arith.constant 32 : index
    %783 = vector.load %arg18[%782, %c0_286, %c32_287] : memref<10x8x64xf32, #tpu.memory_space<vmem>>, vector<1x8x32xf32>
    %784 = vector.shape_cast %783 : vector<1x8x32xf32> to vector<8x32xf32>
    %785 = vector.shape_cast %780 : vector<8x32xf32> to vector<1x8x32xf32>
    tpu.vector_store %arg18[%782, %c0_286, %c32_287], %785 {strides = array<i32>} : memref<10x8x64xf32, #tpu.memory_space<vmem>>, vector<1x8x32xf32>,
    %c8_i32 = arith.constant 8 : i32
    %c0_288 = arith.constant 0 : index
    %c0_289 = arith.constant 0 : index
    %c0_290 = arith.constant 0 : index
    %786 = vector.load %arg18[%c0_288, %c0_289, %c0_290] : memref<10x8x64xf32, #tpu.memory_space<vmem>>, vector<10x8x64xf32>
    %787 = arith.truncf %786 : vector<10x8x64xf32> to vector<10x8x64xbf16>
    %cst_291 = arith.constant 0.000000e+00 : f32
    %788 = vector.broadcast %cst_291 : f32 to vector<64x32xf32>
    %c0_292 = arith.constant 0 : index
    %c0_293 = arith.constant 0 : index
    %789 = vector.load %arg7[%c0_292, %c0_293] : memref<1x32xf32, #tpu.memory_space<vmem>>, vector<1x32xf32>
    %790 = vector.broadcast %789 : vector<1x32xf32> to vector<64x32xf32>
    %791 = arith.addf %788, %790 : vector<64x32xf32>
    %792 = vector.extract_strided_slice %787 {offsets = [0, 0, 0], sizes = [8, 8, 64], strides = [1, 1, 1]} : vector<10x8x64xbf16> to vector<8x8x64xbf16>
    %793 = vector.shape_cast %792 : vector<8x8x64xbf16> to vector<64x64xbf16>
    %c0_294 = arith.constant 0 : index
    %c0_295 = arith.constant 0 : index
    %c0_296 = arith.constant 0 : index
    %794 = vector.load %arg6[%c0_294, %c0_295, %c0_296] : memref<3x64x32xbf16, #tpu.memory_space<vmem>>, vector<1x64x32xbf16>
    %795 = vector.shape_cast %794 : vector<1x64x32xbf16> to vector<64x32xbf16>
    %cst_297 = arith.constant dense<0.000000e+00> : vector<64x32xf32>
    %796 = tpu.matmul %793, %795, %cst_297 {dimension_numbers = #tpu.dot_dimension_numbers<[1], [0], [0], [1], [0, 0, 1, 1], [], []>} : vector<64x64xbf16>, vector<64x32xbf16>, vector<64x32xf32> -> vector<64x32xf32>
    %797 = arith.addf %791, %796 : vector<64x32xf32>
    %798 = vector.extract_strided_slice %787 {offsets = [1, 0, 0], sizes = [8, 8, 64], strides = [1, 1, 1]} : vector<10x8x64xbf16> to vector<8x8x64xbf16>
    %799 = vector.shape_cast %798 : vector<8x8x64xbf16> to vector<64x64xbf16>
    %c1 = arith.constant 1 : index
    %c0_298 = arith.constant 0 : index
    %c0_299 = arith.constant 0 : index
    %800 = vector.load %arg6[%c1, %c0_298, %c0_299] : memref<3x64x32xbf16, #tpu.memory_space<vmem>>, vector<1x64x32xbf16>
    %801 = vector.shape_cast %800 : vector<1x64x32xbf16> to vector<64x32xbf16>
    %cst_300 = arith.constant dense<0.000000e+00> : vector<64x32xf32>
    %802 = tpu.matmul %799, %801, %cst_300 {dimension_numbers = #tpu.dot_dimension_numbers<[1], [0], [0], [1], [0, 0, 1, 1], [], []>} : vector<64x64xbf16>, vector<64x32xbf16>, vector<64x32xf32> -> vector<64x32xf32>
    %803 = arith.addf %797, %802 : vector<64x32xf32>
    %804 = vector.extract_strided_slice %787 {offsets = [2, 0, 0], sizes = [8, 8, 64], strides = [1, 1, 1]} : vector<10x8x64xbf16> to vector<8x8x64xbf16>
    %805 = vector.shape_cast %804 : vector<8x8x64xbf16> to vector<64x64xbf16>
    %c2 = arith.constant 2 : index
    %c0_301 = arith.constant 0 : index
    %c0_302 = arith.constant 0 : index
    %806 = vector.load %arg6[%c2, %c0_301, %c0_302] : memref<3x64x32xbf16, #tpu.memory_space<vmem>>, vector<1x64x32xbf16>
    %807 = vector.shape_cast %806 : vector<1x64x32xbf16> to vector<64x32xbf16>
    %cst_303 = arith.constant dense<0.000000e+00> : vector<64x32xf32>
    %808 = tpu.matmul %805, %807, %cst_303 {dimension_numbers = #tpu.dot_dimension_numbers<[1], [0], [0], [1], [0, 0, 1, 1], [], []>} : vector<64x64xbf16>, vector<64x32xbf16>, vector<64x32xf32> -> vector<64x32xf32>
    %809 = arith.addf %803, %808 : vector<64x32xf32>
    %810 = arith.truncf %809 : vector<64x32xf32> to vector<64x32xbf16>
    %c0_304 = arith.constant 0 : index
    %c0_305 = arith.constant 0 : index
    %811 = vector.load %arg8[%c0_304, %c0_305] : memref<32x32xbf16, #tpu.memory_space<vmem>>, vector<32x32xbf16>
    %cst_306 = arith.constant dense<0.000000e+00> : vector<64x32xf32>
    %812 = tpu.matmul %810, %811, %cst_306 {dimension_numbers = #tpu.dot_dimension_numbers<[1], [0], [0], [1], [0, 0, 1, 1], [], []>} : vector<64x32xbf16>, vector<32x32xbf16>, vector<64x32xf32> -> vector<64x32xf32>
    %c0_307 = arith.constant 0 : index
    %c0_308 = arith.constant 0 : index
    %813 = vector.load %arg9[%c0_307, %c0_308] : memref<1x32xf32, #tpu.memory_space<vmem>>, vector<1x32xf32>
    %814 = vector.broadcast %813 : vector<1x32xf32> to vector<64x32xf32>
    %815 = arith.addf %812, %814 : vector<64x32xf32>
    %816 = math.tanh %815 : vector<64x32xf32>
    %c0_309 = arith.constant 0 : index
    %c0_310 = arith.constant 0 : index
    %817 = vector.load %arg10[%c0_309, %c0_310] : memref<1x32xf32, #tpu.memory_space<vmem>>, vector<1x32xf32>
    %818 = vector.broadcast %817 : vector<1x32xf32> to vector<64x32xf32>
    %819 = arith.mulf %816, %818 : vector<64x32xf32>
    %cst_311 = arith.constant dense<0.000000e+00> : vector<64xf32>
    %820 = vector.multi_reduction <add>, %819, %cst_311 [1] : vector<64x32xf32> to vector<64xf32>
    %821 = vector.shape_cast %820 : vector<64xf32> to vector<64x1xf32>
    %c0_312 = arith.constant 0 : index
    %c0_313 = arith.constant 0 : index
    %822 = vector.load %arg11[%c0_312, %c0_313] : memref<1x1xf32, #tpu.memory_space<vmem>>, vector<1x1xf32>
    %823 = vector.broadcast %822 : vector<1x1xf32> to vector<64x1xf32>
    %824 = arith.addf %821, %823 : vector<64x1xf32>
    %825 = vector.shape_cast %824 : vector<64x1xf32> to vector<8x8x1xf32>
    %cst_314 = arith.constant dense<0xFF800000> : vector<8x1xf32>
    %826 = vector.multi_reduction <maximumf>, %825, %cst_314 [0] : vector<8x8x1xf32> to vector<8x1xf32>
    %827 = vector.shape_cast %826 : vector<8x1xf32> to vector<1x8x1xf32>
    %828 = vector.broadcast %827 : vector<1x8x1xf32> to vector<8x8x1xf32>
    %829 = arith.subf %825, %828 : vector<8x8x1xf32>
    %830 = math.exp %829 : vector<8x8x1xf32>
    %cst_315 = arith.constant dense<0.000000e+00> : vector<8x1xf32>
    %831 = vector.multi_reduction <add>, %830, %cst_315 [0] : vector<8x8x1xf32> to vector<8x1xf32>
    %832 = vector.shape_cast %831 : vector<8x1xf32> to vector<1x8x1xf32>
    %833 = tpu.reciprocal %832 {approx = true} : vector<1x8x1xf32> -> vector<1x8x1xf32>
    %834 = vector.broadcast %833 : vector<1x8x1xf32> to vector<8x8x1xf32>
    %835 = arith.mulf %830, %834 : vector<8x8x1xf32>
    %836 = vector.shape_cast %809 : vector<64x32xf32> to vector<8x8x32xf32>
    %837 = vector.broadcast %835 : vector<8x8x1xf32> to vector<8x8x32xf32>
    %838 = arith.mulf %837, %836 : vector<8x8x32xf32>
    %cst_316 = arith.constant dense<0.000000e+00> : vector<8x32xf32>
    %839 = vector.multi_reduction <add>, %838, %cst_316 [0] : vector<8x8x32xf32> to vector<8x32xf32>
    %840 = arith.truncf %839 : vector<8x32xf32> to vector<8x32xbf16>
    %c0_317 = arith.constant 0 : index
    %c0_318 = arith.constant 0 : index
    %841 = vector.load %arg12[%c0_317, %c0_318] : memref<32x32xbf16, #tpu.memory_space<vmem>>, vector<32x32xbf16>
    %cst_319 = arith.constant dense<0.000000e+00> : vector<8x32xf32>
    %842 = tpu.matmul %840, %841, %cst_319 {dimension_numbers = #tpu.dot_dimension_numbers<[1], [0], [0], [1], [0, 0, 1, 1], [], []>} : vector<8x32xbf16>, vector<32x32xbf16>, vector<8x32xf32> -> vector<8x32xf32>
    %c0_320 = arith.constant 0 : index
    %c0_321 = arith.constant 0 : index
    %843 = vector.load %arg13[%c0_320, %c0_321] : memref<1x32xf32, #tpu.memory_space<vmem>>, vector<1x32xf32>
    %844 = vector.broadcast %843 : vector<1x32xf32> to vector<8x32xf32>
    %845 = arith.addf %842, %844 : vector<8x32xf32>
    %cst_322 = arith.constant 0.000000e+00 : f32
    %846 = vector.broadcast %cst_322 : f32 to vector<8x32xf32>
    %847 = arith.maximumf %845, %846 : vector<8x32xf32>
    %848 = arith.truncf %847 : vector<8x32xf32> to vector<8x32xbf16>
    %c0_323 = arith.constant 0 : index
    %c0_324 = arith.constant 0 : index
    %849 = vector.load %arg14[%c0_323, %c0_324] : memref<32x128xbf16, #tpu.memory_space<vmem>>, vector<32x128xbf16>
    %cst_325 = arith.constant dense<0.000000e+00> : vector<8x128xf32>
    %850 = tpu.matmul %848, %849, %cst_325 {dimension_numbers = #tpu.dot_dimension_numbers<[1], [0], [0], [1], [0, 0, 1, 1], [], []>} : vector<8x32xbf16>, vector<32x128xbf16>, vector<8x128xf32> -> vector<8x128xf32>
    %c0_326 = arith.constant 0 : index
    %c0_327 = arith.constant 0 : index
    %851 = vector.load %arg15[%c0_326, %c0_327] : memref<1x128xf32, #tpu.memory_space<vmem>>, vector<1x128xf32>
    %852 = vector.broadcast %851 : vector<1x128xf32> to vector<8x128xf32>
    %853 = arith.addf %850, %852 : vector<8x128xf32>
    %cst_328 = arith.constant 5.000000e-01 : f32
    %854 = vector.broadcast %cst_328 : f32 to vector<8x128xf32>
    %855 = arith.mulf %854, %853 : vector<8x128xf32>
    %856 = math.tanh %855 : vector<8x128xf32>
    %cst_329 = arith.constant 5.000000e-01 : f32
    %857 = vector.broadcast %cst_329 : f32 to vector<8x128xf32>
    %858 = arith.mulf %857, %856 : vector<8x128xf32>
    %cst_330 = arith.constant 5.000000e-01 : f32
    %859 = vector.broadcast %cst_330 : f32 to vector<8x128xf32>
    %860 = arith.addf %858, %859 : vector<8x128xf32>
    %c0_331 = arith.constant 0 : index
    %c0_332 = arith.constant 0 : index
    %861 = vector.load %arg16[%c0_331, %c0_332] : memref<8x128xf32, #tpu.memory_space<vmem>>, vector<8x128xf32>
    tpu.vector_store %arg16[%c0_331, %c0_332], %860 {strides = array<i32>} : memref<8x128xf32, #tpu.memory_space<vmem>>, vector<8x128xf32>,
    return
  }
  func.func @transform_0(%arg0: i32) -> (i32, i32, i32) {
    %c0_i32 = arith.constant 0 : i32
    %c0_i32_0 = arith.constant 0 : i32
    %c0_i32_1 = arith.constant 0 : i32
    return %c0_i32, %arg0, %c0_i32_0 : i32, i32, i32
  }
  func.func @transform_1(%arg0: i32) -> (i32, i32, i32) {
    %c0_i32 = arith.constant 0 : i32
    %c0_i32_0 = arith.constant 0 : i32
    %c0_i32_1 = arith.constant 0 : i32
    return %c0_i32, %arg0, %c0_i32_0 : i32, i32, i32
  }
  func.func @transform_2(%arg0: i32) -> (i32, i32) {
    %c0_i32 = arith.constant 0 : i32
    %c0_i32_0 = arith.constant 0 : i32
    %c0_i32_1 = arith.constant 0 : i32
    return %c0_i32, %c0_i32_0 : i32, i32
  }
  func.func @transform_3(%arg0: i32) -> (i32, i32) {
    %c0_i32 = arith.constant 0 : i32
    %c0_i32_0 = arith.constant 0 : i32
    %c0_i32_1 = arith.constant 0 : i32
    return %c0_i32, %c0_i32_0 : i32, i32
  }
  func.func @transform_4(%arg0: i32) -> (i32, i32) {
    %c0_i32 = arith.constant 0 : i32
    %c0_i32_0 = arith.constant 0 : i32
    %c0_i32_1 = arith.constant 0 : i32
    return %c0_i32, %c0_i32_0 : i32, i32
  }
  func.func @transform_5(%arg0: i32) -> (i32, i32, i32) {
    %c0_i32 = arith.constant 0 : i32
    %c0_i32_0 = arith.constant 0 : i32
    %c0_i32_1 = arith.constant 0 : i32
    %c0_i32_2 = arith.constant 0 : i32
    return %c0_i32, %c0_i32_0, %c0_i32_1 : i32, i32, i32
  }
  func.func @transform_6(%arg0: i32) -> (i32, i32) {
    %c0_i32 = arith.constant 0 : i32
    %c0_i32_0 = arith.constant 0 : i32
    %c0_i32_1 = arith.constant 0 : i32
    return %c0_i32, %c0_i32_0 : i32, i32
  }
  func.func @transform_7(%arg0: i32) -> (i32, i32) {
    %c0_i32 = arith.constant 0 : i32
    %c0_i32_0 = arith.constant 0 : i32
    %c0_i32_1 = arith.constant 0 : i32
    return %c0_i32, %c0_i32_0 : i32, i32
  }
  func.func @transform_8(%arg0: i32) -> (i32, i32) {
    %c0_i32 = arith.constant 0 : i32
    %c0_i32_0 = arith.constant 0 : i32
    %c0_i32_1 = arith.constant 0 : i32
    return %c0_i32, %c0_i32_0 : i32, i32
  }
  func.func @transform_9(%arg0: i32) -> (i32, i32) {
    %c0_i32 = arith.constant 0 : i32
    %c0_i32_0 = arith.constant 0 : i32
    %c0_i32_1 = arith.constant 0 : i32
    return %c0_i32, %c0_i32_0 : i32, i32
  }
  func.func @transform_10(%arg0: i32) -> (i32, i32) {
    %c0_i32 = arith.constant 0 : i32
    %c0_i32_0 = arith.constant 0 : i32
    %c0_i32_1 = arith.constant 0 : i32
    return %c0_i32, %c0_i32_0 : i32, i32
  }
  func.func @transform_11(%arg0: i32) -> (i32, i32) {
    %c0_i32 = arith.constant 0 : i32
    %c0_i32_0 = arith.constant 0 : i32
    %c0_i32_1 = arith.constant 0 : i32
    return %c0_i32, %c0_i32_0 : i32, i32
  }
  func.func @transform_12(%arg0: i32) -> (i32, i32) {
    %c0_i32 = arith.constant 0 : i32
    %c0_i32_0 = arith.constant 0 : i32
    %c0_i32_1 = arith.constant 0 : i32
    return %c0_i32, %c0_i32_0 : i32, i32
  }
  func.func @transform_13(%arg0: i32) -> (i32, i32) {
    %c0_i32 = arith.constant 0 : i32
    %c0_i32_0 = arith.constant 0 : i32
    %c0_i32_1 = arith.constant 0 : i32
    return %c0_i32, %c0_i32_0 : i32, i32
  }
  func.func @transform_14(%arg0: i32) -> (i32, i32) {
    %c0_i32 = arith.constant 0 : i32
    %c0_i32_0 = arith.constant 0 : i32
    %c0_i32_1 = arith.constant 0 : i32
    return %c0_i32, %c0_i32_0 : i32, i32
  }
  func.func @transform_15(%arg0: i32) -> (i32, i32) {
    %c0_i32 = arith.constant 0 : i32
    %c0_i32_0 = arith.constant 0 : i32
    return %arg0, %c0_i32 : i32, i32
  }
}

</mosaic_0001>

<bundles_post_ra>
// kernel: tpu_custom_call.1
= control target key start
LH: loop header
LB: loop body
LE: loop exit
PB: predicated region body
PF: predicated region fallthrough
CT: control target
= control target key end

     0   :  { %s3227_s0 = inlined_call_operand.vmem [shape: bf16[8,8,32], index: 0, kind: input, shape index: {}]   ;;  %s3228_s1 = inlined_call_operand.vmem [shape: f32[8,8,1], index: 1, kind: input, shape index: {}]   ;;  %s3229_s2 = inlined_call_operand.vmem [shape: bf16[32,256], index: 2, kind: input, shape index: {}]   ;;  %s3230_s3 = inlined_call_operand.vmem [shape: f32[1,256], index: 3, kind: input, shape index: {}]   ;;  %s3231_s4 = inlined_call_operand.vmem [shape: bf16[64,256], index: 4, kind: input, shape index: {}]   ;;  %s3232_s5 = inlined_call_operand.vmem [shape: bf16[3,64,32], index: 5, kind: input, shape index: {}]   ;;  %s3233_s6 = inlined_call_operand.vmem [shape: f32[1,32], index: 6, kind: input, shape index: {}]   ;;  %s3234_s7 = inlined_call_operand.vmem [shape: bf16[32,32], index: 7, kind: input, shape index: {}]   ;;  %s3235_s8 = inlined_call_operand.vmem [shape: f32[1,32], index: 8, kind: input, shape index: {}]   ;;  %s3236_s9 = inlined_call_operand.vmem [shape: f32[1,32], index: 9, kind: input, shape index: {}]   ;;  %s3237_s10 = inlined_call_operand.<no memory space> [shape: f32[1,1], index: 10, kind: input, shape index: {}]   ;;  %s3238_s11 = inlined_call_operand.vmem [shape: bf16[32,32], index: 11, kind: input, shape index: {}]   ;;  %s3239_s12 = inlined_call_operand.vmem [shape: f32[1,32], index: 12, kind: input, shape index: {}]   ;;  %s3240_s13 = inlined_call_operand.vmem [shape: bf16[32,128], index: 13, kind: input, shape index: {}]   ;;  %s3241_s14 = inlined_call_operand.vmem [shape: f32[1,128], index: 14, kind: input, shape index: {}]   ;;  %s3242_s15 = inlined_call_operand.hbm [shape: f32[8,128], index: 15, kind: output, shape index: {}]  }
   0x1   :  { %v20_v0 = vstv %s3237_s10 }
   0x2   :  { %21 = vst [vmem:[#allocation4] sm:$0x1] %v20_v0 }
   0x3   :  { %v2380_v1 = vld [vmem:[%s3229_s2 + $0x14] ss:$8 sps:$4 sm:$0xff]   ;;  %v2574_v3 = vmov 0   ;;  %v2384_v4 = vld [vmem:[%s3229_s2 + $0x10] ss:$8 sps:$4 sm:$0xff]   ;;  %v2392_v10 = vld [vmem:[%s3227_s0] sm:$0xff]  }
   0x4   :  { %v2670_v2 = vld [vmem:[%s3231_s4 + $0x34] ss:$8 sps:$4 sm:$0xff]   ;;  %163 = vmatprep.mubr.bf16.mxu0 %v2574_v3  ;;  %308 = vmatprep.mubr.bf16.mxu1 %v2574_v3  ;;  %v2680_v5 = vld [vmem:[%s3231_s4 + $0x30] ss:$8 sps:$4 sm:$0xff]   ;;  %v2386_v6 = vld [vmem:[%s3229_s2 + $0x4] ss:$8 sps:$4 sm:$0xff]  }
   0x5   :  { %143 = vmatprep.subr.bf16.mxu0 %v2380_v1  ;;  %2379 = vset.pattern.permute.xlu1 %v2574_v3  ;;  %v2692_v7 = vld [vmem:[%s3231_s4 + $0x24] ss:$8 sps:$4 sm:$0xff]   ;;  %v2390_v8 = vld [vmem:[%s3229_s2] ss:$8 sps:$4 sm:$0xff]   ;;  %v2709_v11 = vld [vmem:[%s3231_s4 + $0x14] ss:$8 sps:$4 sm:$0xff]  }
   0x6   :  { %284 = vmatprep.subr.bf16.mxu1 %v2670_v2  ;;  %2378 = vset.pattern.permute.xlu0 %v2574_v3  ;;  %v2700_v9 = vld [vmem:[%s3231_s4 + $0x20] ss:$8 sps:$4 sm:$0xff]   ;;  %vm118_vm0 = vcmask 261120   ;;  %v2715_v12 = vld [vmem:[%s3231_s4 + $0x10] ss:$8 sps:$4 sm:$0xff]   ;;  %v2575_v16 = vmov 0.0|0.0  }
   0x7   :  { %144 = vmatpush1.bf16.msra.mxu0 %v2384_v4  ;;  %285 = vmatpush1.bf16.msra.mxu1 %v2680_v5  ;;  %v2721_v13 = vld [vmem:[%s3231_s4 + $0x4] ss:$8 sps:$4 sm:$0xff]   ;;  %v2729_v14 = vld [vmem:[%s3231_s4] ss:$8 sps:$4 sm:$0xff]   ;;  %v2400_v17 = vld [vmem:[%s3227_s0 + $0x10] sm:$0xff]  }
   0x8   :  { %145 = vmatprep.subr.bf16.mxu0 %v2386_v6  ;;  %286 = vmatprep.subr.bf16.mxu1 %v2692_v7  ;;  %v2399_v15 = vld [vmem:[%s3227_s0 + $0x8] sm:$0xff]  }
   0xb   :  { %146 = vmatpush1.bf16.msra.mxu0 %v2390_v8  ;;  %287 = vmatpush1.bf16.msra.mxu1 %v2700_v9 }
   0xc   :  { %288 = vmatprep.subr.bf16.mxu1 %v2709_v11  ;;  %547 = vmatprep.subr.bf16.mxu0 %v2670_v2 }
   0xe   :  { %2150 = vmatmul.mubr.msk.bf16.vlgmr.msra.gmra.mxu0 %vm118_vm0, %v2392_v10 }
   0xf   :  { %289 = vmatpush1.bf16.msra.mxu1 %v2715_v12  ;;  %173 = vmatprep.mubr.bf16.mxu0 %v2574_v3 }
  0x10   :  { %290 = vmatprep.subr.bf16.mxu1 %v2721_v13  ;;  %548 = vmatpush1.bf16.msra.mxu0 %v2680_v5 }
  0x11   :  { %549 = vmatprep.subr.bf16.mxu0 %v2692_v7 }
  0x13   :  { %291 = vmatpush1.bf16.msra.mxu1 %v2729_v14 }
  0x14   :  { %415 = vmatprep.subr.bf16.mxu1 %v2670_v2  ;;  %550 = vmatpush1.bf16.msra.mxu0 %v2700_v9 }
  0x15   :  { %551 = vmatprep.subr.bf16.mxu0 %v2709_v11 }
  0x16   :  { %2151 = vmatmul.mubr.msk.bf16.gmra.mxu0 %vm118_vm0, %v2399_v15  ;;  %309 = vmatmul.mubr.bf16.vlgmr.msra.gmra.mxu1 %v2575_v16 }
  0x17   :  { %183 = vmatprep.mubr.bf16.mxu0 %v2574_v3  ;;  %416 = vmatpush1.bf16.msra.mxu1 %v2680_v5 }
  0x18   :  { %417 = vmatprep.subr.bf16.mxu1 %v2692_v7  ;;  %439 = vmatprep.mubr.bf16.mxu1 %v2574_v3 }
  0x19   :  { %552 = vmatpush1.bf16.msra.mxu0 %v2715_v12 }
  0x1a   :  { %553 = vmatprep.subr.bf16.mxu0 %v2721_v13 }
  0x1b   :  { %418 = vmatpush1.bf16.msra.mxu1 %v2700_v9 }
  0x1c   :  { %22 = vsyncpa [#allocation6], 0  ;;  %419 = vmatprep.subr.bf16.mxu1 %v2709_v11  ;;  %v2401_v18 = vld [vmem:[%s3227_s0 + $0x18] sm:$0xff]   ;;  %v68_v19 = vlaneseq  ;;  %v66_v22 = vld [vmem:[%s3230_s3] sm:$0x3]  ;;  %s2576_s0 = smov 64  }
  0x1d   :  { %554 = vmatpush1.bf16.msra.mxu0 %v2729_v14  ;;  %s2577_s3 = smov 32   ;;  %vm220_vm1 = vcmask 523264   ;;  %vm392_vm2 = vcmask 523520   ;;  %vm1861_vm3 = vcmask 7168   ;;  %vm2579_vm4 = vmmov 0  }
  0x1e   :  { %2152 = vmatmul.mubr.msk.bf16.gmra.mxu0 %vm118_vm0, %v2400_v17  ;;  %811 = vmatprep.subr.bf16.mxu0 %v2670_v2  ;;  %v69_v20 = vshrl.u32 %v68_v19, 7 }
  0x1f   :  { %193 = vmatprep.mubr.bf16.mxu0 %v2574_v3  ;;  %420 = vmatpush1.bf16.msra.mxu1 %v2715_v12 }
  0x20   :  { %421 = vmatprep.subr.bf16.mxu1 %v2721_v13  ;;  %v74_v21 = vsub.s32 1, %v69_v20  ;;  %v70_v23 = vsub.s32 0, %v69_v20 }
  0x22   :  { %v75_v24 = vrot.slane %v66_v22, %v74_v21  ;;  %v71_v27 = vrot.slane %v66_v22, %v70_v23 }
  0x23   :  { %422 = vmatpush1.bf16.msra.mxu1 %v2729_v14 }
  0x24   :  { %679 = vmatprep.subr.bf16.mxu1 %v2670_v2 }
  0x26   :  { %2153 = vmatmul.mubr.msk.bf16.gmra.mxu0 %vm118_vm0, %v2401_v18 }
  0x27   :  { %571 = vmatprep.mubr.bf16.mxu0 %v2574_v3 }
  0xce   :  { %v165_v25 = vpop.f32.mrf.mxu0 }
  0xcf   :  { %v166_v32 = vadd.f32 %v165_v25, %v71_v27 }
  0xd0   :  { %v167_v26 = vpop.f32.mrf.mxu0 }
  0xd1   :  { %v2770_v28 = vadd.f32 %v167_v26, %v75_v24 }
  0xd2   :  { %v169_v29 = vpop.f32.mrf.mxu0 }
  0xd3   :  { %v2772_v30 = vadd.f32 %v169_v29, %v71_v27 }
  0xd4   :  { %v171_v31 = vpop.f32.mrf.mxu0 }
  0xd5   :  { %v2774_v33 = vadd.f32 %v171_v31, %v75_v24 }
  0xd6   :  { %v175_v34 = vpop.f32.mrf.mxu0  ;;  %v310_v35 = vpop.f32.mrf.mxu1 }
  0xd7   :  { %v2776_v36 = vadd.f32 %v175_v34, %v71_v27  ;;  %v318_v37 = vadd.f32 %v310_v35, %v166_v32 }
  0xd8   :  { %v177_v38 = vpop.f32.mrf.mxu0  ;;  %v312_v39 = vpop.f32.mrf.mxu1 }
  0xd9   :  { %2420 = vtanh.f32 %v318_v37  ;;  %v2778_v40 = vadd.f32 %v177_v38, %v75_v24  ;;  %v322_v4 = vmul.f32 0.5, %v318_v37 }
  0xda   :  { %v179_v41 = vpop.f32.mrf.mxu0  ;;  %v314_v42 = vpop.f32.mrf.mxu1 }
  0xdb   :  { %v2780_v43 = vadd.f32 %v179_v41, %v71_v27 }
  0xdc   :  { %v181_v44 = vpop.f32.mrf.mxu0  ;;  %v315_v45 = vpop.f32.mrf.mxu1 }
  0xdd   :  { %v2782_v46 = vadd.f32 %v181_v44, %v75_v24 }
  0xde   :  { %v185_v47 = vpop.f32.mrf.mxu0 }
  0xdf   :  { %v2784_v48 = vadd.f32 %v185_v47, %v71_v27 }
  0xe0   :  { %v187_v49 = vpop.f32.mrf.mxu0 }
  0xe1   :  { %v2786_v50 = vadd.f32 %v187_v49, %v75_v24 }
  0xe2   :  { %v189_v51 = vpop.f32.mrf.mxu0 }
  0xe3   :  { %v2788_v52 = vadd.f32 %v189_v51, %v71_v27 }
  0xe4   :  { %v191_v53 = vpop.f32.mrf.mxu0 }
  0xe5   :  { %v2790_v54 = vadd.f32 %v191_v53, %v75_v24 }
  0xe6   :  { %v2421_v55 = vpop.eup %2420  ;;  %v195_v56 = vpop.f32.mrf.mxu0 }
  0xe7   :  { %v2792_v57 = vadd.f32 %v195_v56, %v71_v27  ;;  %334 = vrot.lane.b32.xlu0 %v2421_v55, %s2576_s0 }
  0xe8   :  { %v197_v58 = vpop.f32.mrf.mxu0 }
  0xe9   :  { %v2795_v59 = vadd.f32 %v197_v58, %v75_v24 }
  0xea   :  { %v199_v60 = vpop.f32.mrf.mxu0 }
  0xeb   :  { %v2797_v61 = vadd.f32 %v199_v60, %v71_v27 }
  0xec   :  { %v201_v62 = vpop.f32.mrf.mxu0 }
  0xed   :  { %v202_v63 = vadd.f32 %v201_v62, %v75_v24 }
  0xef   :  { %v321_v0 = vadd.f32 %v312_v39, %v202_v63 }
  0xf1   :  { %2422 = vtanh.f32 %v321_v0  ;;  %v327_v10 = vmul.f32 0.5, %v321_v0 }
  0xf2   :  { %2424 = vtanh.f32 %v322_v4 }
  0xf3   :  { %2426 = vtanh.f32 %v327_v10 }
  0xfe   :  { %v2423_v1 = vpop.eup %2422 }
  0xff   :  { %351 = vrot.lane.b32.xlu0 %v2423_v1, %s2576_s0  ;;  %v2425_v6 = vpop.eup %2424 }
 0x100   :  { %v324_v8 = vmul.f32 0.5, %v2425_v6  ;;  %v2427_v18 = vpop.eup %2426 }
 0x101   :  { %v329_v19 = vmul.f32 0.5, %v2427_v18 }
 0x102   :  { %v325_v15 = vadd.f32 0.5, %v324_v8 }
 0x103   :  { %v330_v20 = vadd.f32 0.5, %v329_v19 }
 0x104   :  { %v332_v23 = vmul.f32 0.0, %v325_v15 }
 0x105   :  { %v349_v27 = vmul.f32 0.0, %v330_v20 }
 0x159   :  { %v335_v16 = vpop.permute.xlu0 %334 }
 0x15a   :  { %v337_v17 = vmul.f32 %v335_v16, %v325_v15 }
 0x15c   :  { %339 = vrot.lane.b32.xlu1 %v337_v17, %s2577_s3 }
 0x171   :  { %v352_v21 = vpop.permute.xlu0 %351 }
 0x172   :  { %v354_v22 = vmul.f32 %v352_v21, %v330_v20 }
 0x174   :  { %356 = vrot.lane.b32.xlu1 %v354_v22, %s2577_s3 }
 0x1ce   :  { %v340_v24 = vpop.permute.xlu1 %339 }
 0x1cf   :  { %v342_v25 = vadd.f32 %v340_v24, %v332_v23 }
 0x1d1   :  { %2428 = vtanh.f32 %v342_v25 }
 0x1de   :  { %v2429_v26 = vpop.eup %2428 }
 0x1df   :  { %345 = vrot.lane.b32.xlu0 %v2429_v26, %s2576_s0 }
 0x1e6   :  { %v357_v29 = vpop.permute.xlu1 %356 }
 0x1e7   :  { %v359_v31 = vadd.f32 %v357_v29, %v349_v27 }
 0x1e9   :  { %2430 = vtanh.f32 %v359_v31 }
 0x1f6   :  { %v2431_v32 = vpop.eup %2430 }
 0x1f7   :  { %362 = vrot.lane.b32.xlu1 %v2431_v32, %s2576_s0 }
 0x251   :  { %v346_v34 = vpop.permute.xlu0 %345 }
 0x252   :  { %v2804_v35 = vmul.f32 %v346_v34, %v325_v15 }
 0x254   :  { %395 = vrot.lane.b32.xlu0 %v2804_v35, %s2577_s3 }
 0x269   :  { %v363_v37 = vpop.permute.xlu1 %362 }
 0x26a   :  { %v2808_v38 = vmul.f32 %v363_v37, %v330_v20 }
 0x26c   :  { %399 = vrot.lane.b32.xlu1 %v2808_v38, %s2576_s0 }
 0x2c6   :  { %v396_v39 = vpop.permute.xlu0 %395 }
 0x2de   :  { %v400_v41 = vpop.permute.xlu1 %399 }
 0x2df   :  { %v402_v42 = vsel %vm118_vm0, %v396_v39, %v400_v41 }
 0x2e0   :  { %v403_v44 = vpack.c.bf16 %v402_v42, %v402_v42 }
 0x2e2   :  { %2163 = vmatmul.mubr.msk.bf16.vlgmr.msra.gmra.mxu1 %vm220_vm1, %v403_v44 }
 0x2e3   :  { %680 = vmatpush1.bf16.msra.mxu1 %v2680_v5  ;;  %703 = vmatprep.mubr.bf16.mxu1 %v2574_v3 }
 0x2e4   :  { %681 = vmatprep.subr.bf16.mxu1 %v2692_v7 }
 0x2e7   :  { %682 = vmatpush1.bf16.msra.mxu1 %v2700_v9 }
 0x2e8   :  { %683 = vmatprep.subr.bf16.mxu1 %v2709_v11 }
 0x2eb   :  { %684 = vmatpush1.bf16.msra.mxu1 %v2715_v12 }
 0x2ec   :  { %685 = vmatprep.subr.bf16.mxu1 %v2721_v13 }
 0x2ef   :  { %686 = vmatpush1.bf16.msra.mxu1 %v2729_v14 }
 0x2f0   :  { %937 = vmatprep.subr.bf16.mxu1 %v2670_v2 }
 0x3a2   :  { %v441_v45 = vpop.f32.mrf.mxu1 }
 0x3a3   :  { %v450_v47 = vadd.f32 %v441_v45, %v2772_v30 }
 0x3a4   :  { %v443_v49 = vpop.f32.mrf.mxu1 }
 0x3a5   :  { %2432 = vtanh.f32 %v450_v47  ;;  %v453_v51 = vadd.f32 %v443_v49, %v2795_v59  ;;  %v454_v60 = vmul.f32 0.5, %v450_v47 }
 0x3a6   :  { %v445_v53 = vpop.f32.mrf.mxu1 }
 0x3a7   :  { %2434 = vtanh.f32 %v453_v51  ;;  %v459_v62 = vmul.f32 0.5, %v453_v51 }
 0x3a8   :  { %v446_v55 = vpop.f32.mrf.mxu1  ;;  %2436 = vtanh.f32 %v454_v60 }
 0x3a9   :  { %2438 = vtanh.f32 %v459_v62 }
 0x3b2   :  { %v2433_v56 = vpop.eup %2432 }
 0x3b3   :  { %466 = vrot.lane.b32.xlu0 %v2433_v56, %s2576_s0 }
 0x3b4   :  { %v2435_v58 = vpop.eup %2434 }
 0x3b5   :  { %483 = vrot.lane.b32.xlu1 %v2435_v58, %s2576_s0  ;;  %v2437_v63 = vpop.eup %2436 }
 0x3b6   :  { %v2439_v0 = vpop.eup %2438  ;;  %v456_v30 = vmul.f32 0.5, %v2437_v63 }
 0x3b7   :  { %v461_v1 = vmul.f32 0.5, %v2439_v0 }
 0x3b8   :  { %v457_v4 = vadd.f32 0.5, %v456_v30 }
 0x3b9   :  { %v462_v8 = vadd.f32 0.5, %v461_v1 }
 0x3ba   :  { %v464_v16 = vmul.f32 %v457_v4, %v342_v25 }
 0x3bb   :  { %v481_v19 = vmul.f32 %v462_v8, %v359_v31 }
 0x425   :  { %v467_v6 = vpop.permute.xlu0 %466 }
 0x426   :  { %v469_v59 = vmul.f32 %v467_v6, %v457_v4 }
 0x427   :  { %v484_v10 = vpop.permute.xlu1 %483 }
 0x428   :  { %471 = vrot.lane.b32.xlu0 %v469_v59, %s2577_s3  ;;  %v486_v15 = vmul.f32 %v484_v10, %v462_v8 }
 0x42a   :  { %488 = vrot.lane.b32.xlu1 %v486_v15, %s2577_s3 }
 0x49a   :  { %v472_v17 = vpop.permute.xlu0 %471 }
 0x49b   :  { %v474_v18 = vadd.f32 %v472_v17, %v464_v16 }
 0x49c   :  { %v489_v20 = vpop.permute.xlu1 %488 }
 0x49d   :  { %2440 = vtanh.f32 %v474_v18  ;;  %v491_v21 = vadd.f32 %v489_v20, %v481_v19 }
 0x49f   :  { %2442 = vtanh.f32 %v491_v21 }
 0x4aa   :  { %v2441_v22 = vpop.eup %2440 }
 0x4ab   :  { %477 = vrot.lane.b32.xlu0 %v2441_v22, %s2576_s0 }
 0x4ac   :  { %v2443_v23 = vpop.eup %2442 }
 0x4ad   :  { %494 = vrot.lane.b32.xlu1 %v2443_v23, %s2576_s0 }
 0x51d   :  { %v478_v24 = vpop.permute.xlu0 %477 }
 0x51e   :  { %v2831_v26 = vmul.f32 %v478_v24, %v457_v4 }
 0x51f   :  { %v495_v27 = vpop.permute.xlu1 %494 }
 0x520   :  { %527 = vrot.lane.b32.xlu0 %v2831_v26, %s2577_s3  ;;  %v2835_v25 = vmul.f32 %v495_v27, %v462_v8 }
 0x522   :  { %531 = vrot.lane.b32.xlu1 %v2835_v25, %s2576_s0 }
 0x592   :  { %v528_v29 = vpop.permute.xlu0 %527 }
 0x594   :  { %v532_v31 = vpop.permute.xlu1 %531 }
 0x595   :  { %v534_v32 = vsel %vm118_vm0, %v528_v29, %v532_v31 }
 0x596   :  { %v535_v34 = vpack.c.bf16 %v534_v32, %v534_v32 }
 0x598   :  { %2166 = vmatmul.mubr.msk.bf16.vlgmr.msra.gmra.mxu0 %vm220_vm1, %v535_v34 }
 0x599   :  { %812 = vmatpush1.bf16.msra.mxu0 %v2680_v5  ;;  %835 = vmatprep.mubr.bf16.mxu0 %v2574_v3 }
 0x59a   :  { %813 = vmatprep.subr.bf16.mxu0 %v2692_v7 }
 0x59d   :  { %814 = vmatpush1.bf16.msra.mxu0 %v2700_v9 }
 0x59e   :  { %815 = vmatprep.subr.bf16.mxu0 %v2709_v11 }
 0x5a1   :  { %816 = vmatpush1.bf16.msra.mxu0 %v2715_v12 }
 0x5a2   :  { %817 = vmatprep.subr.bf16.mxu0 %v2721_v13 }
 0x5a5   :  { %818 = vmatpush1.bf16.msra.mxu0 %v2729_v14 }
 0x5a6   :  { %1063 = vmatprep.subr.bf16.mxu0 %v2670_v2 }
 0x658   :  { %v573_v37 = vpop.f32.mrf.mxu0 }
 0x659   :  { %v582_v39 = vadd.f32 %v573_v37, %v2776_v36 }
 0x65a   :  { %v575_v41 = vpop.f32.mrf.mxu0 }
 0x65b   :  { %2444 = vtanh.f32 %v582_v39  ;;  %v585_v42 = vadd.f32 %v575_v41, %v2790_v54  ;;  %v586_v51 = vmul.f32 0.5, %v582_v39 }
 0x65c   :  { %v577_v44 = vpop.f32.mrf.mxu0 }
 0x65d   :  { %2446 = vtanh.f32 %v585_v42  ;;  %v591_v53 = vmul.f32 0.5, %v585_v42 }
 0x65e   :  { %v578_v45 = vpop.f32.mrf.mxu0  ;;  %2448 = vtanh.f32 %v586_v51 }
 0x65f   :  { %2450 = vtanh.f32 %v591_v53 }
 0x668   :  { %v2445_v47 = vpop.eup %2444 }
 0x669   :  { %598 = vrot.lane.b32.xlu0 %v2445_v47, %s2576_s0 }
 0x66a   :  { %v2447_v49 = vpop.eup %2446 }
 0x66b   :  { %615 = vrot.lane.b32.xlu1 %v2447_v49, %s2576_s0  ;;  %v2449_v55 = vpop.eup %2448 }
 0x66c   :  { %v2451_v56 = vpop.eup %2450  ;;  %v588_v36 = vmul.f32 0.5, %v2449_v55 }
 0x66d   :  { %v593_v58 = vmul.f32 0.5, %v2451_v56 }
 0x66e   :  { %v589_v60 = vadd.f32 0.5, %v588_v36 }
 0x66f   :  { %v594_v63 = vadd.f32 0.5, %v593_v58 }
 0x670   :  { %v596_v1 = vmul.f32 %v589_v60, %v474_v18 }
 0x671   :  { %v613_v59 = vmul.f32 %v594_v63, %v491_v21 }
 0x6db   :  { %v599_v62 = vpop.permute.xlu0 %598 }
 0x6dc   :  { %v601_v54 = vmul.f32 %v599_v62, %v589_v60 }
 0x6dd   :  { %v616_v0 = vpop.permute.xlu1 %615 }
 0x6de   :  { %603 = vrot.lane.b32.xlu0 %v601_v54, %s2577_s3  ;;  %v618_v30 = vmul.f32 %v616_v0, %v594_v63 }
 0x6e0   :  { %620 = vrot.lane.b32.xlu1 %v618_v30, %s2577_s3 }
 0x750   :  { %v604_v4 = vpop.permute.xlu0 %603 }
 0x751   :  { %v606_v6 = vadd.f32 %v604_v4, %v596_v1 }
 0x752   :  { %v621_v8 = vpop.permute.xlu1 %620 }
 0x753   :  { %2452 = vtanh.f32 %v606_v6  ;;  %v623_v10 = vadd.f32 %v621_v8, %v613_v59 }
 0x755   :  { %2454 = vtanh.f32 %v623_v10 }
 0x760   :  { %v2453_v15 = vpop.eup %2452 }
 0x761   :  { %609 = vrot.lane.b32.xlu0 %v2453_v15, %s2576_s0 }
 0x762   :  { %v2455_v16 = vpop.eup %2454 }
 0x763   :  { %626 = vrot.lane.b32.xlu1 %v2455_v16, %s2576_s0 }
 0x7d3   :  { %v610_v17 = vpop.permute.xlu0 %609 }
 0x7d4   :  { %v2858_v19 = vmul.f32 %v610_v17, %v589_v60 }
 0x7d5   :  { %v627_v20 = vpop.permute.xlu1 %626 }
 0x7d6   :  { %659 = vrot.lane.b32.xlu0 %v2858_v19, %s2577_s3  ;;  %v2862_v18 = vmul.f32 %v627_v20, %v594_v63 }
 0x7d8   :  { %663 = vrot.lane.b32.xlu1 %v2862_v18, %s2576_s0 }
 0x848   :  { %v660_v21 = vpop.permute.xlu0 %659 }
 0x84a   :  { %v664_v22 = vpop.permute.xlu1 %663 }
 0x84b   :  { %v666_v23 = vsel %vm118_vm0, %v660_v21, %v664_v22 }
 0x84c   :  { %v667_v24 = vpack.c.bf16 %v666_v23, %v666_v23 }
 0x84e   :  { %2169 = vmatmul.mubr.msk.bf16.vlgmr.msra.gmra.mxu1 %vm220_vm1, %v667_v24 }
 0x84f   :  { %938 = vmatpush1.bf16.msra.mxu1 %v2680_v5  ;;  %961 = vmatprep.mubr.bf16.mxu1 %v2574_v3 }
 0x850   :  { %939 = vmatprep.subr.bf16.mxu1 %v2692_v7 }
 0x853   :  { %940 = vmatpush1.bf16.msra.mxu1 %v2700_v9 }
 0x854   :  { %941 = vmatprep.subr.bf16.mxu1 %v2709_v11 }
 0x857   :  { %942 = vmatpush1.bf16.msra.mxu1 %v2715_v12 }
 0x858   :  { %943 = vmatprep.subr.bf16.mxu1 %v2721_v13 }
 0x85b   :  { %944 = vmatpush1.bf16.msra.mxu1 %v2729_v14 }
 0x85c   :  { %1189 = vmatprep.subr.bf16.mxu1 %v2670_v2 }
 0x90e   :  { %v705_v27 = vpop.f32.mrf.mxu1 }
 0x90f   :  { %v714_v29 = vadd.f32 %v705_v27, %v2780_v43 }
 0x910   :  { %v707_v31 = vpop.f32.mrf.mxu1 }
 0x911   :  { %2456 = vtanh.f32 %v714_v29  ;;  %v717_v32 = vadd.f32 %v707_v31, %v2786_v50  ;;  %v718_v42 = vmul.f32 0.5, %v714_v29 }
 0x912   :  { %v709_v34 = vpop.f32.mrf.mxu1 }
 0x913   :  { %2458 = vtanh.f32 %v717_v32  ;;  %v723_v44 = vmul.f32 0.5, %v717_v32 }
 0x914   :  { %v710_v37 = vpop.f32.mrf.mxu1  ;;  %2460 = vtanh.f32 %v718_v42 }
 0x915   :  { %2462 = vtanh.f32 %v723_v44 }
 0x91e   :  { %v2457_v39 = vpop.eup %2456 }
 0x91f   :  { %730 = vrot.lane.b32.xlu0 %v2457_v39, %s2576_s0 }
 0x920   :  { %v2459_v41 = vpop.eup %2458 }
 0x921   :  { %747 = vrot.lane.b32.xlu1 %v2459_v41, %s2576_s0  ;;  %v2461_v2 = vpop.eup %2460 }
 0x922   :  { %v2463_v45 = vpop.eup %2462  ;;  %v720_v43 = vmul.f32 0.5, %v2461_v2 }
 0x923   :  { %v725_v47 = vmul.f32 0.5, %v2463_v45 }
 0x924   :  { %v721_v49 = vadd.f32 0.5, %v720_v43 }
 0x925   :  { %v726_v53 = vadd.f32 0.5, %v725_v47 }
 0x926   :  { %v728_v36 = vmul.f32 %v721_v49, %v606_v6 }
 0x927   :  { %v745_v62 = vmul.f32 %v726_v53, %v623_v10 }
 0x991   :  { %v731_v51 = vpop.permute.xlu0 %730 }
 0x992   :  { %v733_v50 = vmul.f32 %v731_v51, %v721_v49 }
 0x993   :  { %v748_v55 = vpop.permute.xlu1 %747 }
 0x994   :  { %735 = vrot.lane.b32.xlu0 %v733_v50, %s2577_s3  ;;  %v750_v56 = vmul.f32 %v748_v55, %v726_v53 }
 0x996   :  { %752 = vrot.lane.b32.xlu1 %v750_v56, %s2577_s3 }
 0xa06   :  { %v736_v58 = vpop.permute.xlu0 %735 }
 0xa07   :  { %v738_v60 = vadd.f32 %v736_v58, %v728_v36 }
 0xa08   :  { %v753_v54 = vpop.permute.xlu1 %752 }
 0xa09   :  { %2464 = vtanh.f32 %v738_v60  ;;  %v755_v63 = vadd.f32 %v753_v54, %v745_v62 }
 0xa0b   :  { %2466 = vtanh.f32 %v755_v63 }
 0xa16   :  { %v2465_v0 = vpop.eup %2464 }
 0xa17   :  { %741 = vrot.lane.b32.xlu0 %v2465_v0, %s2576_s0 }
 0xa18   :  { %v2467_v30 = vpop.eup %2466 }
 0xa19   :  { %758 = vrot.lane.b32.xlu1 %v2467_v30, %s2576_s0 }
 0xa89   :  { %v742_v1 = vpop.permute.xlu0 %741 }
 0xa8a   :  { %v2885_v4 = vmul.f32 %v742_v1, %v721_v49 }
 0xa8b   :  { %v759_v59 = vpop.permute.xlu1 %758 }
 0xa8c   :  { %791 = vrot.lane.b32.xlu0 %v2885_v4, %s2577_s3  ;;  %v2889_v6 = vmul.f32 %v759_v59, %v726_v53 }
 0xa8e   :  { %795 = vrot.lane.b32.xlu1 %v2889_v6, %s2576_s0 }
 0xafe   :  { %v792_v8 = vpop.permute.xlu0 %791 }
 0xb00   :  { %v796_v10 = vpop.permute.xlu1 %795 }
 0xb01   :  { %v798_v15 = vsel %vm118_vm0, %v792_v8, %v796_v10 }
 0xb02   :  { %v799_v16 = vpack.c.bf16 %v798_v15, %v798_v15 }
 0xb04   :  { %2172 = vmatmul.mubr.msk.bf16.vlgmr.msra.gmra.mxu0 %vm220_vm1, %v799_v16 }
 0xb05   :  { %1064 = vmatpush1.bf16.msra.mxu0 %v2680_v5  ;;  %1087 = vmatprep.mubr.bf16.mxu0 %v2574_v3 }
 0xb06   :  { %1065 = vmatprep.subr.bf16.mxu0 %v2692_v7 }
 0xb09   :  { %1066 = vmatpush1.bf16.msra.mxu0 %v2700_v9 }
 0xb0a   :  { %1067 = vmatprep.subr.bf16.mxu0 %v2709_v11 }
 0xb0d   :  { %1068 = vmatpush1.bf16.msra.mxu0 %v2715_v12 }
 0xb0e   :  { %1069 = vmatprep.subr.bf16.mxu0 %v2721_v13 }
 0xb11   :  { %1070 = vmatpush1.bf16.msra.mxu0 %v2729_v14 }
 0xbc4   :  { %v837_v17 = vpop.f32.mrf.mxu0 }
 0xbc5   :  { %v845_v20 = vadd.f32 %v837_v17, %v2784_v48 }
 0xbc6   :  { %v839_v21 = vpop.f32.mrf.mxu0 }
 0xbc7   :  { %2468 = vtanh.f32 %v845_v20  ;;  %v847_v22 = vadd.f32 %v839_v21, %v2782_v46  ;;  %v848_v31 = vmul.f32 0.5, %v845_v20 }
 0xbc8   :  { %v841_v23 = vpop.f32.mrf.mxu0 }
 0xbc9   :  { %2470 = vtanh.f32 %v847_v22  ;;  %v853_v32 = vmul.f32 0.5, %v847_v22 }
 0xbca   :  { %v842_v24 = vpop.f32.mrf.mxu0  ;;  %2472 = vtanh.f32 %v848_v31 }
 0xbcb   :  { %2474 = vtanh.f32 %v853_v32 }
 0xbd4   :  { %v2469_v27 = vpop.eup %2468 }
 0xbd5   :  { %860 = vrot.lane.b32.xlu0 %v2469_v27, %s2576_s0 }
 0xbd6   :  { %v2471_v29 = vpop.eup %2470 }
 0xbd7   :  { %877 = vrot.lane.b32.xlu1 %v2471_v29, %s2576_s0  ;;  %v2473_v34 = vpop.eup %2472 }
 0xbd8   :  { %v2475_v37 = vpop.eup %2474  ;;  %v850_v48 = vmul.f32 0.5, %v2473_v34 }
 0xbd9   :  { %v855_v39 = vmul.f32 0.5, %v2475_v37 }
 0xbda   :  { %v851_v41 = vadd.f32 0.5, %v850_v48 }
 0xbdb   :  { %v856_v44 = vadd.f32 0.5, %v855_v39 }
 0xbdc   :  { %v858_v43 = vmul.f32 %v851_v41, %v738_v60 }
 0xbdd   :  { %v875_v51 = vmul.f32 %v856_v44, %v755_v63 }
 0xc47   :  { %v861_v42 = vpop.permute.xlu0 %860 }
 0xc48   :  { %v863_v46 = vmul.f32 %v861_v42, %v851_v41 }
 0xc49   :  { %v878_v2 = vpop.permute.xlu1 %877 }
 0xc4a   :  { %865 = vrot.lane.b32.xlu0 %v863_v46, %s2577_s3  ;;  %v880_v45 = vmul.f32 %v878_v2, %v856_v44 }
 0xc4c   :  { %882 = vrot.lane.b32.xlu1 %v880_v45, %s2577_s3 }
 0xcbc   :  { %v866_v47 = vpop.permute.xlu0 %865 }
 0xcbd   :  { %v868_v49 = vadd.f32 %v866_v47, %v858_v43 }
 0xcbe   :  { %v883_v50 = vpop.permute.xlu1 %882 }
 0xcbf   :  { %2476 = vtanh.f32 %v868_v49  ;;  %v885_v53 = vadd.f32 %v883_v50, %v875_v51 }
 0xcc1   :  { %2478 = vtanh.f32 %v885_v53 }
 0xccc   :  { %v2477_v55 = vpop.eup %2476 }
 0xccd   :  { %871 = vrot.lane.b32.xlu0 %v2477_v55, %s2576_s0 }
 0xcce   :  { %v2479_v56 = vpop.eup %2478 }
 0xccf   :  { %888 = vrot.lane.b32.xlu1 %v2479_v56, %s2576_s0 }
 0xd3f   :  { %v872_v36 = vpop.permute.xlu0 %871 }
 0xd40   :  { %v2911_v58 = vmul.f32 %v872_v36, %v851_v41 }
 0xd41   :  { %v889_v62 = vpop.permute.xlu1 %888 }
 0xd42   :  { %917 = vrot.lane.b32.xlu0 %v2911_v58, %s2577_s3  ;;  %v2915_v60 = vmul.f32 %v889_v62, %v856_v44 }
 0xd44   :  { %921 = vrot.lane.b32.xlu1 %v2915_v60, %s2576_s0 }
 0xdb4   :  { %v918_v54 = vpop.permute.xlu0 %917 }
 0xdb6   :  { %v922_v63 = vpop.permute.xlu1 %921 }
 0xdb7   :  { %v924_v0 = vsel %vm118_vm0, %v918_v54, %v922_v63 }
 0xdb8   :  { %v925_v30 = vpack.c.bf16 %v924_v0, %v924_v0 }
 0xdba   :  { %2175 = vmatmul.mubr.msk.bf16.vlgmr.msra.gmra.mxu1 %vm220_vm1, %v925_v30 }
 0xdbb   :  { %1190 = vmatpush1.bf16.msra.mxu1 %v2680_v5  ;;  %1213 = vmatprep.mubr.bf16.mxu1 %v2574_v3 }
 0xdbc   :  { %1191 = vmatprep.subr.bf16.mxu1 %v2692_v7 }
 0xdbf   :  { %1192 = vmatpush1.bf16.msra.mxu1 %v2700_v9 }
 0xdc0   :  { %1193 = vmatprep.subr.bf16.mxu1 %v2709_v11 }
 0xdc3   :  { %1194 = vmatpush1.bf16.msra.mxu1 %v2715_v12 }
 0xdc4   :  { %1195 = vmatprep.subr.bf16.mxu1 %v2721_v13 }
 0xdc7   :  { %1196 = vmatpush1.bf16.msra.mxu1 %v2729_v14 }
 0xe7a   :  { %v963_v1 = vpop.f32.mrf.mxu1 }
 0xe7b   :  { %v971_v59 = vadd.f32 %v963_v1, %v2788_v52 }
 0xe7c   :  { %v965_v8 = vpop.f32.mrf.mxu1 }
 0xe7d   :  { %2480 = vtanh.f32 %v971_v59  ;;  %v973_v5 = vadd.f32 %v965_v8, %v2778_v40  ;;  %v974_v11 = vmul.f32 0.5, %v971_v59 }
 0xe7e   :  { %v967_v3 = vpop.f32.mrf.mxu1 }
 0xe7f   :  { %2482 = vtanh.f32 %v973_v5  ;;  %v979_v12 = vmul.f32 0.5, %v973_v5 }
 0xe80   :  { %v968_v7 = vpop.f32.mrf.mxu1  ;;  %2484 = vtanh.f32 %v974_v11 }
 0xe81   :  { %2486 = vtanh.f32 %v979_v12 }
 0xe8a   :  { %v2481_v10 = vpop.eup %2480 }
 0xe8b   :  { %986 = vrot.lane.b32.xlu0 %v2481_v10, %s2576_s0 }
 0xe8c   :  { %v2483_v9 = vpop.eup %2482 }
 0xe8d   :  { %1003 = vrot.lane.b32.xlu1 %v2483_v9, %s2576_s0  ;;  %v2485_v13 = vpop.eup %2484 }
 0xe8e   :  { %v2487_v14 = vpop.eup %2486  ;;  %v976_v52 = vmul.f32 0.5, %v2485_v13 }
 0xe8f   :  { %v981_v15 = vmul.f32 0.5, %v2487_v14 }
 0xe90   :  { %v977_v16 = vadd.f32 0.5, %v976_v52 }
 0xe91   :  { %v982_v20 = vadd.f32 0.5, %v981_v15 }
 0xe92   :  { %v984_v23 = vmul.f32 %v977_v16, %v868_v49 }
 0xe93   :  { %v1001_v29 = vmul.f32 %v982_v20, %v885_v53 }
 0xefd   :  { %v987_v17 = vpop.permute.xlu0 %986 }
 0xefe   :  { %v989_v40 = vmul.f32 %v987_v17, %v977_v16 }
 0xeff   :  { %v1004_v21 = vpop.permute.xlu1 %1003 }
 0xf00   :  { %991 = vrot.lane.b32.xlu0 %v989_v40, %s2577_s3  ;;  %v1006_v22 = vmul.f32 %v1004_v21, %v982_v20 }
 0xf02   :  { %1008 = vrot.lane.b32.xlu1 %v1006_v22, %s2577_s3 }
 0xf72   :  { %v992_v24 = vpop.permute.xlu0 %991 }
 0xf73   :  { %v994_v27 = vadd.f32 %v992_v24, %v984_v23 }
 0xf74   :  { %v1009_v31 = vpop.permute.xlu1 %1008 }
 0xf75   :  { %2488 = vtanh.f32 %v994_v27  ;;  %v1011_v32 = vadd.f32 %v1009_v31, %v1001_v29 }
 0xf77   :  { %2490 = vtanh.f32 %v1011_v32 }
 0xf82   :  { %v2489_v34 = vpop.eup %2488 }
 0xf83   :  { %997 = vrot.lane.b32.xlu0 %v2489_v34, %s2576_s0 }
 0xf84   :  { %v2491_v37 = vpop.eup %2490 }
 0xf85   :  { %1014 = vrot.lane.b32.xlu1 %v2491_v37, %s2576_s0 }
 0xff5   :  { %v998_v48 = vpop.permute.xlu0 %997 }
 0xff6   :  { %v2937_v39 = vmul.f32 %v998_v48, %v977_v16 }
 0xff7   :  { %v1015_v41 = vpop.permute.xlu1 %1014 }
 0xff8   :  { %1043 = vrot.lane.b32.xlu0 %v2937_v39, %s2577_s3  ;;  %v2941_v42 = vmul.f32 %v1015_v41, %v982_v20 }
 0xffa   :  { %1047 = vrot.lane.b32.xlu1 %v2941_v42, %s2576_s0 }
0x106a   :  { %v1044_v46 = vpop.permute.xlu0 %1043 }
0x106c   :  { %v1048_v44 = vpop.permute.xlu1 %1047 }
0x106d   :  { %v1050_v2 = vsel %vm118_vm0, %v1044_v46, %v1048_v44 }
0x106e   :  { %v1051_v45 = vpack.c.bf16 %v1050_v2, %v1050_v2 }
0x1070   :  { %2178 = vmatmul.mubr.msk.bf16.vlgmr.msra.gmra.mxu0 %vm220_vm1, %v1051_v45 }
0x1130   :  { %v1089_v43 = vpop.f32.mrf.mxu0 }
0x1131   :  { %v1097_v47 = vadd.f32 %v1089_v43, %v2792_v57 }
0x1132   :  { %v1091_v49 = vpop.f32.mrf.mxu0 }
0x1133   :  { %2492 = vtanh.f32 %v1097_v47  ;;  %v1099_v51 = vadd.f32 %v1091_v49, %v2774_v33  ;;  %v1100_v36 = vmul.f32 0.5, %v1097_v47 }
0x1134   :  { %v1093_v50 = vpop.f32.mrf.mxu0 }
0x1135   :  { %2494 = vtanh.f32 %v1099_v51  ;;  %v1105_v62 = vmul.f32 0.5, %v1099_v51  ;;  %v2164_v50 = vld [vmem:[%s3228_s1 + $0x8] sm:$0xff] }
0x1136   :  { %v1094_v53 = vpop.f32.mrf.mxu0  ;;  %2496 = vtanh.f32 %v1100_v36  ;;  %v2170_v36 = vld [vmem:[%s3228_s1 + $0x18] sm:$0xff] }
0x1137   :  { %2498 = vtanh.f32 %v1105_v62  ;;  %v366_v53 = vld [vmem:[%s3228_s1] sm:$0xff]  ;;  %v2168_v62 = vld [vmem:[%s3228_s1 + $0x28] sm:$0xff] }
0x1140   :  { %v2493_v55 = vpop.eup %2492 }
0x1141   :  { %1112 = vrot.lane.b32.xlu0 %v2493_v55, %s2576_s0  ;;  %v2167_v55 = vld [vmem:[%s3228_s1 + $0x10] sm:$0xff] }
0x1142   :  { %v2495_v56 = vpop.eup %2494 }
0x1143   :  { %1129 = vrot.lane.b32.xlu1 %v2495_v56, %s2576_s0  ;;  %v2497_v54 = vpop.eup %2496  ;;  %v2171_v56 = vld [vmem:[%s3228_s1 + $0x20] sm:$0xff] }
0x1144   :  { %v2499_v63 = vpop.eup %2498  ;;  %v1102_v57 = vmul.f32 0.5, %v2497_v54  ;;  %v2165_v54 = vld [vmem:[%s3228_s1 + $0x30] sm:$0xff] }
0x1145   :  { %v1107_v0 = vmul.f32 0.5, %v2499_v63  ;;  %v2162_v63 = vld [vmem:[%s3228_s1 + $0x38] sm:$0xff] }
0x1146   :  { %v1103_v30 = vadd.f32 0.5, %v1102_v57 }
0x1147   :  { %v1108_v59 = vadd.f32 0.5, %v1107_v0 }
0x1148   :  { %v1110_v3 = vmul.f32 %v1103_v30, %v994_v27 }
0x1149   :  { %v1127_v9 = vmul.f32 %v1108_v59, %v1011_v32 }
0x11b3   :  { %v1113_v1 = vpop.permute.xlu0 %1112 }
0x11b4   :  { %v1115_v33 = vmul.f32 %v1113_v1, %v1103_v30 }
0x11b5   :  { %v1130_v8 = vpop.permute.xlu1 %1129 }
0x11b6   :  { %1117 = vrot.lane.b32.xlu0 %v1115_v33, %s2577_s3  ;;  %v1132_v5 = vmul.f32 %v1130_v8, %v1108_v59 }
0x11b8   :  { %1134 = vrot.lane.b32.xlu1 %v1132_v5, %s2577_s3 }
0x1228   :  { %v1118_v7 = vpop.permute.xlu0 %1117 }
0x1229   :  { %v2953_v10 = vadd.f32 %v1118_v7, %v1110_v3 }
0x122a   :  { %v1135_v11 = vpop.permute.xlu1 %1134 }
0x122b   :  { %2500 = vtanh.f32 %v2953_v10  ;;  %v2956_v12 = vadd.f32 %v1135_v11, %v1127_v9 }
0x122d   :  { %2502 = vtanh.f32 %v2956_v12 }
0x1238   :  { %v2501_v13 = vpop.eup %2500 }
0x1239   :  { %1123 = vrot.lane.b32.xlu0 %v2501_v13, %s2576_s0 }
0x123a   :  { %v2503_v14 = vpop.eup %2502 }
0x123b   :  { %1140 = vrot.lane.b32.xlu1 %v2503_v14, %s2576_s0 }
0x12ab   :  { %v1124_v52 = vpop.permute.xlu0 %1123 }
0x12ac   :  { %v2961_v15 = vmul.f32 %v1124_v52, %v1103_v30 }
0x12ad   :  { %v1141_v16 = vpop.permute.xlu1 %1140 }
0x12ae   :  { %1169 = vrot.lane.b32.xlu0 %v2961_v15, %s2577_s3  ;;  %v2965_v17 = vmul.f32 %v1141_v16, %v1108_v59 }
0x12b0   :  { %1173 = vrot.lane.b32.xlu1 %v2965_v17, %s2576_s0 }
0x1320   :  { %v1170_v40 = vpop.permute.xlu0 %1169 }
0x1322   :  { %v1174_v20 = vpop.permute.xlu1 %1173 }
0x1323   :  { %v1176_v21 = vsel %vm118_vm0, %v1170_v40, %v1174_v20 }
0x1324   :  { %v1177_v22 = vpack.c.bf16 %v1176_v21, %v1176_v21 }
0x1326   :  { %2181 = vmatmul.mubr.msk.bf16.vlgmr.msra.gmra.mxu1 %vm220_vm1, %v1177_v22 }
0x13e6   :  { %v1215_v23 = vpop.f32.mrf.mxu1 }
0x13e7   :  { %v1223_v24 = vadd.f32 %v1215_v23, %v2797_v61 }
0x13e8   :  { %v1217_v27 = vpop.f32.mrf.mxu1 }
0x13e9   :  { %2504 = vtanh.f32 %v1223_v24  ;;  %v1225_v29 = vadd.f32 %v1217_v27, %v2770_v28  ;;  %v1226_v48 = vmul.f32 0.5, %v1223_v24 }
0x13ea   :  { %v1219_v31 = vpop.f32.mrf.mxu1 }
0x13eb   :  { %2506 = vtanh.f32 %v1225_v29  ;;  %v1231_v41 = vmul.f32 0.5, %v1225_v29 }
0x13ec   :  { %v1220_v32 = vpop.f32.mrf.mxu1  ;;  %2508 = vtanh.f32 %v1226_v48 }
0x13ed   :  { %2510 = vtanh.f32 %v1231_v41  ;;  %v2406_v32 = vld [vmem:[%s3232_s5] sm:$0xff]  }
0x13f6   :  { %v2505_v34 = vpop.eup %2504 }
0x13f7   :  { %1238 = vrot.lane.b32.xlu1 %v2505_v34, %s2576_s0  ;;  %v2407_v34 = vld [vmem:[%s3232_s5 + $0x30] sm:$0xff]  }
0x13f8   :  { %v2507_v37 = vpop.eup %2506 }
0x13f9   :  { %1255 = vrot.lane.b32.xlu0 %v2507_v37, %s2576_s0  ;;  %v2509_v46 = vpop.eup %2508 }
0x13fa   :  { %v2511_v44 = vpop.eup %2510  ;;  %v1228_v61 = vmul.f32 0.5, %v2509_v46 }
0x13fb   :  { %v1233_v2 = vmul.f32 0.5, %v2511_v44  ;;  %v2408_v44 = vld [vmem:[%s3232_s5 + $0x28] sm:$0xff]  }
0x13fc   :  { %v2975_v45 = vadd.f32 0.5, %v1228_v61 }
0x13fd   :  { %v2978_v47 = vadd.f32 0.5, %v1233_v2 }
0x13fe   :  { %v1236_v57 = vmul.f32 %v2975_v45, %v2953_v10 }
0x13ff   :  { %v1253_v1 = vmul.f32 %v2978_v47, %v2956_v12 }
0x1469   :  { %v1239_v28 = vpop.permute.xlu1 %1238 }
0x146a   :  { %v1241_v43 = vmul.f32 %v1239_v28, %v2975_v45  ;;  %v2409_v28 = vld [vmem:[%s3232_s5 + $0x58] sm:$0xff]  }
0x146b   :  { %v1256_v49 = vpop.permute.xlu0 %1255 }
0x146c   :  { %1243 = vrot.lane.b32.xlu1 %v1241_v43, %s2577_s3  ;;  %v1258_v51 = vmul.f32 %v1256_v49, %v2978_v47  ;;  %v2410_v43 = vld [vmem:[%s3232_s5 + $0x20] sm:$0xff]  }
0x146e   :  { %1260 = vrot.lane.b32.xlu0 %v1258_v51, %s2577_s3 }
0x1470   :  { %502 = vperm.xlu1 %2379, %v2164_v50  }
0x1472   :  { %369 = vperm.xlu0 %2378, %v366_v53  }
0x1474   :  { %634 = vperm.xlu1 %2379, %v2167_v55  }
0x1476   :  { %1285 = vperm.xlu0 %2378, %v366_v53  }
0x1478   :  { %1033 = vperm.xlu1 %2379, %v2167_v55  }
0x147a   :  { %1159 = vperm.xlu0 %2378, %v2164_v50  }
0x147c   :  { %780 = vperm.xlu1 %2379, %v2171_v56  }
0x147e   :  { %766 = vperm.xlu0 %2378, %v2170_v36  }
0x1480   :  { %648 = vperm.xlu1 %2379, %v2168_v62  }
0x1482   :  { %516 = vperm.xlu0 %2378, %v2165_v54  }
0x1486   :  { %895 = vperm.xlu0 %2378, %v2171_v56  }
0x148a   :  { %1021 = vperm.xlu0 %2378, %v2168_v62  }
0x148e   :  { %383 = vperm.xlu0 %2378, %v2162_v63  }
0x14de   :  { %v1244_v0 = vpop.permute.xlu1 %1243 }
0x14df   :  { %v1246_v30 = vadd.f32 %v1244_v0, %v1236_v57 }
0x14e0   :  { %v1261_v33 = vpop.permute.xlu0 %1260 }
0x14e1   :  { %2512 = vtanh.f32 %v1246_v30  ;;  %v1263_v59 = vadd.f32 %v1261_v33, %v1253_v1 }
0x14e3   :  { %2514 = vtanh.f32 %v1263_v59 }
0x14eb   :  { %v503_v8 = vpop.permute.xlu1 %502 }
0x14ec   :  { %v505_v11 = vmul.f32 %v503_v8, %v2831_v26 }
0x14ed   :  { %v370_v3 = vpop.permute.xlu0 %369 }
0x14ee   :  { %v2513_v5 = vpop.eup %2512  ;;  %v372_v26 = vmul.f32 %v370_v3, %v2804_v35 }
0x14ef   :  { %v635_v7 = vpop.permute.xlu1 %634  ;;  %1249 = vrot.lane.b32.xlu0 %v2513_v5, %s2576_s0 }
0x14f0   :  { %v2515_v9 = vpop.eup %2514  ;;  %v637_v20 = vmul.f32 %v635_v7, %v2858_v19 }
0x14f1   :  { %v1286_v13 = vpop.permute.xlu0 %1285  ;;  %1266 = vrot.lane.b32.xlu1 %v2515_v9, %s2576_s0  ;;  %v2411_v9 = vld [vmem:[%s3232_s5 + $0x50] sm:$0xff]  }
0x14f3   :  { %v1034_v10 = vpop.permute.xlu1 %1033  ;;  %507 = vrot.lane.b32.xlu0 %v505_v11, %s2577_s3 }
0x14f5   :  { %v1160_v12 = vpop.permute.xlu0 %1159  ;;  %907 = vperm.xlu1 %2379, %v2170_v36  }
0x14f6   :  { %v1162_v14 = vmul.f32 %v1160_v12, %v2965_v17  ;;  %v1036_v17 = vmul.f32 %v1034_v10, %v2941_v42 }
0x14f7   :  { %v781_v52 = vpop.permute.xlu1 %780 }
0x14f8   :  { %1164 = vrot.lane.b32.xlu0 %v1162_v14, %s2576_s0  ;;  %v783_v16 = vmul.f32 %v781_v52, %v2889_v6 }
0x14f9   :  { %1147 = vperm.xlu1 %2379, %v2165_v54   ;;  %v767_v40 = vpop.permute.xlu0 %766 }
0x14fa   :  { %v769_v22 = vmul.f32 %v767_v40, %v2885_v4  ;;  %v2402_v4 = vld [vmem:[%s3232_s5 + $0x18] sm:$0xff]  }
0x14fb   :  { %2295 = vmatprep.subr.bf16.mxu0 %v2402_v4  ;;  %v649_v29 = vpop.permute.xlu1 %648 }
0x14fc   :  { %785 = vrot.lane.b32.xlu0 %v783_v16, %s2576_s0  ;;  %2296 = vmatpush3.bf16.msra.mxu0 %v2402_v4  ;;  %v651_v61 = vmul.f32 %v649_v29, %v2862_v18 }
0x14fd   :  { %1273 = vperm.xlu1 %2379, %v2162_v63   ;;  %v517_v21 = vpop.permute.xlu0 %516 }
0x14fe   :  { %v519_v23 = vmul.f32 %v517_v21, %v2835_v25  ;;  %v2403_v25 = vld [vmem:[%s3232_s5 + $0x10] sm:$0xff]  }
0x14ff   :  { %2297 = vmatprep.subr.bf16.mxu0 %v2403_v25 }
0x1500   :  { %2298 = vmatpush3.bf16.msra.mxu0 %v2403_v25 }
0x1501   :  { %374 = vrot.lane.b32.xlu1 %v372_v26, %s2577_s3  ;;  %v896_v6 = vpop.permute.xlu0 %895  ;;  %v2413_v26 = vld [vmem:[%s3232_s5 + $0x40] sm:$0xff]  }
0x1502   :  { %v898_v24 = vmul.f32 %v896_v6, %v2911_v58  ;;  %v2404_v58 = vld [vmem:[%s3232_s5 + $0x8] sm:$0xff]  }
0x1503   :  { %2299 = vmatprep.subr.bf16.mxu0 %v2404_v58 }
0x1504   :  { %2300 = vmatpush3.bf16.msra.mxu0 %v2404_v58 }
0x1505   :  { %639 = vrot.lane.b32.xlu1 %v637_v20, %s2577_s3  ;;  %v1022_v35 = vpop.permute.xlu0 %1021  ;;  %2301 = vmatprep.subr.bf16.mxu0 %v2406_v32 }
0x1506   :  { %v1024_v19 = vmul.f32 %v1022_v35, %v2937_v39  ;;  %v2578_v39 = vmov 0.0  }
0x1507   :  { %221 = vst.msk [vmem:[#allocation3] sm:$0xff] %vm220_vm1, %v2578_v39  ;;  %223 = vst.msk [vmem:[#allocation3 + $0x48] sm:$0xff] %vm220_vm1, %v2578_v39 }
0x1508   :  { %2302 = vmatpush3.bf16.msra.mxu0 %v2406_v32 }
0x1509   :  { %1038 = vrot.lane.b32.xlu1 %v1036_v17, %s2576_s0  ;;  %v384_v27 = vpop.permute.xlu0 %383  ;;  %2327 = vmatprep.subr.bf16.mxu0 %v2409_v28 }
0x150a   :  { %v386_v42 = vmul.f32 %v384_v27, %v2808_v38  ;;  %v2405_v38 = vld [vmem:[%s3232_s5 + $0x38] sm:$0xff]   ;;  %v2415_v27 = vld [vmem:[%s3234_s7] sm:$0xff]  }
0x150b   :  { %2311 = vmatprep.subr.bf16.mxu1 %v2405_v38 }
0x150c   :  { %2312 = vmatpush3.bf16.msra.mxu1 %v2405_v38 }
0x150d   :  { %771 = vrot.lane.b32.xlu1 %v769_v22, %s2577_s3  ;;  %2313 = vmatprep.subr.bf16.mxu1 %v2407_v34 }
0x150e   :  { %v1294_v1 = vld [vmem:[#allocation3] sm:$0xff]  ;;  %v1303_v35 = vld [vmem:[#allocation3 + $0x48] sm:$0xff] }
0x1510   :  { %2314 = vmatpush3.bf16.msra.mxu1 %v2407_v34 }
0x1511   :  { %521 = vrot.lane.b32.xlu1 %v519_v23, %s2576_s0  ;;  %2315 = vmatprep.subr.bf16.mxu1 %v2408_v44 }
0x1514   :  { %2316 = vmatpush3.bf16.msra.mxu1 %v2408_v44 }
0x1515   :  { %900 = vrot.lane.b32.xlu1 %v898_v24, %s2577_s3  ;;  %2317 = vmatprep.subr.bf16.mxu1 %v2410_v43 }
0x1518   :  { %2318 = vmatpush3.bf16.msra.mxu1 %v2410_v43 }
0x1519   :  { %1026 = vrot.lane.b32.xlu1 %v1024_v19, %s2577_s3  ;;  %v2414_v19 = vld [vmem:[%s3234_s7 + $0x8] sm:$0xff]  }
0x151a   :  { %2343 = vmatprep.subr.bf16.mxu1 %v2414_v19 }
0x151d   :  { %388 = vrot.lane.b32.xlu1 %v386_v42, %s2576_s0 }
0x1561   :  { %v1250_v31 = vpop.permute.xlu0 %1249 }
0x1562   :  { %v1252_v53 = vmul.f32 %v1250_v31, %v2975_v45 }
0x1563   :  { %v1267_v37 = vpop.permute.xlu1 %1266 }
0x1564   :  { %v1269_v48 = vmul.f32 %v1267_v37, %v2978_v47 }
0x1565   :  { %v508_v41 = vpop.permute.xlu0 %507 }
0x1566   :  { %511 = vst.msk [vmem:[#allocation3 + $0x10] sm:$0xff] %vm118_vm0, %v508_v41  ;;  %v1288_v46 = vmul.f32 %v1286_v13, %v1269_v48  ;;  %v2412_v13 = vld [vmem:[%s3232_s5 + $0x48] sm:$0xff]  }
0x1568   :  { %1290 = vrot.lane.b32.xlu0 %v1288_v46, %s2576_s0 }
0x156a   :  { %v1165_v2 = vpop.permute.xlu0 %1164 }
0x156b   :  { %1167 = vst.msk [vmem:[#allocation3 + $0x10] sm:$0xff] %vm392_vm2, %v1165_v2 }
0x156c   :  { %653 = vrot.lane.b32.xlu0 %v651_v61, %s2576_s0  ;;  %v2183_v61 = vld [vmem:[%s3233_s6] ss:$0 sm:$0xff] }
0x156e   :  { %v786_v47 = vpop.permute.xlu0 %785 }
0x156f   :  { %789 = vst.msk [vmem:[#allocation3 + $0x28] sm:$0xff] %vm392_vm2, %v786_v47 }
0x1570   :  { %v908_v18 = vpop.permute.xlu1 %907 }
0x1571   :  { %v910_v49 = vmul.f32 %v908_v18, %v2915_v60 }
0x1572   :  { %v1296_v8 = vld [vmem:[#allocation3 + $0x10] sm:$0xff] }
0x1573   :  { %912 = vrot.lane.b32.xlu0 %v910_v49, %s2576_s0 }
0x1574   :  { %v1148_v51 = vpop.permute.xlu1 %1147 }
0x1575   :  { %v1150_v50 = vmul.f32 %v1148_v51, %v2961_v15 }
0x1577   :  { %1152 = vrot.lane.b32.xlu0 %v1150_v50, %s2577_s3 }
0x1578   :  { %v1274_v55 = vpop.permute.xlu1 %1273 }
0x1579   :  { %v1276_v56 = vmul.f32 %v1274_v55, %v1252_v53 }
0x157b   :  { %1278 = vrot.lane.b32.xlu0 %v1276_v56, %s2577_s3 }
0x157c   :  { %v375_v36 = vpop.permute.xlu1 %374 }
0x157d   :  { %378 = vst.msk [vmem:[#allocation3 + $0x8] sm:$0xff] %vm118_vm0, %v375_v36 }
0x1580   :  { %v640_v62 = vpop.permute.xlu1 %639 }
0x1581   :  { %643 = vst.msk [vmem:[#allocation3 + $0x18] sm:$0xff] %vm118_vm0, %v640_v62 }
0x1584   :  { %v1039_v60 = vpop.permute.xlu1 %1038 }
0x1585   :  { %1041 = vst.msk [vmem:[#allocation3 + $0x18] sm:$0xff] %vm392_vm2, %v1039_v60 }
0x1588   :  { %v772_v54 = vpop.permute.xlu1 %771 }
0x1589   :  { %775 = vst.msk [vmem:[#allocation3 + $0x20] sm:$0xff] %vm118_vm0, %v772_v54 }
0x158c   :  { %v522_v15 = vpop.permute.xlu1 %521  ;;  %v1297_v33 = vld [vmem:[#allocation3 + $0x18] sm:$0xff] }
0x158d   :  { %525 = vst.msk [vmem:[#allocation3 + $0x38] sm:$0xff] %vm392_vm2, %v522_v15  ;;  %v2251_v7 = vpack.c.bf16 %v1297_v33, %v1296_v8 }
0x1590   :  { %v901_v45 = vpop.permute.xlu1 %900 }
0x1591   :  { %903 = vst.msk [vmem:[#allocation3 + $0x28] sm:$0xff] %vm118_vm0, %v901_v45 }
0x1594   :  { %v1027_v63 = vpop.permute.xlu1 %1026 }
0x1598   :  { %v389_v57 = vpop.permute.xlu1 %388  ;;  %v1299_v16 = vld [vmem:[#allocation3 + $0x28] sm:$0xff] }
0x1599   :  { %393 = vst.msk [vmem:[#allocation3 + $0x40] sm:$0xff] %vm392_vm2, %v389_v57 }
0x15da   :  { %v1291_v0 = vpop.permute.xlu0 %1290 }
0x15db   :  { %1293 = vst.msk [vmem:[#allocation3 + $0x8] sm:$0xff] %vm392_vm2, %v1291_v0 }
0x15de   :  { %v654_v30 = vpop.permute.xlu0 %653 }
0x15df   :  { %657 = vst.msk [vmem:[#allocation3 + $0x30] sm:$0xff] %vm392_vm2, %v654_v30 }
0x15e0   :  { %1029 = vst.msk [vmem:[#allocation3 + $0x30] sm:$0xff] %vm118_vm0, %v1027_v63 }
0x15e2   :  { %v1295_v59 = vld [vmem:[#allocation3 + $0x8] sm:$0xff] }
0x15e3   :  { %v2250_v5 = vpack.c.bf16 %v1295_v59, %v1294_v1  ;;  %v2254_v3 = vpack.c.bf16 %v1296_v8, %v1295_v59 }
0x15e5   :  { %v913_v11 = vpop.permute.xlu0 %912  ;;  %2303 = vmatprep.mubr.msk.bf16.mxu0 %vm220_vm1, %v2250_v5  ;;  %2319 = vmatprep.mubr.msk.bf16.mxu1 %vm220_vm1, %v2254_v3 }
0x15e6   :  { %915 = vst.msk [vmem:[#allocation3 + $0x20] sm:$0xff] %vm392_vm2, %v913_v11  ;;  %2304 = vmatmul.mubr.msk.bf16.vlgmr.msra.gmra.mxu0 %vm220_vm1, %v2251_v7 }
0x15e7   :  { %2328 = vmatpush3.bf16.msra.mxu0 %v2409_v28  ;;  %v1300_v12 = vld [vmem:[#allocation3 + $0x30] sm:$0xff] }
0x15e8   :  { %2329 = vmatprep.subr.bf16.mxu0 %v2411_v9  ;;  %v2256_v21 = vpack.c.bf16 %v1300_v12, %v1299_v16 }
0x15e9   :  { %v1153_v10 = vpop.permute.xlu0 %1152 }
0x15ea   :  { %1155 = vst.msk [vmem:[#allocation3 + $0x38] sm:$0xff] %vm118_vm0, %v1153_v10 }
0x15eb   :  { %2330 = vmatpush3.bf16.msra.mxu0 %v2411_v9 }
0x15ec   :  { %2331 = vmatprep.subr.bf16.mxu0 %v2412_v13 }
0x15ed   :  { %v1279_v14 = vpop.permute.xlu0 %1278  ;;  %v1298_v52 = vld [vmem:[#allocation3 + $0x20] sm:$0xff] }
0x15ee   :  { %1281 = vst.msk [vmem:[#allocation3 + $0x40] sm:$0xff] %vm118_vm0, %v1279_v14  ;;  %v2252_v40 = vpack.c.bf16 %v1299_v16, %v1298_v52  ;;  %v2255_v20 = vpack.c.bf16 %v1298_v52, %v1297_v33 }
0x15ef   :  { %2332 = vmatpush3.bf16.msra.mxu0 %v2412_v13 }
0x15f0   :  { %2307 = vmatprep.mubr.msk.bf16.mxu0 %vm220_vm1, %v2252_v40  ;;  %2320 = vmatmul.mubr.msk.bf16.vlgmr.msra.gmra.mxu1 %vm220_vm1, %v2255_v20  ;;  %v2233_v20 = vld [vmem:[%s3235_s8] ss:$0 sm:$0xff] }
0x15f1   :  { %2323 = vmatprep.mubr.msk.bf16.mxu1 %vm220_vm1, %v2256_v21  ;;  %v1301_v17 = vld [vmem:[#allocation3 + $0x38] sm:$0xff]  ;;  %2333 = vmatprep.subr.bf16.mxu0 %v2413_v26 }
0x15f2   :  { %v2253_v22 = vpack.c.bf16 %v1301_v17, %v1300_v12  ;;  %2344 = vmatpush3.bf16.msra.mxu1 %v2414_v19 }
0x15f3   :  { %2334 = vmatpush3.bf16.msra.mxu0 %v2413_v26  ;;  %2345 = vmatprep.subr.bf16.mxu1 %v2415_v27 }
0x15f4   :  { %2308 = vmatmul.mubr.msk.bf16.gmra.mxu0 %vm220_vm1, %v2253_v22  ;;  %2355 = vmatprep.subr.bf16.mxu0 %v2578_v39 }
0x15f5   :  { %2335 = vmatprep.mubr.msk.bf16.mxu0 %vm220_vm1, %v2251_v7  ;;  %v1302_v6 = vld [vmem:[#allocation3 + $0x40] sm:$0xff] }
0x15f6   :  { %v2257_v23 = vpack.c.bf16 %v1302_v6, %v1301_v17  ;;  %v2258_v24 = vpack.c.bf16 %v1303_v35, %v1302_v6  ;;  %2346 = vmatpush3.bf16.msra.mxu1 %v2415_v27 }
0x15f8   :  { %2324 = vmatmul.mubr.msk.bf16.gmra.mxu1 %vm220_vm1, %v2257_v23 }
0x15fc   :  { %2336 = vmatmul.mubr.msk.bf16.vlgmr.msra.gmra.mxu0 %vm220_vm1, %v2252_v40 }
0x15fd   :  { %2339 = vmatprep.mubr.msk.bf16.mxu0 %vm220_vm1, %v2253_v22 }
0x1604   :  { %2340 = vmatmul.mubr.msk.bf16.gmra.mxu0 %vm220_vm1, %v2258_v24 }
0x1605   :  { %2359 = vmatprep.mubr.msk.bf16.mxu0 %vm2579_vm4, %v2578_v39 }
0x16a6   :  { %v2305_v4 = vpop.f32.mrf.mxu0 }
0x16a7   :  { %v1453_v49 = vadd.f32 %v2305_v4, %v2183_v61 }
0x16a8   :  { %v1420_v25 = vpop.f32.mrf.mxu0 }
0x16a9   :  { %v1451_v47 = vadd.f32 %v2183_v61, %v1420_v25 }
0x16aa   :  { %v2306_v42 = vpop.f32.mrf.mxu0 }
0x16ab   :  { %v1454_v2 = vadd.f32 %v2306_v42, %v2183_v61 }
0x16ac   :  { %v1423_v38 = vpop.f32.mrf.mxu0 }
0x16ad   :  { %v1452_v18 = vadd.f32 %v2183_v61, %v1423_v38 }
0x16b0   :  { %v2321_v58 = vpop.f32.mrf.mxu1 }
0x16b1   :  { %v1577_v56 = vadd.f32 %v2321_v58, %v1453_v49 }
0x16b2   :  { %v1544_v29 = vpop.f32.mrf.mxu1 }
0x16b3   :  { %v1575_v53 = vadd.f32 %v1544_v29, %v1451_v47 }
0x16b4   :  { %v2309_v31 = vpop.f32.mrf.mxu0  ;;  %v2322_v32 = vpop.f32.mrf.mxu1 }
0x16b5   :  { %v1578_v51 = vadd.f32 %v2322_v32, %v1454_v2  ;;  %v1457_v5 = vadd.f32 %v2309_v31, %v2183_v61  ;;  %v2240_v31 = vld [vmem:[%s3236_s9] ss:$0 sm:$0xff] }
0x16b6   :  { %v1436_v34 = vpop.f32.mrf.mxu0  ;;  %v1547_v37 = vpop.f32.mrf.mxu1 }
0x16b7   :  { %v1576_v55 = vadd.f32 %v1547_v37, %v1452_v18  ;;  %v1455_v59 = vadd.f32 %v2183_v61, %v1436_v34 }
0x16b8   :  { %v2310_v48 = vpop.f32.mrf.mxu0  ;;  %v2325_v41 = vpop.f32.mrf.mxu1 }
0x16b9   :  { %v1458_v0 = vadd.f32 %v2310_v48, %v2183_v61  ;;  %v1581_v13 = vadd.f32 %v2325_v41, %v1457_v5 }
0x16ba   :  { %v1439_v46 = vpop.f32.mrf.mxu0  ;;  %v1560_v28 = vpop.f32.mrf.mxu1 }
0x16bb   :  { %v1456_v8 = vadd.f32 %v2183_v61, %v1439_v46  ;;  %v1579_v9 = vadd.f32 %v1560_v28, %v1455_v59 }
0x16bc   :  { %v2337_v44 = vpop.f32.mrf.mxu0  ;;  %v2326_v36 = vpop.f32.mrf.mxu1 }
0x16bd   :  { %v3129_v45 = vadd.f32 %v2337_v44, %v1577_v56  ;;  %v1582_v3 = vadd.f32 %v2326_v36, %v1458_v0 }
0x16be   :  { %v1656_v43 = vpop.f32.mrf.mxu0  ;;  %v1563_v30 = vpop.f32.mrf.mxu1 }
0x16bf   :  { %v3125_v54 = vadd.f32 %v1656_v43, %v1575_v53  ;;  %v1580_v11 = vadd.f32 %v1563_v30, %v1456_v8 }
0x16c0   :  { %v2338_v50 = vpop.f32.mrf.mxu0 }
0x16c1   :  { %v3123_v62 = vadd.f32 %v2338_v50, %v1578_v51 }
0x16c2   :  { %v1659_v60 = vpop.f32.mrf.mxu0 }
0x16c3   :  { %v3127_v15 = vadd.f32 %v1659_v60, %v1576_v55  ;;  %v1696_v1 = vpack.c.bf16 %v3123_v62, %v3129_v45 }
0x16c4   :  { %v2341_v63 = vpop.f32.mrf.mxu0 }
0x16c5   :  { %v1695_v57 = vpack.c.bf16 %v3127_v15, %v3125_v54  ;;  %v3143_v16 = vadd.f32 %v2341_v63, %v1581_v13 }
0x16c6   :  { %v1672_v33 = vpop.f32.mrf.mxu0 }
0x16c7   :  { %2347 = vmatprep.mubr.msk.bf16.mxu1 %vm118_vm0, %v1695_v57  ;;  %v3139_v14 = vadd.f32 %v1672_v33, %v1579_v9 }
0x16c8   :  { %v2342_v7 = vpop.f32.mrf.mxu0  ;;  %2348 = vmatmul.mubr.msk.bf16.vlgmr.msra.gmra.mxu1 %vm118_vm0, %v1696_v1 }
0x16c9   :  { %v3137_v10 = vadd.f32 %v2342_v7, %v1582_v3  ;;  %v2241_v3 = vld [vmem:[#allocation4] ss:$0 sm:$0xff] }
0x16ca   :  { %v1675_v12 = vpop.f32.mrf.mxu0 }
0x16cb   :  { %v3141_v52 = vadd.f32 %v1675_v12, %v1580_v11  ;;  %v1698_v40 = vpack.c.bf16 %v3137_v10, %v3143_v16 }
0x16cd   :  { %v1697_v26 = vpack.c.bf16 %v3141_v52, %v3139_v14 }
0x16cf   :  { %2351 = vmatprep.mubr.msk.bf16.mxu1 %vm118_vm0, %v1697_v26 }
0x16d0   :  { %2352 = vmatmul.mubr.msk.bf16.gmra.mxu1 %vm118_vm0, %v1698_v40 }
0x1788   :  { %v2349_v21 = vpop.f32.mrf.mxu1 }
0x1789   :  { %v1777_v17 = vadd.f32 %v2349_v21, %v2233_v20 }
0x178a   :  { %v1768_v22 = vpop.f32.mrf.mxu1 }
0x178b   :  { %2516 = vtanh.f32 %v1777_v17  ;;  %v1769_v6 = vadd.f32 %v2233_v20, %v1768_v22 }
0x178c   :  { %v2350_v23 = vpop.f32.mrf.mxu1 }
0x178d   :  { %2518 = vtanh.f32 %v1769_v6  ;;  %v1780_v35 = vadd.f32 %v2350_v23, %v2233_v20 }
0x178e   :  { %v1771_v24 = vpop.f32.mrf.mxu1 }
0x178f   :  { %2520 = vtanh.f32 %v1780_v35  ;;  %v1772_v19 = vadd.f32 %v2233_v20, %v1771_v24 }
0x1790   :  { %v2353_v27 = vpop.f32.mrf.mxu1 }
0x1791   :  { %2522 = vtanh.f32 %v1772_v19  ;;  %v1793_v4 = vadd.f32 %v2353_v27, %v2233_v20 }
0x1792   :  { %v1784_v25 = vpop.f32.mrf.mxu1 }
0x1793   :  { %v1785_v42 = vadd.f32 %v2233_v20, %v1784_v25  ;;  %2524 = vtanh.f32 %v1793_v4 }
0x1794   :  { %v2354_v58 = vpop.f32.mrf.mxu1 }
0x1795   :  { %2526 = vtanh.f32 %v1785_v42  ;;  %v1796_v38 = vadd.f32 %v2354_v58, %v2233_v20 }
0x1796   :  { %v1787_v29 = vpop.f32.mrf.mxu1 }
0x1797   :  { %v1788_v32 = vadd.f32 %v2233_v20, %v1787_v29  ;;  %2528 = vtanh.f32 %v1796_v38 }
0x1798   :  { %v2517_v34 = vpop.eup %2516 }
0x1799   :  { %2530 = vtanh.f32 %v1788_v32  ;;  %v1816_v37 = vmul.f32 %v2517_v34, %v2240_v31 }
0x179a   :  { %v2519_v48 = vpop.eup %2518 }
0x179b   :  { %v1828_v41 = vsel %vm118_vm0, %v1816_v37, 0.0  ;;  %v1814_v46 = vmul.f32 %v2519_v48, %v2240_v31 }
0x179c   :  { %v2521_v44 = vpop.eup %2520  ;;  %1829 = vadd.xlane.f32.xlu0 %v1828_v41 }
0x179d   :  { %v1822_v61 = vsel %vm118_vm0, %v1814_v46, 0.0  ;;  %v1817_v2 = vmul.f32 %v2521_v44, %v2240_v31 }
0x179e   :  { %v2523_v28 = vpop.eup %2522  ;;  %1823 = vadd.xlane.f32.xlu1 %v1822_v61 }
0x179f   :  { %v1815_v43 = vmul.f32 %v2523_v28, %v2240_v31  ;;  %v1831_v49 = vsel %vm118_vm0, %v1817_v2, 0.0 }
0x17a0   :  { %v2525_v47 = vpop.eup %2524 }
0x17a1   :  { %v1825_v18 = vsel %vm118_vm0, %v1815_v43, 0.0  ;;  %v1820_v56 = vmul.f32 %v2525_v47, %v2240_v31 }
0x17a2   :  { %v2527_v51 = vpop.eup %2526  ;;  %1826 = vadd.xlane.f32.xlu0 %v1825_v18  ;;  %1832 = vadd.xlane.f32.xlu1 %v1831_v49 }
0x17a3   :  { %v1818_v50 = vmul.f32 %v2527_v51, %v2240_v31  ;;  %v1840_v57 = vsel %vm118_vm0, %v1820_v56, 0.0 }
0x17a4   :  { %v2529_v53 = vpop.eup %2528 }
0x17a5   :  { %v1834_v55 = vsel %vm118_vm0, %v1818_v50, 0.0  ;;  %v1821_v0 = vmul.f32 %v2529_v53, %v2240_v31 }
0x17a6   :  { %v2531_v36 = vpop.eup %2530  ;;  %1835 = vadd.xlane.f32.xlu0 %v1834_v55 }
0x17a7   :  { %v1819_v60 = vmul.f32 %v2531_v36, %v2240_v31  ;;  %v1843_v30 = vsel %vm118_vm0, %v1821_v0, 0.0 }
0x17a9   :  { %v1837_v63 = vsel %vm118_vm0, %v1819_v60, 0.0 }
0x17aa   :  { %1838 = vadd.xlane.f32.xlu1 %v1837_v63  ;;  %1841 = vadd.xlane.f32.xlu0 %v1840_v57 }
0x17ae   :  { %1844 = vadd.xlane.f32.xlu1 %v1843_v30 }
0x1825   :  { %v1830_v1 = vpop.xlane.xlu0 %1829 }
0x1826   :  { %v1855_v40 = vadd.f32 %v2241_v3, %v1830_v1 }
0x1827   :  { %v1824_v33 = vpop.xlane.xlu1 %1823 }
0x1828   :  { %v1853_v20 = vadd.f32 %v2241_v3, %v1824_v33  ;;  %v1864_v27 = vsel %vm1861_vm3, %v1855_v40, -inf }
0x182a   :  { %v1862_v4 = vsel %vm1861_vm3, %v1853_v20, -inf }
0x182b   :  { %v1827_v59 = vpop.xlane.xlu0 %1826  ;;  %v1833_v8 = vpop.xlane.xlu1 %1832 }
0x182c   :  { %v1854_v11 = vadd.f32 %v2241_v3, %v1827_v59  ;;  %v1856_v21 = vadd.f32 %v2241_v3, %v1833_v8 }
0x182e   :  { %v1863_v6 = vsel %vm1861_vm3, %v1854_v11, -inf  ;;  %v1865_v25 = vsel %vm1861_vm3, %v1856_v21, -inf }
0x182f   :  { %v1836_v5 = vpop.xlane.xlu0 %1835 }
0x1830   :  { %v1857_v13 = vadd.f32 %v2241_v3, %v1836_v5 }
0x1832   :  { %v1866_v23 = vsel %vm1861_vm3, %v1857_v13, -inf }
0x1833   :  { %v1839_v7 = vpop.xlane.xlu1 %1838  ;;  %v1842_v9 = vpop.xlane.xlu0 %1841  ;;  %v1867_v58 = vmax.f32 %v1862_v4, %v1866_v23 }
0x1834   :  { %v1858_v12 = vadd.f32 %v2241_v3, %v1839_v7  ;;  %v1859_v26 = vadd.f32 %v2241_v3, %v1842_v9 }
0x1836   :  { %v1868_v17 = vsel %vm1861_vm3, %v1858_v12, -inf  ;;  %v1870_v35 = vsel %vm1861_vm3, %v1859_v26, -inf }
0x1837   :  { %v1845_v22 = vpop.xlane.xlu1 %1844  ;;  %v1869_v19 = vmax.f32 %v1863_v6, %v1868_v17  ;;  %v1871_v38 = vmax.f32 %v1864_v27, %v1870_v35 }
0x1838   :  { %v1860_v24 = vadd.f32 %v2241_v3, %v1845_v22 }
0x1839   :  { %v1874_v31 = vmax.f32 %v1867_v58, %v1869_v19  ;;  %v2416_v19 = vld [vmem:[%s3238_s11 + $0x8] sm:$0xff]   ;;  %v2417_v58 = vld [vmem:[%s3238_s11] sm:$0xff]  }
0x183a   :  { %v1872_v42 = vsel %vm1861_vm3, %v1860_v24, -inf  ;;  %2356 = vmatpush3.bf16.msra.mxu0 %v2416_v19 }
0x183b   :  { %v1873_v29 = vmax.f32 %v1865_v25, %v1872_v42  ;;  %2357 = vmatprep.subr.bf16.mxu0 %v2578_v39 }
0x183d   :  { %v1875_v32 = vmax.f32 %v1871_v38, %v1873_v29 }
0x183e   :  { %2358 = vmatpush3.bf16.msra.mxu0 %v2417_v58 }
0x183f   :  { %v1876_v34 = vmax.f32 %v1874_v31, %v1875_v32  ;;  %2363 = vmatprep.subr.bf16.mxu0 %v2578_v39 }
0x1841   :  { %v1877_v37 = vsub.f32 %v1853_v20, %v1876_v34  ;;  %v1878_v48 = vsub.f32 %v1854_v11, %v1876_v34  ;;  %v1879_v41 = vsub.f32 %v1855_v40, %v1876_v34  ;;  %v1880_v46 = vsub.f32 %v1856_v21, %v1876_v34 }
0x1842   :  { %v1881_v44 = vsub.f32 %v1857_v13, %v1876_v34  ;;  %v1882_v43 = vsub.f32 %v1858_v12, %v1876_v34  ;;  %v1883_v18 = vsub.f32 %v1859_v26, %v1876_v34  ;;  %v1884_v51 = vsub.f32 %v1860_v24, %v1876_v34 }
0x1843   :  { %v1885_v61 = vmul.f32 1.442695, %v1877_v37  ;;  %v1887_v2 = vmul.f32 1.442695, %v1878_v48  ;;  %v1889_v28 = vmul.f32 1.442695, %v1879_v41 }
0x1844   :  { %v1891_v47 = vmul.f32 1.442695, %v1880_v46  ;;  %v1893_v49 = vmul.f32 1.442695, %v1881_v44  ;;  %v1895_v50 = vmul.f32 1.442695, %v1882_v43 }
0x1845   :  { %2532 = vpow2.f32 %v1885_v61  ;;  %v1897_v53 = vmul.f32 1.442695, %v1883_v18  ;;  %v1899_v55 = vmul.f32 1.442695, %v1884_v51 }
0x1846   :  { %2534 = vpow2.f32 %v1887_v2 }
0x1847   :  { %2536 = vpow2.f32 %v1889_v28 }
0x1848   :  { %2538 = vpow2.f32 %v1891_v47 }
0x1849   :  { %2540 = vpow2.f32 %v1893_v49 }
0x184a   :  { %2542 = vpow2.f32 %v1895_v50 }
0x184b   :  { %2544 = vpow2.f32 %v1897_v53 }
0x184c   :  { %2546 = vpow2.f32 %v1899_v55 }
0x1852   :  { %v2533_v56 = vpop.eup %2532 }
0x1853   :  { %v2535_v36 = vpop.eup %2534  ;;  %v1901_v60 = vsel %vm1861_vm3, %v2533_v56, 0.0 }
0x1854   :  { %v2537_v63 = vpop.eup %2536  ;;  %v1902_v57 = vsel %vm1861_vm3, %v2535_v36, 0.0 }
0x1855   :  { %v2539_v0 = vpop.eup %2538  ;;  %v1903_v30 = vadd.f32 %v1902_v57, %v1901_v60  ;;  %v1904_v1 = vsel %vm1861_vm3, %v2537_v63, 0.0 }
0x1856   :  { %v2541_v33 = vpop.eup %2540  ;;  %v1906_v8 = vsel %vm1861_vm3, %v2539_v0, 0.0 }
0x1857   :  { %v1905_v59 = vadd.f32 %v1904_v1, %v1903_v30  ;;  %v2543_v5 = vpop.eup %2542  ;;  %v1908_v7 = vsel %vm1861_vm3, %v2541_v33, 0.0 }
0x1858   :  { %v2545_v9 = vpop.eup %2544  ;;  %v1910_v13 = vsel %vm1861_vm3, %v2543_v5, 0.0 }
0x1859   :  { %v1907_v3 = vadd.f32 %v1906_v8, %v1905_v59  ;;  %v2547_v12 = vpop.eup %2546  ;;  %v1912_v40 = vsel %vm1861_vm3, %v2545_v9, 0.0 }
0x185a   :  { %v1914_v21 = vsel %vm1861_vm3, %v2547_v12, 0.0 }
0x185b   :  { %v1909_v11 = vadd.f32 %v1908_v7, %v1907_v3 }
0x185d   :  { %v1911_v26 = vadd.f32 %v1910_v13, %v1909_v11 }
0x185f   :  { %v1913_v20 = vadd.f32 %v1912_v40, %v1911_v26 }
0x1861   :  { %v1915_v17 = vadd.f32 %v1914_v21, %v1913_v20 }
0x1863   :  { %2548 = vrcp.f32 %v1915_v17 }
0x1870   :  { %v2549_v22 = vpop.eup %2548 }
0x1871   :  { %v1918_v6 = vmul.f32 %v2549_v22, %v2535_v36  ;;  %v1917_v23 = vmul.f32 %v2549_v22, %v2533_v56  ;;  %v1919_v35 = vmul.f32 %v2549_v22, %v2537_v63  ;;  %v1920_v24 = vmul.f32 %v2549_v22, %v2539_v0 }
0x1872   :  { %v1921_v27 = vmul.f32 %v2549_v22, %v2541_v33  ;;  %v1922_v4 = vmul.f32 %v2549_v22, %v2543_v5  ;;  %v1923_v25 = vmul.f32 %v2549_v22, %v2545_v9  ;;  %v1924_v42 = vmul.f32 %v2549_v22, %v2547_v12 }
0x1873   :  { %1932 = vperm.xlu1 %2379, %v1918_v6   ;;  %1927 = vperm.xlu0 %2378, %v1917_v23  }
0x1877   :  { %1937 = vperm.xlu1 %2379, %v1919_v35   ;;  %1942 = vperm.xlu0 %2378, %v1920_v24  }
0x187b   :  { %1947 = vperm.xlu1 %2379, %v1921_v27   ;;  %1952 = vperm.xlu0 %2378, %v1922_v4  }
0x187f   :  { %1957 = vperm.xlu1 %2379, %v1923_v25   ;;  %1962 = vperm.xlu0 %2378, %v1924_v42  }
0x18ee   :  { %v1933_v38 = vpop.permute.xlu1 %1932  ;;  %v1928_v29 = vpop.permute.xlu0 %1927 }
0x18ef   :  { %v1966_v31 = vmul.f32 %v1933_v38, %v3127_v15  ;;  %v1965_v32 = vmul.f32 %v1928_v29, %v3125_v54 }
0x18f1   :  { %v1974_v34 = vsel %vm118_vm0, %v1966_v31, 0.0  ;;  %v1973_v37 = vsel %vm118_vm0, %v1965_v32, 0.0 }
0x18f2   :  { %v1938_v48 = vpop.permute.xlu1 %1937  ;;  %v1943_v41 = vpop.permute.xlu0 %1942  ;;  %v1975_v61 = vadd.f32 %v1974_v34, %v1973_v37 }
0x18f3   :  { %v1967_v46 = vmul.f32 %v1938_v48, %v3129_v45  ;;  %v1968_v44 = vmul.f32 %v1943_v41, %v3123_v62 }
0x18f5   :  { %v1976_v2 = vsel %vm118_vm0, %v1967_v46, 0.0  ;;  %v1978_v15 = vsel %vm118_vm0, %v1968_v44, 0.0 }
0x18f6   :  { %v1977_v28 = vadd.f32 %v1976_v2, %v1975_v61  ;;  %v1948_v43 = vpop.permute.xlu1 %1947  ;;  %v1953_v47 = vpop.permute.xlu0 %1952 }
0x18f7   :  { %v1969_v54 = vmul.f32 %v1948_v43, %v3139_v14  ;;  %v1970_v18 = vmul.f32 %v1953_v47, %v3141_v52  ;;  %v2418_v52 = vld [vmem:[%s3240_s13 + $0x8] sm:$0xff]  }
0x18f8   :  { %v1979_v49 = vadd.f32 %v1978_v15, %v1977_v28 }
0x18f9   :  { %v1980_v51 = vsel %vm118_vm0, %v1969_v54, 0.0  ;;  %v1982_v62 = vsel %vm118_vm0, %v1970_v18, 0.0 }
0x18fa   :  { %v1981_v50 = vadd.f32 %v1980_v51, %v1979_v49  ;;  %v1958_v53 = vpop.permute.xlu1 %1957  ;;  %v1963_v45 = vpop.permute.xlu0 %1962 }
0x18fb   :  { %v1971_v55 = vmul.f32 %v1958_v53, %v3143_v16  ;;  %v1972_v56 = vmul.f32 %v1963_v45, %v3137_v10  ;;  %v2419_v10 = vld [vmem:[%s3240_s13] sm:$0xff]  }
0x18fc   :  { %v1983_v36 = vadd.f32 %v1982_v62, %v1981_v50  ;;  %v2242_v16 = vld [vmem:[%s3239_s12] ss:$0 sm:$0xff]  ;;  %s2580_s12 = smov [#allocation5]  }
0x18fd   :  { %v1984_v60 = vsel %vm118_vm0, %v1971_v55, 0.0  ;;  %v1986_v14 = vsel %vm118_vm0, %v1972_v56, 0.0  ;;  %s2134_s13 = sshll.u32 %s2580_s12, 4  ;;  %s2135_s13 = int_to_ptr.vmem [resolvable:$true] %s2134_s13 }
0x18fe   :  { %v1985_v63 = vadd.f32 %v1984_v60, %v1983_v36  ;;  %s2552_s3 = scalar_lea.vmem %s2135_s13, 128  ;;  %p2557_p1 = scmp.lt.s32.totalorder %s2135_s13, %s2135_s13 }
0x18ff   :  { %p2553_p0 = scmp.ne.s32.totalorder %s2135_s13, %s2552_s3  ;;  %p2558_p2 = scmp.lt.s32.totalorder %s2552_s3, %s2552_s3 }
0x1900   :  { %v1987_v57 = vadd.f32 %v1986_v14, %v1985_v63 }
0x1901   :  { %p2559_p3 = por %p2558_p2, %p2557_p1 }
0x1902   :  { %v1988_v0 = vpack.c.bf16 %v1987_v57, %v1987_v57 }
0x1903   :  { %p2560_p4 = pnand %p2559_p3, %p2553_p0 }
0x1904   :  { %2360 = vmatmul.mubr.msk.bf16.vlgmr.msra.gmra.mxu0 %vm118_vm0, %v1988_v0 }
0x1905   :  { %2364 = vmatpush3.bf16.msra.mxu0 %v2418_v52  ;;  %2367 = vmatprep.mubr.msk.bf16.mxu0 %vm2579_vm4, %v2578_v39 }
0x1906   :  { %2365 = vmatprep.subr.bf16.mxu0 %v2578_v39  ;;  %v2246_v39 = vld [vmem:[%s3241_s14] ss:$0 sm:$0xff] }
0x1909   :  { %2366 = vmatpush3.bf16.msra.mxu0 %v2419_v10 }
0x19c4   :  { %v2049_v30 = vpop.f32.mrf.mxu0 }
0x19c5   :  { %v2050_v1 = vadd.f32 %v2242_v16, %v2049_v30 }
0x19c6   :  { %v2361_v33 = vpop.f32.mrf.mxu0 }
0x19c7   :  { %v2055_v59 = vmax.f32 %v2050_v1, 0.0 }
0x19c8   :  { %v2052_v8 = vpop.f32.mrf.mxu0 }
0x19c9   :  { %v2056_v5 = vpack.c.bf16 %v2055_v59, %v2055_v59 }
0x19ca   :  { %v2362_v3 = vpop.f32.mrf.mxu0 }
0x19cb   :  { %2368 = vmatmul.mubr.msk.bf16.vlgmr.msra.gmra.mxu0 %vm118_vm0, %v2056_v5 }
0x1a8b   :  { %v2117_v7 = vpop.f32.mrf.mxu0 }
0x1a8c   :  { %v2118_v9 = vadd.f32 %v2246_v39, %v2117_v7 }
0x1a8d   :  { %v2369_v11 = vpop.f32.mrf.mxu0 }
0x1a8e   :  { %v2123_v13 = vmul.f32 0.5, %v2118_v9 }
0x1a8f   :  { %v2120_v12 = vpop.f32.mrf.mxu0 }
0x1a90   :  { %2550 = vtanh.f32 %v2123_v13 }
0x1a91   :  { %v2370_v26 = vpop.f32.mrf.mxu0 }
0x1a9d   :  { %v2551_v40 = vpop.eup %2550 }
0x1a9e   :  { %v2125_v20 = vmul.f32 0.5, %v2551_v40 }
0x1aa0   :  { %v2126_v21 = vadd.f32 0.5, %v2125_v20 }
0x1aa2   :  { %2127 = vst [vmem:[#allocation5] sm:$0xff] %v2126_v21 }
0x1aa3   :  { %2563 = shalt.err (!%p2560_p4)
}
0x1aa4   :  { %2137 = dma.vmem_to_hbm [thread:$0]  %s2135_s13, 128, %s3242_s15, [#allocation6]  }
0x1aa5   :  { %2572 = dma.done.wait [#allocation6], 128  }
0x1aa6   :  { %2573 = vsyncadd [#allocation6], 4294967168 }
0x1aa7   :  { %2141 = vsyncpa [#allocation6], 1 }

</bundles_post_ra>
